<compile_context>
chip_gen: v7x
topology: tpu7x:2x2x1
jax: 0.10.0
libtpu: 0.0.40
codegen_flags: <defaults>
</compile_context>

<pallas_src>
import functools

import jax
import jax.numpy as jnp
from jax.experimental import pallas as pl
from jax.experimental.pallas import tpu as pltpu


def _concat_lstm_dense_kernel(xi_ref, xa_ref, wih_i_ref, wih_a_ref, whh_ref, bg_ref,
                              w1_ref, b1_ref, w2_ref, b2_ref, out_ref):
    # xi: (TB, T, Di)  xa: (TB, T, Da)  wih_*: (D*, 4H)  whh: (H, 4H)  bg: (1, 4H)
    # w1: (T*H, D1pad) b1: (1, D1pad)   w2: (D1pad, Epad) b2: (1, Epad) out: (TB, Epad)
    tb, t_steps, d_img = xi_ref.shape
    d_aud = xa_ref.shape[2]
    hidden = whh_ref.shape[0]

    whh = whh_ref[...]          # (H, 4H), kept live in vregs across the time loop

    # --- Hoisted input projections: two big matmuls instead of 2*T tiny ones. ---
    xi_flat = xi_ref[...].reshape(tb * t_steps, d_img)
    xa_flat = xa_ref[...].reshape(tb * t_steps, d_aud)
    gates_x = (
        jnp.dot(xi_flat, wih_i_ref[...], preferred_element_type=jnp.float32)
        + jnp.dot(xa_flat, wih_a_ref[...], preferred_element_type=jnp.float32)
        + bg_ref[...]
    ).reshape(tb, t_steps, 4 * hidden)          # row (b, t) of the (B, T) ordering

    h = jnp.zeros((tb, hidden), jnp.float32)
    c = jnp.zeros((tb, hidden), jnp.float32)
    hs_list = []

    # Static (unrolled) time loop: the recurrence is inherently serial over T.
    # Per step: one small h @ W_hh matmul + elementwise gate math only.
    for t in range(t_steps):
        gates = gates_x[:, t, :] + jnp.dot(h, whh, preferred_element_type=jnp.float32)
        # PyTorch gate order: i, f, g, o
        i_g = jax.nn.sigmoid(gates[:, 0 * hidden:1 * hidden])
        f_g = jax.nn.sigmoid(gates[:, 1 * hidden:2 * hidden])
        g_g = jnp.tanh(gates[:, 2 * hidden:3 * hidden])
        o_g = jax.nn.sigmoid(gates[:, 3 * hidden:4 * hidden])
        c = f_g * c + i_g * g_g
        h = o_g * jnp.tanh(c)
        hs_list.append(h)

    # reshape(lstm_out, (B, T*H)) == concat over time along the feature dim.
    hs = jnp.concatenate(hs_list, axis=1)        # (TB, T*H) -- K=128 for dense1

    d1 = jnp.maximum(
        jnp.dot(hs, w1_ref[...], preferred_element_type=jnp.float32) + b1_ref[...], 0.0)
    # TODO(synk): Dropout(0.5) is identity in eval mode; training-mode mask omitted.
    out_ref[...] = (jnp.dot(d1, w2_ref[...], preferred_element_type=jnp.float32)
                    + b2_ref[...]).astype(out_ref.dtype)


def _tensorcores_per_chip():
    """Best-effort TC-per-chip detection (controls the batch-tile heuristic only)."""
    try:
        kind = jax.devices()[0].device_kind.lower()
    except Exception:
        return 1
    if "lite" in kind or "v5e" in kind or "v6e" in kind or "v6 lite" in kind:
        return 1
    if any(tag in kind for tag in ("v7", "v4", "v5p")):
        return 2
    return 1


def _default_block_batch(batch):
    round8 = lambda n: max(8, -(-n // 8) * 8)
    cores = _tensorcores_per_chip()
    if cores > 1 and batch > 8:
        # Even "parallel" grid so megacore splits the batch across TensorCores.
        return round8(pl.cdiv(batch, cores))
    # Single-TC chip: one grid step for small/medium batches (grid steps are serial).
    return min(round8(batch), 256)


@functools.partial(jax.jit, static_argnames=("block_batch",))
def concatenation_net_forward(x_img, x_aud, w_ih, w_hh, b_ih, b_hh, w1, b1, w2, b2,
                              *, block_batch=None):
    """JAX/Pallas equivalent of Concatenation_net.forward (eval mode).

    x_img: (B, T, image_size)   x_aud: (B, T, audio_size)
    w_ih:  (image_size+audio_size, 4H)   w_hh: (H, 4H)   b_ih, b_hh: (4H,)
    w1: (T*H, 500)  b1: (500,)   w2: (500, n_emotions)  b2: (n_emotions,)
    returns (B, n_emotions)
    """
    batch, t_steps, d_img = x_img.shape
    d_aud = x_aud.shape[2]
    hidden = w_hh.shape[0]
    d1_size = w1.shape[1]
    n_out = w2.shape[1]

    # Fold torch.cat into split input-weight matmuls (no concatenated activation copy).
    w_ih_img = w_ih[:d_img].astype(jnp.float32)
    w_ih_aud = w_ih[d_img:].astype(jnp.float32)
    b_gates = (b_ih + b_hh).astype(jnp.float32).reshape(1, 4 * hidden)

    # Lane-dense tail: pad dense1 (500 -> 512) and n_emotions (8 -> 128) to multiples
    # of 128 so all vector loads/stores in the tail are unmasked.
    d1_pad = -(-d1_size // 128) * 128
    e_pad = -(-n_out // 128) * 128
    w1p = jnp.pad(w1.astype(jnp.float32), ((0, 0), (0, d1_pad - d1_size)))
    b1p = jnp.pad(b1.astype(jnp.float32), ((0, d1_pad - d1_size),)).reshape(1, d1_pad)
    w2p = jnp.pad(w2.astype(jnp.float32),
                  ((0, d1_pad - d1_size), (0, e_pad - n_out)))
    b2p = jnp.pad(b2.astype(jnp.float32), ((0, e_pad - n_out),)).reshape(1, e_pad)

    # Batch tile (grid axis), chosen per chip generation.
    tb = _default_block_batch(batch) if block_batch is None else block_batch
    b_pad = -(-batch // tb) * tb
    if b_pad != batch:
        x_img = jnp.pad(x_img, ((0, b_pad - batch), (0, 0), (0, 0)))
        x_aud = jnp.pad(x_aud, ((0, b_pad - batch), (0, 0), (0, 0)))

    out = pl.pallas_call(
        _concat_lstm_dense_kernel,
        out_shape=jax.ShapeDtypeStruct((b_pad, e_pad), jnp.float32),
        grid_spec=pltpu.PrefetchScalarGridSpec(
            num_scalar_prefetch=0,
            grid=(b_pad // tb,),
            in_specs=[
                pl.BlockSpec((tb, t_steps, d_img), lambda b: (b, 0, 0)),      # image tile
                pl.BlockSpec((tb, t_steps, d_aud), lambda b: (b, 0, 0)),      # audio tile
                pl.BlockSpec((d_img, 4 * hidden), lambda b: (0, 0)),          # W_ih (image)
                pl.BlockSpec((d_aud, 4 * hidden), lambda b: (0, 0)),          # W_ih (audio)
                pl.BlockSpec((hidden, 4 * hidden), lambda b: (0, 0)),         # W_hh
                pl.BlockSpec((1, 4 * hidden), lambda b: (0, 0)),              # b_ih + b_hh
                pl.BlockSpec((t_steps * hidden, d1_pad), lambda b: (0, 0)),   # dense1 W (padded)
                pl.BlockSpec((1, d1_pad), lambda b: (0, 0)),                  # dense1 b (padded)
                pl.BlockSpec((d1_pad, e_pad), lambda b: (0, 0)),              # dense2 W (padded)
                pl.BlockSpec((1, e_pad), lambda b: (0, 0)),                   # dense2 b (padded)
            ],
            out_specs=pl.BlockSpec((tb, e_pad), lambda b: (b, 0)),
        ),
        compiler_params=pltpu.CompilerParams(dimension_semantics=("parallel",)),
    )(x_img.astype(jnp.float32), x_aud.astype(jnp.float32),
      w_ih_img, w_ih_aud, w_hh.astype(jnp.float32), b_gates,
      w1p, b1p, w2p, b2p)

    return out[:batch, :n_out]


if __name__ == "__main__":
    key = jax.random.PRNGKey(0)

    # Small shapes consistent with the module (constructor args scaled down; dense1=500
    # is hard-coded in the PyTorch module and kept as-is).
    batch = 16            # batch_size
    num_frames = 8        # num_frames (sequence length)
    hidden = 16           # num_frames_LSTM (LSTM hidden size)
    image_size = 32
    audio_size = 16
    dense1_size = 500
    n_emotions = 8

    def _uniform(k, shape, fan_in):
        bound = 1.0 / float(fan_in) ** 0.5
        return jax.random.uniform(k, shape, jnp.float32, -bound, bound)

    d_in = image_size + audio_size
    keys = jax.random.split(key, 10)
    w_ih = _uniform(keys[0], (d_in, 4 * hidden), hidden)            # LSTM input weights
    w_hh = _uniform(keys[1], (hidden, 4 * hidden), hidden)          # LSTM recurrent weights
    b_ih = _uniform(keys[2], (4 * hidden,), hidden)
    b_hh = _uniform(keys[3], (4 * hidden,), hidden)
    w1 = _uniform(keys[4], (num_frames * hidden, dense1_size), num_frames * hidden)
    b1 = _uniform(keys[5], (dense1_size,), num_frames * hidden)
    w2 = _uniform(keys[6], (dense1_size, n_emotions), dense1_size)
    b2 = _uniform(keys[7], (n_emotions,), dense1_size)

    x_img = jax.random.normal(keys[8], (batch, num_frames, image_size), jnp.float32)
    x_aud = jax.random.normal(keys[9], (batch, num_frames, audio_size), jnp.float32)

    # block_batch=None -> per-chip heuristic (grid=1 on v5e/v6e, grid=2 on v7x/v4/v5p).
    out = concatenation_net_forward(x_img, x_aud, w_ih, w_hh, b_ih, b_hh,
                                    w1, b1, w2, b2)
    out = jax.block_until_ready(out)

    # Pure-JAX reference (eval mode: Dropout is identity), gate order i, f, g, o.
    def reference():
        x = jnp.concatenate([x_img, x_aud], axis=2)                  # (B, T, Din)
        h = jnp.zeros((batch, hidden), jnp.float32)
        c = jnp.zeros((batch, hidden), jnp.float32)
        hs = []
        for t in range(num_frames):
            gates = x[:, t, :] @ w_ih + h @ w_hh + b_ih + b_hh
            i = jax.nn.sigmoid(gates[:, 0 * hidden:1 * hidden])
            f = jax.nn.sigmoid(gates[:, 1 * hidden:2 * hidden])
            g = jnp.tanh(gates[:, 2 * hidden:3 * hidden])
            o = jax.nn.sigmoid(gates[:, 3 * hidden:4 * hidden])
            c = f * c + i * g
            h = o * jnp.tanh(c)
            hs.append(h)
        hs = jnp.stack(hs, axis=1).reshape(batch, num_frames * hidden)
        d1 = jax.nn.relu(hs @ w1 + b1)
        return d1 @ w2 + b2

    ref = reference()
    assert out.shape == (batch, n_emotions)
    assert bool(jnp.all(jnp.isfinite(out)))
    max_err = float(jnp.max(jnp.abs(out - ref)))
    assert bool(jnp.allclose(out, ref, atol=2e-2, rtol=2e-2)), max_err

    print("KERNEL_OK")
</pallas_src>

<mosaic_0001>
module attributes {stable_mosaic.version = 11 : i64} {
  func.func @_concat_lstm_dense_kernel(%arg0: i32, %arg1: memref<16x8x32xf32, #tpu.memory_space<vmem>>, %arg2: memref<16x8x16xf32, #tpu.memory_space<vmem>>, %arg3: memref<32x64xf32, #tpu.memory_space<vmem>>, %arg4: memref<16x64xf32, #tpu.memory_space<vmem>>, %arg5: memref<16x64xf32, #tpu.memory_space<vmem>>, %arg6: memref<1x64xf32, #tpu.memory_space<vmem>>, %arg7: memref<128x512xf32, #tpu.memory_space<vmem>>, %arg8: memref<1x512xf32, #tpu.memory_space<vmem>>, %arg9: memref<512x128xf32, #tpu.memory_space<vmem>>, %arg10: memref<1x128xf32, #tpu.memory_space<vmem>>, %arg11: memref<16x128xf32, #tpu.memory_space<vmem>>) attributes {dimension_semantics = [#tpu.dimension_semantics<parallel>], iteration_bounds = array<i64: 1>, scalar_prefetch = 0 : i64, scratch_operands = 0 : i64, tpu.core_type = #tpu.core_type<tc>, window_params = [{transform_indices = @transform_0, window_bounds = array<i64: 16, 8, 32>}, {transform_indices = @transform_1, window_bounds = array<i64: 16, 8, 16>}, {pipeline_mode = #tpu.pipeline_mode<synchronous>, transform_indices = @transform_2, window_bounds = array<i64: 32, 64>}, {pipeline_mode = #tpu.pipeline_mode<synchronous>, transform_indices = @transform_3, window_bounds = array<i64: 16, 64>}, {pipeline_mode = #tpu.pipeline_mode<synchronous>, transform_indices = @transform_4, window_bounds = array<i64: 16, 64>}, {pipeline_mode = #tpu.pipeline_mode<synchronous>, transform_indices = @transform_5, window_bounds = array<i64: 1, 64>}, {pipeline_mode = #tpu.pipeline_mode<synchronous>, transform_indices = @transform_6, window_bounds = array<i64: 128, 512>}, {pipeline_mode = #tpu.pipeline_mode<synchronous>, transform_indices = @transform_7, window_bounds = array<i64: 1, 512>}, {pipeline_mode = #tpu.pipeline_mode<synchronous>, transform_indices = @transform_8, window_bounds = array<i64: 512, 128>}, {pipeline_mode = #tpu.pipeline_mode<synchronous>, transform_indices = @transform_9, window_bounds = array<i64: 1, 128>}, {transform_indices = @transform_10, window_bounds = array<i64: 16, 128>}]} {
    %c0 = arith.constant 0 : index
    %c0_0 = arith.constant 0 : index
    %0 = vector.load %arg5[%c0, %c0_0] : memref<16x64xf32, #tpu.memory_space<vmem>>, vector<16x64xf32>
    %c0_1 = arith.constant 0 : index
    %c0_2 = arith.constant 0 : index
    %c0_3 = arith.constant 0 : index
    %1 = vector.load %arg1[%c0_1, %c0_2, %c0_3] : memref<16x8x32xf32, #tpu.memory_space<vmem>>, vector<16x8x32xf32>
    %2 = vector.shape_cast %1 : vector<16x8x32xf32> to vector<128x32xf32>
    %c0_4 = arith.constant 0 : index
    %c0_5 = arith.constant 0 : index
    %c0_6 = arith.constant 0 : index
    %3 = vector.load %arg2[%c0_4, %c0_5, %c0_6] : memref<16x8x16xf32, #tpu.memory_space<vmem>>, vector<16x8x16xf32>
    %4 = vector.shape_cast %3 : vector<16x8x16xf32> to vector<128x16xf32>
    %c0_7 = arith.constant 0 : index
    %c0_8 = arith.constant 0 : index
    %5 = vector.load %arg3[%c0_7, %c0_8] : memref<32x64xf32, #tpu.memory_space<vmem>>, vector<32x64xf32>
    %cst = arith.constant dense<0.000000e+00> : vector<128x64xf32>
    %6 = tpu.matmul %2, %5, %cst {dimension_numbers = #tpu.dot_dimension_numbers<[1], [0], [0], [1], [0, 0, 1, 1], [], []>} : vector<128x32xf32>, vector<32x64xf32>, vector<128x64xf32> -> vector<128x64xf32>
    %c0_9 = arith.constant 0 : index
    %c0_10 = arith.constant 0 : index
    %7 = vector.load %arg4[%c0_9, %c0_10] : memref<16x64xf32, #tpu.memory_space<vmem>>, vector<16x64xf32>
    %cst_11 = arith.constant dense<0.000000e+00> : vector<128x64xf32>
    %8 = tpu.matmul %4, %7, %cst_11 {dimension_numbers = #tpu.dot_dimension_numbers<[1], [0], [0], [1], [0, 0, 1, 1], [], []>} : vector<128x16xf32>, vector<16x64xf32>, vector<128x64xf32> -> vector<128x64xf32>
    %9 = arith.addf %6, %8 : vector<128x64xf32>
    %c0_12 = arith.constant 0 : index
    %c0_13 = arith.constant 0 : index
    %10 = vector.load %arg6[%c0_12, %c0_13] : memref<1x64xf32, #tpu.memory_space<vmem>>, vector<1x64xf32>
    %11 = vector.broadcast %10 : vector<1x64xf32> to vector<128x64xf32>
    %12 = arith.addf %9, %11 : vector<128x64xf32>
    %13 = vector.shape_cast %12 : vector<128x64xf32> to vector<16x8x64xf32>
    %cst_14 = arith.constant 0.000000e+00 : f32
    %14 = vector.broadcast %cst_14 : f32 to vector<16x16xf32>
    %cst_15 = arith.constant 0.000000e+00 : f32
    %15 = vector.broadcast %cst_15 : f32 to vector<16x16xf32>
    %16 = vector.extract_strided_slice %13 {offsets = [0, 0, 0], sizes = [16, 1, 64], strides = [1, 1, 1]} : vector<16x8x64xf32> to vector<16x1x64xf32>
    %17 = vector.shape_cast %16 : vector<16x1x64xf32> to vector<16x64xf32>
    %cst_16 = arith.constant dense<0.000000e+00> : vector<16x64xf32>
    %18 = tpu.matmul %14, %0, %cst_16 {dimension_numbers = #tpu.dot_dimension_numbers<[1], [0], [0], [1], [0, 0, 1, 1], [], []>} : vector<16x16xf32>, vector<16x64xf32>, vector<16x64xf32> -> vector<16x64xf32>
    %19 = arith.addf %17, %18 : vector<16x64xf32>
    %20 = vector.extract_strided_slice %19 {offsets = [0, 0], sizes = [16, 16], strides = [1, 1]} : vector<16x64xf32> to vector<16x16xf32>
    %21 = arith.negf %20 : vector<16x16xf32>
    %22 = math.exp %21 : vector<16x16xf32>
    %cst_17 = arith.constant 1.000000e+00 : f32
    %23 = vector.broadcast %cst_17 : f32 to vector<16x16xf32>
    %24 = arith.addf %23, %22 : vector<16x16xf32>
    %25 = arith.divf %23, %24 : vector<16x16xf32>
    %26 = vector.extract_strided_slice %19 {offsets = [0, 16], sizes = [16, 16], strides = [1, 1]} : vector<16x64xf32> to vector<16x16xf32>
    %27 = arith.negf %26 : vector<16x16xf32>
    %28 = math.exp %27 : vector<16x16xf32>
    %cst_18 = arith.constant 1.000000e+00 : f32
    %29 = vector.broadcast %cst_18 : f32 to vector<16x16xf32>
    %30 = arith.addf %29, %28 : vector<16x16xf32>
    %31 = arith.divf %29, %30 : vector<16x16xf32>
    %32 = vector.extract_strided_slice %19 {offsets = [0, 32], sizes = [16, 16], strides = [1, 1]} : vector<16x64xf32> to vector<16x16xf32>
    %33 = math.tanh %32 : vector<16x16xf32>
    %34 = vector.extract_strided_slice %19 {offsets = [0, 48], sizes = [16, 16], strides = [1, 1]} : vector<16x64xf32> to vector<16x16xf32>
    %35 = arith.negf %34 : vector<16x16xf32>
    %36 = math.exp %35 : vector<16x16xf32>
    %cst_19 = arith.constant 1.000000e+00 : f32
    %37 = vector.broadcast %cst_19 : f32 to vector<16x16xf32>
    %38 = arith.addf %37, %36 : vector<16x16xf32>
    %39 = arith.divf %37, %38 : vector<16x16xf32>
    %40 = arith.mulf %31, %15 : vector<16x16xf32>
    %41 = arith.mulf %25, %33 : vector<16x16xf32>
    %42 = arith.addf %40, %41 : vector<16x16xf32>
    %43 = math.tanh %42 : vector<16x16xf32>
    %44 = arith.mulf %39, %43 : vector<16x16xf32>
    %45 = vector.extract_strided_slice %13 {offsets = [0, 1, 0], sizes = [16, 1, 64], strides = [1, 1, 1]} : vector<16x8x64xf32> to vector<16x1x64xf32>
    %46 = vector.shape_cast %45 : vector<16x1x64xf32> to vector<16x64xf32>
    %cst_20 = arith.constant dense<0.000000e+00> : vector<16x64xf32>
    %47 = tpu.matmul %44, %0, %cst_20 {dimension_numbers = #tpu.dot_dimension_numbers<[1], [0], [0], [1], [0, 0, 1, 1], [], []>} : vector<16x16xf32>, vector<16x64xf32>, vector<16x64xf32> -> vector<16x64xf32>
    %48 = arith.addf %46, %47 : vector<16x64xf32>
    %49 = vector.extract_strided_slice %48 {offsets = [0, 0], sizes = [16, 16], strides = [1, 1]} : vector<16x64xf32> to vector<16x16xf32>
    %50 = arith.negf %49 : vector<16x16xf32>
    %51 = math.exp %50 : vector<16x16xf32>
    %cst_21 = arith.constant 1.000000e+00 : f32
    %52 = vector.broadcast %cst_21 : f32 to vector<16x16xf32>
    %53 = arith.addf %52, %51 : vector<16x16xf32>
    %54 = arith.divf %52, %53 : vector<16x16xf32>
    %55 = vector.extract_strided_slice %48 {offsets = [0, 16], sizes = [16, 16], strides = [1, 1]} : vector<16x64xf32> to vector<16x16xf32>
    %56 = arith.negf %55 : vector<16x16xf32>
    %57 = math.exp %56 : vector<16x16xf32>
    %cst_22 = arith.constant 1.000000e+00 : f32
    %58 = vector.broadcast %cst_22 : f32 to vector<16x16xf32>
    %59 = arith.addf %58, %57 : vector<16x16xf32>
    %60 = arith.divf %58, %59 : vector<16x16xf32>
    %61 = vector.extract_strided_slice %48 {offsets = [0, 32], sizes = [16, 16], strides = [1, 1]} : vector<16x64xf32> to vector<16x16xf32>
    %62 = math.tanh %61 : vector<16x16xf32>
    %63 = vector.extract_strided_slice %48 {offsets = [0, 48], sizes = [16, 16], strides = [1, 1]} : vector<16x64xf32> to vector<16x16xf32>
    %64 = arith.negf %63 : vector<16x16xf32>
    %65 = math.exp %64 : vector<16x16xf32>
    %cst_23 = arith.constant 1.000000e+00 : f32
    %66 = vector.broadcast %cst_23 : f32 to vector<16x16xf32>
    %67 = arith.addf %66, %65 : vector<16x16xf32>
    %68 = arith.divf %66, %67 : vector<16x16xf32>
    %69 = arith.mulf %60, %42 : vector<16x16xf32>
    %70 = arith.mulf %54, %62 : vector<16x16xf32>
    %71 = arith.addf %69, %70 : vector<16x16xf32>
    %72 = math.tanh %71 : vector<16x16xf32>
    %73 = arith.mulf %68, %72 : vector<16x16xf32>
    %74 = vector.extract_strided_slice %13 {offsets = [0, 2, 0], sizes = [16, 1, 64], strides = [1, 1, 1]} : vector<16x8x64xf32> to vector<16x1x64xf32>
    %75 = vector.shape_cast %74 : vector<16x1x64xf32> to vector<16x64xf32>
    %cst_24 = arith.constant dense<0.000000e+00> : vector<16x64xf32>
    %76 = tpu.matmul %73, %0, %cst_24 {dimension_numbers = #tpu.dot_dimension_numbers<[1], [0], [0], [1], [0, 0, 1, 1], [], []>} : vector<16x16xf32>, vector<16x64xf32>, vector<16x64xf32> -> vector<16x64xf32>
    %77 = arith.addf %75, %76 : vector<16x64xf32>
    %78 = vector.extract_strided_slice %77 {offsets = [0, 0], sizes = [16, 16], strides = [1, 1]} : vector<16x64xf32> to vector<16x16xf32>
    %79 = arith.negf %78 : vector<16x16xf32>
    %80 = math.exp %79 : vector<16x16xf32>
    %cst_25 = arith.constant 1.000000e+00 : f32
    %81 = vector.broadcast %cst_25 : f32 to vector<16x16xf32>
    %82 = arith.addf %81, %80 : vector<16x16xf32>
    %83 = arith.divf %81, %82 : vector<16x16xf32>
    %84 = vector.extract_strided_slice %77 {offsets = [0, 16], sizes = [16, 16], strides = [1, 1]} : vector<16x64xf32> to vector<16x16xf32>
    %85 = arith.negf %84 : vector<16x16xf32>
    %86 = math.exp %85 : vector<16x16xf32>
    %cst_26 = arith.constant 1.000000e+00 : f32
    %87 = vector.broadcast %cst_26 : f32 to vector<16x16xf32>
    %88 = arith.addf %87, %86 : vector<16x16xf32>
    %89 = arith.divf %87, %88 : vector<16x16xf32>
    %90 = vector.extract_strided_slice %77 {offsets = [0, 32], sizes = [16, 16], strides = [1, 1]} : vector<16x64xf32> to vector<16x16xf32>
    %91 = math.tanh %90 : vector<16x16xf32>
    %92 = vector.extract_strided_slice %77 {offsets = [0, 48], sizes = [16, 16], strides = [1, 1]} : vector<16x64xf32> to vector<16x16xf32>
    %93 = arith.negf %92 : vector<16x16xf32>
    %94 = math.exp %93 : vector<16x16xf32>
    %cst_27 = arith.constant 1.000000e+00 : f32
    %95 = vector.broadcast %cst_27 : f32 to vector<16x16xf32>
    %96 = arith.addf %95, %94 : vector<16x16xf32>
    %97 = arith.divf %95, %96 : vector<16x16xf32>
    %98 = arith.mulf %89, %71 : vector<16x16xf32>
    %99 = arith.mulf %83, %91 : vector<16x16xf32>
    %100 = arith.addf %98, %99 : vector<16x16xf32>
    %101 = math.tanh %100 : vector<16x16xf32>
    %102 = arith.mulf %97, %101 : vector<16x16xf32>
    %103 = vector.extract_strided_slice %13 {offsets = [0, 3, 0], sizes = [16, 1, 64], strides = [1, 1, 1]} : vector<16x8x64xf32> to vector<16x1x64xf32>
    %104 = vector.shape_cast %103 : vector<16x1x64xf32> to vector<16x64xf32>
    %cst_28 = arith.constant dense<0.000000e+00> : vector<16x64xf32>
    %105 = tpu.matmul %102, %0, %cst_28 {dimension_numbers = #tpu.dot_dimension_numbers<[1], [0], [0], [1], [0, 0, 1, 1], [], []>} : vector<16x16xf32>, vector<16x64xf32>, vector<16x64xf32> -> vector<16x64xf32>
    %106 = arith.addf %104, %105 : vector<16x64xf32>
    %107 = vector.extract_strided_slice %106 {offsets = [0, 0], sizes = [16, 16], strides = [1, 1]} : vector<16x64xf32> to vector<16x16xf32>
    %108 = arith.negf %107 : vector<16x16xf32>
    %109 = math.exp %108 : vector<16x16xf32>
    %cst_29 = arith.constant 1.000000e+00 : f32
    %110 = vector.broadcast %cst_29 : f32 to vector<16x16xf32>
    %111 = arith.addf %110, %109 : vector<16x16xf32>
    %112 = arith.divf %110, %111 : vector<16x16xf32>
    %113 = vector.extract_strided_slice %106 {offsets = [0, 16], sizes = [16, 16], strides = [1, 1]} : vector<16x64xf32> to vector<16x16xf32>
    %114 = arith.negf %113 : vector<16x16xf32>
    %115 = math.exp %114 : vector<16x16xf32>
    %cst_30 = arith.constant 1.000000e+00 : f32
    %116 = vector.broadcast %cst_30 : f32 to vector<16x16xf32>
    %117 = arith.addf %116, %115 : vector<16x16xf32>
    %118 = arith.divf %116, %117 : vector<16x16xf32>
    %119 = vector.extract_strided_slice %106 {offsets = [0, 32], sizes = [16, 16], strides = [1, 1]} : vector<16x64xf32> to vector<16x16xf32>
    %120 = math.tanh %119 : vector<16x16xf32>
    %121 = vector.extract_strided_slice %106 {offsets = [0, 48], sizes = [16, 16], strides = [1, 1]} : vector<16x64xf32> to vector<16x16xf32>
    %122 = arith.negf %121 : vector<16x16xf32>
    %123 = math.exp %122 : vector<16x16xf32>
    %cst_31 = arith.constant 1.000000e+00 : f32
    %124 = vector.broadcast %cst_31 : f32 to vector<16x16xf32>
    %125 = arith.addf %124, %123 : vector<16x16xf32>
    %126 = arith.divf %124, %125 : vector<16x16xf32>
    %127 = arith.mulf %118, %100 : vector<16x16xf32>
    %128 = arith.mulf %112, %120 : vector<16x16xf32>
    %129 = arith.addf %127, %128 : vector<16x16xf32>
    %130 = math.tanh %129 : vector<16x16xf32>
    %131 = arith.mulf %126, %130 : vector<16x16xf32>
    %132 = vector.extract_strided_slice %13 {offsets = [0, 4, 0], sizes = [16, 1, 64], strides = [1, 1, 1]} : vector<16x8x64xf32> to vector<16x1x64xf32>
    %133 = vector.shape_cast %132 : vector<16x1x64xf32> to vector<16x64xf32>
    %cst_32 = arith.constant dense<0.000000e+00> : vector<16x64xf32>
    %134 = tpu.matmul %131, %0, %cst_32 {dimension_numbers = #tpu.dot_dimension_numbers<[1], [0], [0], [1], [0, 0, 1, 1], [], []>} : vector<16x16xf32>, vector<16x64xf32>, vector<16x64xf32> -> vector<16x64xf32>
    %135 = arith.addf %133, %134 : vector<16x64xf32>
    %136 = vector.extract_strided_slice %135 {offsets = [0, 0], sizes = [16, 16], strides = [1, 1]} : vector<16x64xf32> to vector<16x16xf32>
    %137 = arith.negf %136 : vector<16x16xf32>
    %138 = math.exp %137 : vector<16x16xf32>
    %cst_33 = arith.constant 1.000000e+00 : f32
    %139 = vector.broadcast %cst_33 : f32 to vector<16x16xf32>
    %140 = arith.addf %139, %138 : vector<16x16xf32>
    %141 = arith.divf %139, %140 : vector<16x16xf32>
    %142 = vector.extract_strided_slice %135 {offsets = [0, 16], sizes = [16, 16], strides = [1, 1]} : vector<16x64xf32> to vector<16x16xf32>
    %143 = arith.negf %142 : vector<16x16xf32>
    %144 = math.exp %143 : vector<16x16xf32>
    %cst_34 = arith.constant 1.000000e+00 : f32
    %145 = vector.broadcast %cst_34 : f32 to vector<16x16xf32>
    %146 = arith.addf %145, %144 : vector<16x16xf32>
    %147 = arith.divf %145, %146 : vector<16x16xf32>
    %148 = vector.extract_strided_slice %135 {offsets = [0, 32], sizes = [16, 16], strides = [1, 1]} : vector<16x64xf32> to vector<16x16xf32>
    %149 = math.tanh %148 : vector<16x16xf32>
    %150 = vector.extract_strided_slice %135 {offsets = [0, 48], sizes = [16, 16], strides = [1, 1]} : vector<16x64xf32> to vector<16x16xf32>
    %151 = arith.negf %150 : vector<16x16xf32>
    %152 = math.exp %151 : vector<16x16xf32>
    %cst_35 = arith.constant 1.000000e+00 : f32
    %153 = vector.broadcast %cst_35 : f32 to vector<16x16xf32>
    %154 = arith.addf %153, %152 : vector<16x16xf32>
    %155 = arith.divf %153, %154 : vector<16x16xf32>
    %156 = arith.mulf %147, %129 : vector<16x16xf32>
    %157 = arith.mulf %141, %149 : vector<16x16xf32>
    %158 = arith.addf %156, %157 : vector<16x16xf32>
    %159 = math.tanh %158 : vector<16x16xf32>
    %160 = arith.mulf %155, %159 : vector<16x16xf32>
    %161 = vector.extract_strided_slice %13 {offsets = [0, 5, 0], sizes = [16, 1, 64], strides = [1, 1, 1]} : vector<16x8x64xf32> to vector<16x1x64xf32>
    %162 = vector.shape_cast %161 : vector<16x1x64xf32> to vector<16x64xf32>
    %cst_36 = arith.constant dense<0.000000e+00> : vector<16x64xf32>
    %163 = tpu.matmul %160, %0, %cst_36 {dimension_numbers = #tpu.dot_dimension_numbers<[1], [0], [0], [1], [0, 0, 1, 1], [], []>} : vector<16x16xf32>, vector<16x64xf32>, vector<16x64xf32> -> vector<16x64xf32>
    %164 = arith.addf %162, %163 : vector<16x64xf32>
    %165 = vector.extract_strided_slice %164 {offsets = [0, 0], sizes = [16, 16], strides = [1, 1]} : vector<16x64xf32> to vector<16x16xf32>
    %166 = arith.negf %165 : vector<16x16xf32>
    %167 = math.exp %166 : vector<16x16xf32>
    %cst_37 = arith.constant 1.000000e+00 : f32
    %168 = vector.broadcast %cst_37 : f32 to vector<16x16xf32>
    %169 = arith.addf %168, %167 : vector<16x16xf32>
    %170 = arith.divf %168, %169 : vector<16x16xf32>
    %171 = vector.extract_strided_slice %164 {offsets = [0, 16], sizes = [16, 16], strides = [1, 1]} : vector<16x64xf32> to vector<16x16xf32>
    %172 = arith.negf %171 : vector<16x16xf32>
    %173 = math.exp %172 : vector<16x16xf32>
    %cst_38 = arith.constant 1.000000e+00 : f32
    %174 = vector.broadcast %cst_38 : f32 to vector<16x16xf32>
    %175 = arith.addf %174, %173 : vector<16x16xf32>
    %176 = arith.divf %174, %175 : vector<16x16xf32>
    %177 = vector.extract_strided_slice %164 {offsets = [0, 32], sizes = [16, 16], strides = [1, 1]} : vector<16x64xf32> to vector<16x16xf32>
    %178 = math.tanh %177 : vector<16x16xf32>
    %179 = vector.extract_strided_slice %164 {offsets = [0, 48], sizes = [16, 16], strides = [1, 1]} : vector<16x64xf32> to vector<16x16xf32>
    %180 = arith.negf %179 : vector<16x16xf32>
    %181 = math.exp %180 : vector<16x16xf32>
    %cst_39 = arith.constant 1.000000e+00 : f32
    %182 = vector.broadcast %cst_39 : f32 to vector<16x16xf32>
    %183 = arith.addf %182, %181 : vector<16x16xf32>
    %184 = arith.divf %182, %183 : vector<16x16xf32>
    %185 = arith.mulf %176, %158 : vector<16x16xf32>
    %186 = arith.mulf %170, %178 : vector<16x16xf32>
    %187 = arith.addf %185, %186 : vector<16x16xf32>
    %188 = math.tanh %187 : vector<16x16xf32>
    %189 = arith.mulf %184, %188 : vector<16x16xf32>
    %190 = vector.extract_strided_slice %13 {offsets = [0, 6, 0], sizes = [16, 1, 64], strides = [1, 1, 1]} : vector<16x8x64xf32> to vector<16x1x64xf32>
    %191 = vector.shape_cast %190 : vector<16x1x64xf32> to vector<16x64xf32>
    %cst_40 = arith.constant dense<0.000000e+00> : vector<16x64xf32>
    %192 = tpu.matmul %189, %0, %cst_40 {dimension_numbers = #tpu.dot_dimension_numbers<[1], [0], [0], [1], [0, 0, 1, 1], [], []>} : vector<16x16xf32>, vector<16x64xf32>, vector<16x64xf32> -> vector<16x64xf32>
    %193 = arith.addf %191, %192 : vector<16x64xf32>
    %194 = vector.extract_strided_slice %193 {offsets = [0, 0], sizes = [16, 16], strides = [1, 1]} : vector<16x64xf32> to vector<16x16xf32>
    %195 = arith.negf %194 : vector<16x16xf32>
    %196 = math.exp %195 : vector<16x16xf32>
    %cst_41 = arith.constant 1.000000e+00 : f32
    %197 = vector.broadcast %cst_41 : f32 to vector<16x16xf32>
    %198 = arith.addf %197, %196 : vector<16x16xf32>
    %199 = arith.divf %197, %198 : vector<16x16xf32>
    %200 = vector.extract_strided_slice %193 {offsets = [0, 16], sizes = [16, 16], strides = [1, 1]} : vector<16x64xf32> to vector<16x16xf32>
    %201 = arith.negf %200 : vector<16x16xf32>
    %202 = math.exp %201 : vector<16x16xf32>
    %cst_42 = arith.constant 1.000000e+00 : f32
    %203 = vector.broadcast %cst_42 : f32 to vector<16x16xf32>
    %204 = arith.addf %203, %202 : vector<16x16xf32>
    %205 = arith.divf %203, %204 : vector<16x16xf32>
    %206 = vector.extract_strided_slice %193 {offsets = [0, 32], sizes = [16, 16], strides = [1, 1]} : vector<16x64xf32> to vector<16x16xf32>
    %207 = math.tanh %206 : vector<16x16xf32>
    %208 = vector.extract_strided_slice %193 {offsets = [0, 48], sizes = [16, 16], strides = [1, 1]} : vector<16x64xf32> to vector<16x16xf32>
    %209 = arith.negf %208 : vector<16x16xf32>
    %210 = math.exp %209 : vector<16x16xf32>
    %cst_43 = arith.constant 1.000000e+00 : f32
    %211 = vector.broadcast %cst_43 : f32 to vector<16x16xf32>
    %212 = arith.addf %211, %210 : vector<16x16xf32>
    %213 = arith.divf %211, %212 : vector<16x16xf32>
    %214 = arith.mulf %205, %187 : vector<16x16xf32>
    %215 = arith.mulf %199, %207 : vector<16x16xf32>
    %216 = arith.addf %214, %215 : vector<16x16xf32>
    %217 = math.tanh %216 : vector<16x16xf32>
    %218 = arith.mulf %213, %217 : vector<16x16xf32>
    %219 = vector.extract_strided_slice %13 {offsets = [0, 7, 0], sizes = [16, 1, 64], strides = [1, 1, 1]} : vector<16x8x64xf32> to vector<16x1x64xf32>
    %220 = vector.shape_cast %219 : vector<16x1x64xf32> to vector<16x64xf32>
    %cst_44 = arith.constant dense<0.000000e+00> : vector<16x64xf32>
    %221 = tpu.matmul %218, %0, %cst_44 {dimension_numbers = #tpu.dot_dimension_numbers<[1], [0], [0], [1], [0, 0, 1, 1], [], []>} : vector<16x16xf32>, vector<16x64xf32>, vector<16x64xf32> -> vector<16x64xf32>
    %222 = arith.addf %220, %221 : vector<16x64xf32>
    %223 = vector.extract_strided_slice %222 {offsets = [0, 0], sizes = [16, 16], strides = [1, 1]} : vector<16x64xf32> to vector<16x16xf32>
    %224 = arith.negf %223 : vector<16x16xf32>
    %225 = math.exp %224 : vector<16x16xf32>
    %cst_45 = arith.constant 1.000000e+00 : f32
    %226 = vector.broadcast %cst_45 : f32 to vector<16x16xf32>
    %227 = arith.addf %226, %225 : vector<16x16xf32>
    %228 = arith.divf %226, %227 : vector<16x16xf32>
    %229 = vector.extract_strided_slice %222 {offsets = [0, 16], sizes = [16, 16], strides = [1, 1]} : vector<16x64xf32> to vector<16x16xf32>
    %230 = arith.negf %229 : vector<16x16xf32>
    %231 = math.exp %230 : vector<16x16xf32>
    %cst_46 = arith.constant 1.000000e+00 : f32
    %232 = vector.broadcast %cst_46 : f32 to vector<16x16xf32>
    %233 = arith.addf %232, %231 : vector<16x16xf32>
    %234 = arith.divf %232, %233 : vector<16x16xf32>
    %235 = vector.extract_strided_slice %222 {offsets = [0, 32], sizes = [16, 16], strides = [1, 1]} : vector<16x64xf32> to vector<16x16xf32>
    %236 = math.tanh %235 : vector<16x16xf32>
    %237 = vector.extract_strided_slice %222 {offsets = [0, 48], sizes = [16, 16], strides = [1, 1]} : vector<16x64xf32> to vector<16x16xf32>
    %238 = arith.negf %237 : vector<16x16xf32>
    %239 = math.exp %238 : vector<16x16xf32>
    %cst_47 = arith.constant 1.000000e+00 : f32
    %240 = vector.broadcast %cst_47 : f32 to vector<16x16xf32>
    %241 = arith.addf %240, %239 : vector<16x16xf32>
    %242 = arith.divf %240, %241 : vector<16x16xf32>
    %243 = arith.mulf %234, %216 : vector<16x16xf32>
    %244 = arith.mulf %228, %236 : vector<16x16xf32>
    %245 = arith.addf %243, %244 : vector<16x16xf32>
    %246 = math.tanh %245 : vector<16x16xf32>
    %247 = arith.mulf %242, %246 : vector<16x16xf32>
    %248 = tpu.concatenate %44, %73, %102, %131, %160, %189, %218, %247 in 1 : vector<16x16xf32>, vector<16x16xf32>, vector<16x16xf32>, vector<16x16xf32>, vector<16x16xf32>, vector<16x16xf32>, vector<16x16xf32>, vector<16x16xf32> -> vector<16x128xf32>
    %c0_48 = arith.constant 0 : index
    %c0_49 = arith.constant 0 : index
    %249 = vector.load %arg7[%c0_48, %c0_49] : memref<128x512xf32, #tpu.memory_space<vmem>>, vector<128x512xf32>
    %cst_50 = arith.constant dense<0.000000e+00> : vector<16x512xf32>
    %250 = tpu.matmul %248, %249, %cst_50 {dimension_numbers = #tpu.dot_dimension_numbers<[1], [0], [0], [1], [0, 0, 1, 1], [], []>} : vector<16x128xf32>, vector<128x512xf32>, vector<16x512xf32> -> vector<16x512xf32>
    %c0_51 = arith.constant 0 : index
    %c0_52 = arith.constant 0 : index
    %251 = vector.load %arg8[%c0_51, %c0_52] : memref<1x512xf32, #tpu.memory_space<vmem>>, vector<1x512xf32>
    %252 = vector.broadcast %251 : vector<1x512xf32> to vector<16x512xf32>
    %253 = arith.addf %250, %252 : vector<16x512xf32>
    %cst_53 = arith.constant 0.000000e+00 : f32
    %254 = vector.broadcast %cst_53 : f32 to vector<16x512xf32>
    %255 = arith.maximumf %253, %254 : vector<16x512xf32>
    %c0_54 = arith.constant 0 : index
    %c0_55 = arith.constant 0 : index
    %256 = vector.load %arg9[%c0_54, %c0_55] : memref<512x128xf32, #tpu.memory_space<vmem>>, vector<512x128xf32>
    %cst_56 = arith.constant dense<0.000000e+00> : vector<16x128xf32>
    %257 = tpu.matmul %255, %256, %cst_56 {dimension_numbers = #tpu.dot_dimension_numbers<[1], [0], [0], [1], [0, 0, 1, 1], [], []>} : vector<16x512xf32>, vector<512x128xf32>, vector<16x128xf32> -> vector<16x128xf32>
    %c0_57 = arith.constant 0 : index
    %c0_58 = arith.constant 0 : index
    %258 = vector.load %arg10[%c0_57, %c0_58] : memref<1x128xf32, #tpu.memory_space<vmem>>, vector<1x128xf32>
    %259 = vector.broadcast %258 : vector<1x128xf32> to vector<16x128xf32>
    %260 = arith.addf %257, %259 : vector<16x128xf32>
    %c0_59 = arith.constant 0 : index
    %c0_60 = arith.constant 0 : index
    %261 = vector.load %arg11[%c0_59, %c0_60] : memref<16x128xf32, #tpu.memory_space<vmem>>, vector<16x128xf32>
    tpu.vector_store %arg11[%c0_59, %c0_60], %260 {strides = array<i32>} : memref<16x128xf32, #tpu.memory_space<vmem>>, vector<16x128xf32>,
    return
  }
  func.func @transform_0(%arg0: i32) -> (i32, i32, i32) {
    %c0_i32 = arith.constant 0 : i32
    %c0_i32_0 = arith.constant 0 : i32
    %c0_i32_1 = arith.constant 0 : i32
    return %arg0, %c0_i32, %c0_i32_0 : i32, i32, i32
  }
  func.func @transform_1(%arg0: i32) -> (i32, i32, i32) {
    %c0_i32 = arith.constant 0 : i32
    %c0_i32_0 = arith.constant 0 : i32
    %c0_i32_1 = arith.constant 0 : i32
    return %arg0, %c0_i32, %c0_i32_0 : i32, i32, i32
  }
  func.func @transform_2(%arg0: i32) -> (i32, i32) {
    %c0_i32 = arith.constant 0 : i32
    %c0_i32_0 = arith.constant 0 : i32
    %c0_i32_1 = arith.constant 0 : i32
    return %c0_i32, %c0_i32_0 : i32, i32
  }
  func.func @transform_3(%arg0: i32) -> (i32, i32) {
    %c0_i32 = arith.constant 0 : i32
    %c0_i32_0 = arith.constant 0 : i32
    %c0_i32_1 = arith.constant 0 : i32
    return %c0_i32, %c0_i32_0 : i32, i32
  }
  func.func @transform_4(%arg0: i32) -> (i32, i32) {
    %c0_i32 = arith.constant 0 : i32
    %c0_i32_0 = arith.constant 0 : i32
    %c0_i32_1 = arith.constant 0 : i32
    return %c0_i32, %c0_i32_0 : i32, i32
  }
  func.func @transform_5(%arg0: i32) -> (i32, i32) {
    %c0_i32 = arith.constant 0 : i32
    %c0_i32_0 = arith.constant 0 : i32
    %c0_i32_1 = arith.constant 0 : i32
    return %c0_i32, %c0_i32_0 : i32, i32
  }
  func.func @transform_6(%arg0: i32) -> (i32, i32) {
    %c0_i32 = arith.constant 0 : i32
    %c0_i32_0 = arith.constant 0 : i32
    %c0_i32_1 = arith.constant 0 : i32
    return %c0_i32, %c0_i32_0 : i32, i32
  }
  func.func @transform_7(%arg0: i32) -> (i32, i32) {
    %c0_i32 = arith.constant 0 : i32
    %c0_i32_0 = arith.constant 0 : i32
    %c0_i32_1 = arith.constant 0 : i32
    return %c0_i32, %c0_i32_0 : i32, i32
  }
  func.func @transform_8(%arg0: i32) -> (i32, i32) {
    %c0_i32 = arith.constant 0 : i32
    %c0_i32_0 = arith.constant 0 : i32
    %c0_i32_1 = arith.constant 0 : i32
    return %c0_i32, %c0_i32_0 : i32, i32
  }
  func.func @transform_9(%arg0: i32) -> (i32, i32) {
    %c0_i32 = arith.constant 0 : i32
    %c0_i32_0 = arith.constant 0 : i32
    %c0_i32_1 = arith.constant 0 : i32
    return %c0_i32, %c0_i32_0 : i32, i32
  }
  func.func @transform_10(%arg0: i32) -> (i32, i32) {
    %c0_i32 = arith.constant 0 : i32
    %c0_i32_0 = arith.constant 0 : i32
    return %arg0, %c0_i32 : i32, i32
  }
}

</mosaic_0001>

<bundles_post_ra>
// kernel: concatenation_net_forward.1
= control target key start
LH: loop header
LB: loop body
LE: loop exit
PB: predicated region body
PF: predicated region fallthrough
CT: control target
= control target key end

     0   :  { %vm75_vm0 = vcmask 130048   ;;  %v10659_v3 = vmov 0.0   ;;  %vm269_vm1 = vcmask 261120   ;;  %s7506_s23 = smov 32   ;;  %vm1013_vm2 = vcmask 1041409   ;;  %s7507_s24 = smov 80   ;;  %s10648_s3 = inlined_call_operand.vmem [shape: f32[16,64], index: 3, kind: input, shape index: {}]   ;;  %s10649_s1 = inlined_call_operand.vmem [shape: f32[16,8,16], index: 1, kind: input, shape index: {}]   ;;  %s10650_s2 = inlined_call_operand.vmem [shape: f32[32,64], index: 2, kind: input, shape index: {}]   ;;  %s10651_s4 = inlined_call_operand.vmem [shape: f32[16,64], index: 4, kind: input, shape index: {}]   ;;  %s10652_s0 = inlined_call_operand.vmem [shape: f32[16,8,32], index: 0, kind: input, shape index: {}]   ;;  %s10653_s5 = inlined_call_operand.vmem [shape: f32[1,64], index: 5, kind: input, shape index: {}]   ;;  %s10654_s6 = inlined_call_operand.vmem [shape: f32[128,512], index: 6, kind: input, shape index: {}]   ;;  %s10655_s8 = inlined_call_operand.vmem [shape: f32[512,128], index: 8, kind: input, shape index: {}]   ;;  %s10656_s7 = inlined_call_operand.vmem [shape: f32[1,512], index: 7, kind: input, shape index: {}]   ;;  %s10657_s9 = inlined_call_operand.vmem [shape: f32[1,128], index: 9, kind: input, shape index: {}]   ;;  %s10658_s10 = inlined_call_operand.vmem [shape: f32[16,128], index: 10, kind: output, shape index: {}]  }
   0x1   :  { %v73_v0 = vld [vmem:[%s10648_s3] sm:$0xff]  ;;  %v74_v1 = vld [vmem:[%s10648_s3 + $0x8] sm:$0xff]  ;;  %6216 = vmatprep.mubr.f32.mxu1 %v10659_v3  ;;  %v71_v9 = vld [vmem:[%s10650_s2 + $0x10] sm:$0xff]  ;;  %vm1016_vm3 = vcmask 1042434   ;;  %vm1019_vm4 = vcmask 1043459   ;;  %vm1022_vm5 = vcmask 1044484  }
   0x2   :  { %v53_v2 = vld [vmem:[%s10649_s1] sm:$0xff]  ;;  %v6268_v4 = vpack.c.bf16 %v74_v1, %v73_v0  ;;  %v70_v6 = vld [vmem:[%s10650_s2 + $0x8] sm:$0xff]  ;;  %v55_v10 = vld [vmem:[%s10649_s1 + $0x10] sm:$0xff]  ;;  %vm1025_vm6 = vcmask 1045509   ;;  %vm1028_vm7 = vcmask 1046534   ;;  %vm1031_vm8 = vcmask 1047559  }
   0x3   :  { %6156 = vmatprep.mubr.msk.f32.mxu0 %vm75_vm0, %v53_v2  ;;  %v69_v5 = vld [vmem:[%s10650_s2] sm:$0xff]  ;;  %v54_v8 = vld [vmem:[%s10649_s1 + $0x8] sm:$0xff]  ;;  %v72_v11 = vld [vmem:[%s10650_s2 + $0x18] sm:$0xff]  ;;  %s7508_s25 = smov 112   ;;  %s7510_s16 = smov 64   ;;  %vm5340_vm9 = vcmask 392192  }
   0x4   :  { %v6272_v7 = vpack.c.bf16 %v70_v6, %v69_v5  ;;  %6269 = vmatprep.subr.bf16.mxu0 %v6268_v4  ;;  %v6276_v12 = vpack.c.bf16 %v72_v11, %v71_v9  ;;  %v35_v13 = vld [vmem:[%s10651_s4] sm:$0xff]  ;;  %v36_v14 = vld [vmem:[%s10651_s4 + $0x8] sm:$0xff]  ;;  %v56_v15 = vld [vmem:[%s10649_s1 + $0x18] sm:$0xff]  ;;  %vm5343_vm10 = vcmask 523264   ;;  %vm5346_vm11 = vcmask 654336  }
   0x5   :  { %6271 = vmatpush3.bf16.msra.mxu0 %v6268_v4  ;;  %v7606_v16 = vpack.c.bf16 %v36_v14, %v35_v13  ;;  %v57_v17 = vld [vmem:[%s10649_s1 + $0x20] sm:$0xff]  ;;  %v58_v18 = vld [vmem:[%s10649_s1 + $0x28] sm:$0xff]  ;;  %v59_v19 = vld [vmem:[%s10649_s1 + $0x30] sm:$0xff]  ;;  %vm5349_vm12 = vcmask 785408   ;;  %vm5352_vm13 = vcmask 916480  }
   0x6   :  { %6273 = vmatprep.subr.bf16.mxu0 %v6272_v7  ;;  %v60_v20 = vld [vmem:[%s10649_s1 + $0x38] sm:$0xff]  ;;  %v61_v21 = vld [vmem:[%s10649_s1 + $0x40] sm:$0xff]  ;;  %v62_v22 = vld [vmem:[%s10649_s1 + $0x48] sm:$0xff] }
   0x7   :  { %6281 = vmatprep.subr.bf16.mxu1 %v7606_v16  ;;  %v63_v23 = vld [vmem:[%s10649_s1 + $0x50] sm:$0xff]  ;;  %v64_v24 = vld [vmem:[%s10649_s1 + $0x58] sm:$0xff]  ;;  %v65_v25 = vld [vmem:[%s10649_s1 + $0x60] sm:$0xff] }
   0x8   :  { %6157 = vmatmul.mubr.msk.f32.vlgmr.msra.gmra.mrb[0].mxu0 %vm75_vm0, %v54_v8  ;;  %6283 = vmatpush3.bf16.msra.mxu1 %v7606_v16  ;;  %v66_v26 = vld [vmem:[%s10649_s1 + $0x68] sm:$0xff]  ;;  %v67_v27 = vld [vmem:[%s10649_s1 + $0x70] sm:$0xff]  ;;  %v68_v28 = vld [vmem:[%s10649_s1 + $0x78] sm:$0xff] }
   0x9   :  { %6275 = vmatpush3.bf16.msra.mxu0 %v6272_v7  ;;  %6159 = vmatprep.mubr.msk.f32.mxu0 %vm75_vm0, %v55_v10  ;;  %v37_v29 = vld [vmem:[%s10652_s0] sm:$0xff]  ;;  %v38_v30 = vld [vmem:[%s10652_s0 + $0x8] sm:$0xff]  ;;  %v39_v31 = vld [vmem:[%s10652_s0 + $0x10] sm:$0xff] }
   0xa   :  { %6277 = vmatprep.subr.bf16.mxu0 %v6276_v12  ;;  %6285 = vmatprep.subr.bf16.mxu1 %v7606_v16  ;;  %v40_v32 = vld [vmem:[%s10652_s0 + $0x18] sm:$0xff]  ;;  %v41_v33 = vld [vmem:[%s10652_s0 + $0x20] sm:$0xff]  ;;  %v42_v34 = vld [vmem:[%s10652_s0 + $0x28] sm:$0xff] }
   0xb   :  { %6217 = vmatmul.mubr.f32.vlgmr.msra.gmra.mrb[0].mxu1 %v10659_v3  ;;  %v43_v35 = vld [vmem:[%s10652_s0 + $0x30] sm:$0xff]  ;;  %v44_v36 = vld [vmem:[%s10652_s0 + $0x38] sm:$0xff]  ;;  %v45_v37 = vld [vmem:[%s10652_s0 + $0x40] sm:$0xff] }
   0xc   :  { %6160 = vmatmul.mubr.msk.f32.gmra.mrb[2].mxu0 %vm75_vm0, %v56_v15  ;;  %6287 = vmatpush3.bf16.msra.mxu1 %v7606_v16  ;;  %v46_v38 = vld [vmem:[%s10652_s0 + $0x48] sm:$0xff]  ;;  %v47_v39 = vld [vmem:[%s10652_s0 + $0x50] sm:$0xff]  ;;  %v48_v40 = vld [vmem:[%s10652_s0 + $0x58] sm:$0xff] }
   0xd   :  { %6162 = vmatprep.mubr.msk.f32.mxu0 %vm75_vm0, %v57_v17  ;;  %6279 = vmatpush3.bf16.msra.mxu0 %v6276_v12  ;;  %v49_v41 = vld [vmem:[%s10652_s0 + $0x60] sm:$0xff]  ;;  %v50_v42 = vld [vmem:[%s10652_s0 + $0x68] sm:$0xff]  ;;  %v51_v43 = vld [vmem:[%s10652_s0 + $0x70] sm:$0xff] }
   0xe   :  { %6289 = vmatprep.subr.bf16.mxu1 %v7606_v16  ;;  %v52_v44 = vld [vmem:[%s10652_s0 + $0x78] sm:$0xff]  ;;  %v7735_v47 = vld [vmem:[%s10653_s5] ss:$0 sm:$0xff]  ;;  %s7504_s0 = smov 96   ;;  %s7505_s5 = smov 16  }
  0x10   :  { %6163 = vmatmul.mubr.msk.f32.gmra.mrb[4].mxu0 %vm75_vm0, %v58_v18 }
  0x11   :  { %6165 = vmatprep.mubr.msk.f32.mxu0 %vm75_vm0, %v59_v19 }
  0x14   :  { %6166 = vmatmul.mubr.msk.f32.gmra.mrb[6].mxu0 %vm75_vm0, %v60_v20 }
  0x15   :  { %6168 = vmatprep.mubr.msk.f32.mxu0 %vm75_vm0, %v61_v21 }
  0x18   :  { %6169 = vmatmul.mubr.msk.f32.gmra.mrb[8].mxu0 %vm75_vm0, %v62_v22 }
  0x19   :  { %6171 = vmatprep.mubr.msk.f32.mxu0 %vm75_vm0, %v63_v23 }
  0x1c   :  { %6172 = vmatmul.mubr.msk.f32.gmra.mrb[10].mxu0 %vm75_vm0, %v64_v24 }
  0x1d   :  { %6174 = vmatprep.mubr.msk.f32.mxu0 %vm75_vm0, %v65_v25 }
  0x20   :  { %6175 = vmatmul.mubr.msk.f32.gmra.mrb[12].mxu0 %vm75_vm0, %v66_v26 }
  0x21   :  { %6177 = vmatprep.mubr.msk.f32.mxu0 %vm75_vm0, %v67_v27 }
  0x24   :  { %6178 = vmatmul.mubr.msk.f32.gmra.mrb[14].mxu0 %vm75_vm0, %v68_v28 }
  0x25   :  { %6188 = vmatprep.mubr.msk.f32.mxu0 %vm269_vm1, %v37_v29 }
  0x28   :  { %6189 = vmatmul.mubr.msk.f32.vlgmr.msra.gmra.mrb[0].mxu0 %vm269_vm1, %v38_v30 }
  0x29   :  { %6191 = vmatprep.mubr.msk.f32.mxu0 %vm269_vm1, %v39_v31 }
  0x2c   :  { %6192 = vmatmul.mubr.msk.f32.gmra.mrb[2].mxu0 %vm269_vm1, %v40_v32 }
  0x2d   :  { %6194 = vmatprep.mubr.msk.f32.mxu0 %vm269_vm1, %v41_v33 }
  0x30   :  { %6195 = vmatmul.mubr.msk.f32.gmra.mrb[4].mxu0 %vm269_vm1, %v42_v34 }
  0x31   :  { %6197 = vmatprep.mubr.msk.f32.mxu0 %vm269_vm1, %v43_v35 }
  0x34   :  { %6198 = vmatmul.mubr.msk.f32.gmra.mrb[6].mxu0 %vm269_vm1, %v44_v36 }
  0x35   :  { %6200 = vmatprep.mubr.msk.f32.mxu0 %vm269_vm1, %v45_v37 }
  0x38   :  { %6201 = vmatmul.mubr.msk.f32.gmra.mrb[8].mxu0 %vm269_vm1, %v46_v38 }
  0x39   :  { %6203 = vmatprep.mubr.msk.f32.mxu0 %vm269_vm1, %v47_v39 }
  0x3c   :  { %6204 = vmatmul.mubr.msk.f32.gmra.mrb[10].mxu0 %vm269_vm1, %v48_v40 }
  0x3d   :  { %6206 = vmatprep.mubr.msk.f32.mxu0 %vm269_vm1, %v49_v41 }
  0x40   :  { %6207 = vmatmul.mubr.msk.f32.gmra.mrb[12].mxu0 %vm269_vm1, %v50_v42 }
  0x41   :  { %6209 = vmatprep.mubr.msk.f32.mxu0 %vm269_vm1, %v51_v43 }
  0x44   :  { %6210 = vmatmul.mubr.msk.f32.gmra.mrb[14].mxu0 %vm269_vm1, %v52_v44 }
  0x45   :  { %5582 = vmatprep.mubr.f32.mxu0 %v10659_v3 }
  0xde   :  { %v7728_v45 = vpop.f32.mrb[0].mxu1 }
  0xdf   :  { %v7730_v46 = vpop.f32.mrb[1].mxu1  ;;  %v573_v17 = vrot.slane %v7728_v45, 1  ;;  %v575_v24 = vrot.slane %v7728_v45, 3  ;;  %v574_v33 = vrot.slane %v7728_v45, 2  ;;  %v577_v34 = vrot.slane %v7728_v45, 5 }
  0xe0   :  { %v566_v48 = vrot.slane %v7730_v46, 1  ;;  %v568_v56 = vrot.slane %v7730_v46, 3  ;;  %v567_v59 = vrot.slane %v7730_v46, 2  ;;  %v570_v0 = vrot.slane %v7730_v46, 5 }
  0xe1   :  { %v569_v5 = vrot.slane %v7730_v46, 4  ;;  %v571_v10 = vrot.slane %v7730_v46, 6  ;;  %v576_v37 = vrot.slane %v7728_v45, 4 }
  0xfb   :  { %v6190_v49 = vpop.f32.mrb[0].mxu0 }
  0xfc   :  { %v7739_v50 = vadd.f32 %v6190_v49, %v7735_v47  ;;  %v384_v51 = vpop.f32.mrb[1].mxu0 }
  0xfd   :  { %v7742_v52 = vadd.f32 %v7735_v47, %v384_v51 }
  0xfe   :  { %v7745_v53 = vadd.f32 %v566_v48, %v7739_v50  ;;  %v572_v48 = vrot.slane %v7730_v46, 7 }
  0xff   :  { %v6193_v54 = vpop.f32.mrb[2].mxu0  ;;  %v7749_v55 = vadd.f32 %v7730_v46, %v7742_v52 }
 0x100   :  { %v7753_v57 = vadd.f32 %v6193_v54, %v7735_v47  ;;  %v394_v58 = vpop.f32.mrb[3].mxu0  ;;  %6479 = vtanh.f32 %v7745_v53 }
 0x101   :  { %v7758_v60 = vadd.f32 %v7735_v47, %v394_v58  ;;  %6481 = vtanh.f32 %v7749_v55 }
 0x102   :  { %v7762_v61 = vadd.f32 %v568_v56, %v7753_v57  ;;  %v578_v56 = vrot.slane %v7728_v45, 6 }
 0x103   :  { %v6196_v62 = vpop.f32.mrb[4].mxu0  ;;  %v7765_v63 = vadd.f32 %v567_v59, %v7758_v60 }
 0x104   :  { %v7769_v1 = vadd.f32 %v6196_v62, %v7735_v47  ;;  %v404_v2 = vpop.f32.mrb[5].mxu0  ;;  %6483 = vtanh.f32 %v7762_v61  ;;  %v579_v62 = vrot.slane %v7728_v45, 7 }
 0x105   :  { %v7773_v4 = vadd.f32 %v7735_v47, %v404_v2  ;;  %6485 = vtanh.f32 %v7765_v63 }
 0x106   :  { %v7777_v6 = vadd.f32 %v570_v0, %v7769_v1 }
 0x107   :  { %v6199_v7 = vpop.f32.mrb[6].mxu0  ;;  %v7782_v9 = vadd.f32 %v569_v5, %v7773_v4 }
 0x108   :  { %v414_v8 = vpop.f32.mrb[7].mxu0  ;;  %6487 = vtanh.f32 %v7777_v6  ;;  %v7834_v40 = vadd.f32 %v6199_v7, %v7735_v47 }
 0x109   :  { %v7786_v11 = vadd.f32 %v7735_v47, %v414_v8  ;;  %6489 = vtanh.f32 %v7782_v9 }
 0x10a   :  { %v6480_v12 = vpop.eup %6479  ;;  %v7859_v46 = vadd.f32 %v572_v48, %v7834_v40 }
 0x10b   :  { %v6482_v13 = vpop.eup %6481  ;;  %758 = vrot.lane.b32.xlu0 %v6480_v12, %s7504_s0  ;;  %v6202_v14 = vpop.f32.mrb[8].mxu0  ;;  %v7790_v15 = vadd.f32 %v571_v10, %v7786_v11 }
 0x10c   :  { %v7794_v18 = vadd.f32 %v6202_v14, %v7735_v47  ;;  %756 = vrot.lane.b32.xlu1 %v6482_v13, %s7504_s0  ;;  %v424_v19 = vpop.f32.mrb[9].mxu0  ;;  %v5864_v14 = vmul.f32 -1.442695, %v7745_v53 }
 0x10d   :  { %6491 = vtanh.f32 %v7790_v15  ;;  %v7800_v21 = vadd.f32 %v7735_v47, %v424_v19  ;;  %v5866_v19 = vmul.f32 -1.442695, %v7762_v61  ;;  %v5869_v53 = vmul.f32 -1.442695, %v7790_v15 }
 0x10e   :  { %v6484_v20 = vpop.eup %6483  ;;  %v7803_v22 = vadd.f32 %v573_v17, %v7794_v18  ;;  %v5863_v17 = vmul.f32 -1.442695, %v7749_v55 }
 0x10f   :  { %762 = vrot.lane.b32.xlu0 %v6484_v20, %s7504_s0  ;;  %v6205_v23 = vpop.f32.mrb[10].mxu0  ;;  %v6486_v27 = vpop.eup %6485  ;;  %v7819_v31 = vadd.f32 %v7728_v45, %v7800_v21  ;;  %v5865_v20 = vmul.f32 -1.442695, %v7765_v63 }
 0x110   :  { %v7808_v25 = vadd.f32 %v6205_v23, %v7735_v47  ;;  %v434_v26 = vpop.f32.mrb[11].mxu0  ;;  %6493 = vtanh.f32 %v7803_v22  ;;  %v5868_v23 = vmul.f32 -1.442695, %v7777_v6 }
 0x111   :  { %v7811_v29 = vadd.f32 %v7735_v47, %v434_v26  ;;  %v5867_v26 = vmul.f32 -1.442695, %v7782_v9  ;;  %v5871_v9 = vmul.f32 -1.442695, %v7819_v31 }
 0x112   :  { %v6488_v28 = vpop.eup %6487  ;;  %v7815_v30 = vadd.f32 %v575_v24, %v7808_v25 }
 0x113   :  { %760 = vrot.lane.b32.xlu0 %v6486_v27, %s7504_s0  ;;  %766 = vrot.lane.b32.xlu1 %v6488_v28, %s7504_s0  ;;  %v6208_v32 = vpop.f32.mrb[12].mxu0  ;;  %v6490_v39 = vpop.eup %6489  ;;  %v7841_v42 = vadd.f32 %v574_v33, %v7811_v29  ;;  %v5872_v33 = vmul.f32 -1.442695, %v7803_v22 }
 0x114   :  { %v7826_v35 = vadd.f32 %v6208_v32, %v7735_v47  ;;  %v444_v36 = vpop.f32.mrb[13].mxu0  ;;  %6495 = vtanh.f32 %v7815_v30  ;;  %v5874_v61 = vmul.f32 -1.442695, %v7815_v30 }
 0x115   :  { %v7831_v38 = vadd.f32 %v7735_v47, %v444_v36  ;;  %6497 = vtanh.f32 %v7819_v31  ;;  %v5873_v22 = vmul.f32 -1.442695, %v7841_v42  ;;  %v5870_v31 = vmul.f32 -1.442695, %v7859_v46 }
 0x116   :  { %v7838_v41 = vadd.f32 %v577_v34, %v7826_v35 }
 0x117   :  { %v6492_v43 = vpop.eup %6491  ;;  %764 = vrot.lane.b32.xlu0 %v6490_v39, %s7504_s0  ;;  %v6211_v44 = vpop.f32.mrb[14].mxu0  ;;  %v7848_v51 = vadd.f32 %v576_v37, %v7831_v38 }
 0x118   :  { %768 = vrot.lane.b32.xlu1 %v6492_v43, %s7504_s0  ;;  %v454_v49 = vpop.f32.mrb[15].mxu0  ;;  %6499 = vtanh.f32 %v7838_v41  ;;  %v7855_v58 = vadd.f32 %v6211_v44, %v7735_v47  ;;  %v5876_v34 = vmul.f32 -1.442695, %v7838_v41 }
 0x119   :  { %v7851_v54 = vadd.f32 %v7735_v47, %v454_v49  ;;  %6501 = vtanh.f32 %v7841_v42  ;;  %v5875_v39 = vmul.f32 -1.442695, %v7848_v51 }
 0x11a   :  { %v6494_v59 = vpop.eup %6493  ;;  %6503 = vtanh.f32 %v7848_v51  ;;  %v7869_v47 = vadd.f32 %v579_v62, %v7855_v58 }
 0x11b   :  { %v7864_v0 = vadd.f32 %v578_v56, %v7851_v54  ;;  %6505 = vtanh.f32 %v7859_v46 }
 0x11c   :  { %774 = vrot.lane.b32.xlu1 %v6494_v59, %s7504_s0 }
 0x11d   :  { %6507 = vtanh.f32 %v7864_v0  ;;  %v5877_v59 = vmul.f32 -1.442695, %v7864_v0 }
 0x11e   :  { %v6496_v2 = vpop.eup %6495  ;;  %6509 = vtanh.f32 %v7869_v47 }
 0x11f   :  { %778 = vrot.lane.b32.xlu0 %v6496_v2, %s7504_s0  ;;  %v6498_v5 = vpop.eup %6497  ;;  %6511 = vpow2.f32 %v5864_v14 }
 0x120   :  { %772 = vrot.lane.b32.xlu1 %v6498_v5, %s7504_s0  ;;  %6513 = vpow2.f32 %v5863_v17 }
 0x121   :  { %6515 = vpow2.f32 %v5866_v19 }
 0x122   :  { %v6500_v45 = vpop.eup %6499  ;;  %6517 = vpow2.f32 %v5865_v20 }
 0x123   :  { %782 = vrot.lane.b32.xlu0 %v6500_v45, %s7504_s0  ;;  %v6502_v7 = vpop.eup %6501  ;;  %6519 = vpow2.f32 %v5868_v23  ;;  %v5878_v45 = vmul.f32 -1.442695, %v7869_v47 }
 0x124   :  { %776 = vrot.lane.b32.xlu1 %v6502_v7, %s7504_s0  ;;  %v6504_v8 = vpop.eup %6503  ;;  %6521 = vpow2.f32 %v5867_v26 }
 0x125   :  { %v6506_v10 = vpop.eup %6505 }
 0x127   :  { %780 = vrot.lane.b32.xlu0 %v6504_v8, %s7504_s0  ;;  %v6508_v12 = vpop.eup %6507 }
 0x128   :  { %770 = vrot.lane.b32.xlu1 %v6506_v10, %s7504_s0  ;;  %v6510_v13 = vpop.eup %6509 }
 0x129   :  { %v6512_v24 = vpop.eup %6511 }
 0x12a   :  { %v6514_v27 = vpop.eup %6513  ;;  %v661_v28 = vadd.f32 1.0, %v6512_v24 }
 0x12b   :  { %784 = vrot.lane.b32.xlu0 %v6508_v12, %s7504_s0  ;;  %v660_v55 = vadd.f32 1.0, %v6514_v27  ;;  %v6516_v32 = vpop.eup %6515 }
 0x12c   :  { %786 = vrot.lane.b32.xlu1 %v6510_v13, %s7504_s0  ;;  %6523 = vrcp.f32 %v661_v28  ;;  %v663_v63 = vadd.f32 1.0, %v6516_v32  ;;  %v6518_v6 = vpop.eup %6517 }
 0x12d   :  { %6525 = vpow2.f32 %v5869_v53  ;;  %v6520_v36 = vpop.eup %6519  ;;  %v662_v15 = vadd.f32 1.0, %v6518_v6 }
 0x12e   :  { %6527 = vrcp.f32 %v660_v55  ;;  %v6522_v37 = vpop.eup %6521  ;;  %v665_v30 = vadd.f32 1.0, %v6520_v36 }
 0x12f   :  { %6529 = vpow2.f32 %v5872_v33  ;;  %v664_v44 = vadd.f32 1.0, %v6522_v37 }
 0x130   :  { %6531 = vpow2.f32 %v5874_v61 }
 0x131   :  { %6533 = vrcp.f32 %v663_v63 }
 0x132   :  { %6535 = vpow2.f32 %v5871_v9 }
 0x133   :  { %6537 = vpow2.f32 %v5876_v34 }
 0x134   :  { %6539 = vrcp.f32 %v662_v15 }
 0x135   :  { %6541 = vpow2.f32 %v5873_v22 }
 0x136   :  { %v7894_v43 = vpop.eup %6523  ;;  %6543 = vpow2.f32 %v5875_v39 }
 0x137   :  { %v6526_v48 = vpop.eup %6525  ;;  %6545 = vrcp.f32 %v665_v30 }
 0x138   :  { %v7897_v41 = vpop.eup %6527  ;;  %6547 = vrcp.f32 %v664_v44  ;;  %v666_v2 = vadd.f32 1.0, %v6526_v48 }
 0x139   :  { %v6530_v56 = vpop.eup %6529  ;;  %6549 = vpow2.f32 %v5870_v31 }
 0x13a   :  { %v6532_v5 = vpop.eup %6531  ;;  %v669_v0 = vadd.f32 1.0, %v6530_v56  ;;  %6551 = vpow2.f32 %v5877_v59 }
 0x13b   :  { %v7904_v46 = vpop.eup %6533  ;;  %6553 = vrcp.f32 %v666_v2  ;;  %v671_v12 = vadd.f32 1.0, %v6532_v5 }
 0x13c   :  { %v6536_v8 = vpop.eup %6535  ;;  %6555 = vpow2.f32 %v5878_v45 }
 0x13d   :  { %v6538_v13 = vpop.eup %6537  ;;  %6557 = vrcp.f32 %v669_v0  ;;  %v668_v19 = vadd.f32 1.0, %v6536_v8 }
 0x13e   :  { %v7909_v47 = vpop.eup %6539  ;;  %6559 = vrcp.f32 %v671_v12  ;;  %v673_v26 = vadd.f32 1.0, %v6538_v13 }
 0x13f   :  { %v6542_v20 = vpop.eup %6541  ;;  %6561 = vrcp.f32 %v668_v19 }
 0x140   :  { %v6544_v24 = vpop.eup %6543  ;;  %v670_v55 = vadd.f32 1.0, %v6542_v20  ;;  %6563 = vrcp.f32 %v673_v26 }
 0x141   :  { %v7912_v27 = vpop.eup %6545  ;;  %v672_v6 = vadd.f32 1.0, %v6544_v24 }
 0x142   :  { %v7915_v28 = vpop.eup %6547  ;;  %6565 = vrcp.f32 %v670_v55  ;;  %v725_v55 = vmul.f32 0.0, %v7894_v43 }
 0x143   :  { %v6550_v32 = vpop.eup %6549  ;;  %6567 = vrcp.f32 %v672_v6 }
 0x144   :  { %v6552_v9 = vpop.eup %6551  ;;  %v667_v36 = vadd.f32 1.0, %v6550_v32 }
 0x145   :  { %v7921_v34 = vpop.eup %6553  ;;  %v674_v30 = vadd.f32 1.0, %v6552_v9  ;;  %v727_v9 = vmul.f32 0.0, %v7904_v46 }
 0x146   :  { %v6556_v15 = vpop.eup %6555  ;;  %6569 = vrcp.f32 %v667_v36 }
 0x147   :  { %v7924_v22 = vpop.eup %6557  ;;  %6571 = vrcp.f32 %v674_v30 }
 0x148   :  { %v7928_v48 = vpop.eup %6559 }
 0x149   :  { %v7932_v59 = vpop.eup %6561 }
 0x17d   :  { %v759_v49 = vpop.permute.xlu0 %758 }
 0x17e   :  { %v805_v42 = vmul.f32 %v7894_v43, %v759_v49  ;;  %v757_v51 = vpop.permute.xlu1 %756  ;;  %v675_v49 = vadd.f32 1.0, %v6556_v15 }
 0x17f   :  { %v804_v62 = vmul.f32 %v7897_v41, %v757_v51 }
 0x180   :  { %838 = vrot.lane.b32.xlu0 %v805_v42, %s7505_s5  ;;  %6573 = vrcp.f32 %v675_v49 }
 0x181   :  { %v763_v7 = vpop.permute.xlu0 %762  ;;  %836 = vrot.lane.b32.xlu1 %v804_v62, %s7505_s5  ;;  %v7935_v62 = vpop.eup %6563 }
 0x182   :  { %v807_v10 = vmul.f32 %v7904_v46, %v763_v7  ;;  %v7940_v45 = vpop.eup %6565 }
 0x183   :  { %v7943_v8 = vpop.eup %6567 }
 0x184   :  { %842 = vrot.lane.b32.xlu0 %v807_v10, %s7505_s5  ;;  %v7948_v13 = vpop.eup %6569 }
 0x185   :  { %v761_v14 = vpop.permute.xlu0 %760  ;;  %v767_v17 = vpop.permute.xlu1 %766 }
 0x186   :  { %v806_v23 = vmul.f32 %v7909_v47, %v761_v14  ;;  %v809_v33 = vmul.f32 %v7912_v27, %v767_v17  ;;  %v7951_v19 = vpop.eup %6571 }
 0x188   :  { %840 = vrot.lane.b32.xlu1 %v806_v23, %s7505_s5 }
 0x189   :  { %v765_v53 = vpop.permute.xlu0 %764 }
 0x18a   :  { %v808_v61 = vmul.f32 %v7915_v28, %v765_v53  ;;  %v769_v63 = vpop.permute.xlu1 %768  ;;  %v7956_v24 = vpop.eup %6573 }
 0x18b   :  { %v810_v37 = vmul.f32 %v7921_v34, %v769_v63 }
 0x18c   :  { %846 = vrot.lane.b32.xlu1 %v809_v33, %s7505_s5  ;;  %844 = vrot.lane.b32.xlu0 %v808_v61, %s7505_s5  ;;  %v724_v33 = vmul.f32 0.0, %v7897_v41 }
 0x18e   :  { %v775_v39 = vpop.permute.xlu1 %774 }
 0x18f   :  { %v813_v44 = vmul.f32 %v7924_v22, %v775_v39 }
 0x190   :  { %848 = vrot.lane.b32.xlu1 %v810_v37, %s7505_s5  ;;  %v726_v37 = vmul.f32 0.0, %v7909_v47 }
 0x191   :  { %v779_v31 = vpop.permute.xlu0 %778  ;;  %854 = vrot.lane.b32.xlu0 %v813_v44, %s7505_s5  ;;  %v729_v44 = vmul.f32 0.0, %v7912_v27 }
 0x192   :  { %v815_v56 = vmul.f32 %v7928_v48, %v779_v31  ;;  %v773_v42 = vpop.permute.xlu1 %772  ;;  %v728_v31 = vmul.f32 0.0, %v7915_v28 }
 0x193   :  { %v812_v51 = vmul.f32 %v7932_v59, %v773_v42 }
 0x195   :  { %v783_v2 = vpop.permute.xlu0 %782  ;;  %852 = vrot.lane.b32.xlu1 %v812_v51, %s7505_s5  ;;  %858 = vrot.lane.b32.xlu0 %v815_v56, %s7505_s5 }
 0x196   :  { %v817_v5 = vmul.f32 %v7935_v62, %v783_v2  ;;  %v777_v7 = vpop.permute.xlu1 %776 }
 0x197   :  { %v814_v0 = vmul.f32 %v7940_v45, %v777_v7  ;;  %v730_v7 = vmul.f32 0.0, %v7921_v34 }
 0x199   :  { %v781_v10 = vpop.permute.xlu0 %780  ;;  %856 = vrot.lane.b32.xlu1 %v814_v0, %s7505_s5  ;;  %862 = vrot.lane.b32.xlu0 %v817_v5, %s7505_s5 }
 0x19a   :  { %v816_v12 = vmul.f32 %v7943_v8, %v781_v10  ;;  %v771_v14 = vpop.permute.xlu1 %770 }
 0x19b   :  { %v811_v17 = vmul.f32 %v7948_v13, %v771_v14  ;;  %v733_v14 = vmul.f32 0.0, %v7924_v22 }
 0x19d   :  { %v785_v20 = vpop.permute.xlu0 %784  ;;  %850 = vrot.lane.b32.xlu1 %v811_v17, %s7505_s5  ;;  %860 = vrot.lane.b32.xlu0 %v816_v12, %s7505_s5 }
 0x19e   :  { %v818_v23 = vmul.f32 %v7951_v19, %v785_v20  ;;  %v787_v26 = vpop.permute.xlu1 %786 }
 0x19f   :  { %v819_v53 = vmul.f32 %v7956_v24, %v787_v26  ;;  %v732_v26 = vmul.f32 0.0, %v7932_v59 }
 0x1a1   :  { %866 = vrot.lane.b32.xlu1 %v819_v53, %s7505_s5  ;;  %864 = vrot.lane.b32.xlu0 %v818_v23, %s7505_s5  ;;  %v735_v53 = vmul.f32 0.0, %v7928_v48 }
 0x1f2   :  { %v839_v32 = vpop.permute.xlu0 %838 }
 0x1f3   :  { %v7963_v61 = vadd.f32 %v839_v32, %v725_v55  ;;  %v837_v63 = vpop.permute.xlu1 %836 }
 0x1f4   :  { %v7965_v6 = vadd.f32 %v837_v63, %v724_v33 }
 0x1f5   :  { %6575 = vtanh.f32 %v7963_v61 }
 0x1f6   :  { %6577 = vtanh.f32 %v7965_v6  ;;  %v843_v36 = vpop.permute.xlu0 %842 }
 0x1f7   :  { %v7970_v15 = vadd.f32 %v843_v36, %v727_v9  ;;  %v734_v36 = vmul.f32 0.0, %v7940_v45 }
 0x1f9   :  { %6579 = vtanh.f32 %v7970_v15 }
 0x1fa   :  { %v841_v39 = vpop.permute.xlu1 %840 }
 0x1fb   :  { %v7974_v30 = vadd.f32 %v841_v39, %v726_v37  ;;  %v737_v37 = vmul.f32 0.0, %v7935_v62 }
 0x1fd   :  { %6581 = vtanh.f32 %v7974_v30 }
 0x1fe   :  { %v847_v49 = vpop.permute.xlu1 %846  ;;  %v845_v56 = vpop.permute.xlu0 %844 }
 0x1ff   :  { %v6576_v42 = vpop.eup %6575  ;;  %v7979_v51 = vadd.f32 %v847_v49, %v729_v44  ;;  %v7981_v2 = vadd.f32 %v845_v56, %v728_v31 }
 0x200   :  { %v6578_v5 = vpop.eup %6577  ;;  %934 = vrot.lane.b32.xlu0 %v6576_v42, %s7506_s23 }
 0x201   :  { %6583 = vtanh.f32 %v7979_v51  ;;  %932 = vrot.lane.b32.xlu1 %v6578_v5, %s7506_s23  ;;  %v731_v5 = vmul.f32 0.0, %v7948_v13 }
 0x202   :  { %6585 = vtanh.f32 %v7981_v2  ;;  %v849_v0 = vpop.permute.xlu1 %848 }
 0x203   :  { %v6580_v10 = vpop.eup %6579  ;;  %v7988_v12 = vadd.f32 %v849_v0, %v730_v7  ;;  %v855_v17 = vpop.permute.xlu0 %854  ;;  %v736_v7 = vmul.f32 0.0, %v7943_v8 }
 0x204   :  { %938 = vrot.lane.b32.xlu0 %v6580_v10, %s7506_s23  ;;  %v7993_v20 = vadd.f32 %v855_v17, %v733_v14 }
 0x205   :  { %10723 = vst [vmem:[#allocation2_spill] sm:$0xff] %v7988_v12  ;;  %6587 = vtanh.f32 %v7988_v12 }
 0x206   :  { %6589 = vtanh.f32 %v7993_v20 }
 0x207   :  { %v6582_v23 = vpop.eup %6581  ;;  %v853_v55 = vpop.permute.xlu1 %852 }
 0x208   :  { %v859_v32 = vpop.permute.xlu0 %858  ;;  %936 = vrot.lane.b32.xlu1 %v6582_v23, %s7506_s23  ;;  %v7999_v33 = vadd.f32 %v853_v55, %v732_v26  ;;  %v739_v26 = vmul.f32 0.0, %v7956_v24 }
 0x209   :  { %v8001_v63 = vadd.f32 %v859_v32, %v735_v53  ;;  %v738_v53 = vmul.f32 0.0, %v7951_v19 }
 0x20a   :  { %6591 = vtanh.f32 %v7999_v33 }
 0x20b   :  { %v6584_v9 = vpop.eup %6583  ;;  %6593 = vtanh.f32 %v8001_v63  ;;  %v857_v44 = vpop.permute.xlu1 %856 }
 0x20c   :  { %v6586_v39 = vpop.eup %6585  ;;  %v863_v31 = vpop.permute.xlu0 %862  ;;  %942 = vrot.lane.b32.xlu1 %v6584_v9, %s7506_s23  ;;  %v8008_v49 = vadd.f32 %v857_v44, %v734_v36 }
 0x20d   :  { %v8010_v56 = vadd.f32 %v863_v31, %v737_v37  ;;  %940 = vrot.lane.b32.xlu0 %v6586_v39, %s7506_s23 }
 0x20e   :  { %6595 = vtanh.f32 %v8008_v49 }
 0x20f   :  { %v6588_v42 = vpop.eup %6587  ;;  %6597 = vtanh.f32 %v8010_v56  ;;  %v851_v0 = vpop.permute.xlu1 %850 }
 0x210   :  { %v861_v10 = vpop.permute.xlu0 %860  ;;  %944 = vrot.lane.b32.xlu1 %v6588_v42, %s7506_s23  ;;  %v6590_v14 = vpop.eup %6589  ;;  %v8018_v17 = vadd.f32 %v851_v0, %v731_v5 }
 0x211   :  { %v8020_v23 = vadd.f32 %v861_v10, %v736_v7  ;;  %950 = vrot.lane.b32.xlu0 %v6590_v14, %s7506_s23 }
 0x212   :  { %10724 = vst [vmem:[#allocation3_spill] sm:$0xff] %v8018_v17  ;;  %6599 = vtanh.f32 %v8018_v17 }
 0x213   :  { %6601 = vtanh.f32 %v8020_v23  ;;  %v867_v55 = vpop.permute.xlu1 %866 }
 0x214   :  { %v865_v32 = vpop.permute.xlu0 %864  ;;  %v6592_v9 = vpop.eup %6591  ;;  %v8027_v36 = vadd.f32 %v867_v55, %v739_v26 }
 0x215   :  { %v8029_v37 = vadd.f32 %v865_v32, %v738_v53  ;;  %v6594_v39 = vpop.eup %6593  ;;  %948 = vrot.lane.b32.xlu1 %v6592_v9, %s7506_s23 }
 0x216   :  { %10725 = vst [vmem:[#allocation4_spill] sm:$0xff] %v8027_v36  ;;  %6603 = vtanh.f32 %v8027_v36  ;;  %954 = vrot.lane.b32.xlu0 %v6594_v39, %s7506_s23 }
 0x217   :  { %6605 = vtanh.f32 %v8029_v37 }
 0x218   :  { %v6596_v44 = vpop.eup %6595 }
 0x219   :  { %v6598_v31 = vpop.eup %6597  ;;  %952 = vrot.lane.b32.xlu1 %v6596_v44, %s7506_s23 }
 0x21a   :  { %958 = vrot.lane.b32.xlu0 %v6598_v31, %s7506_s23 }
 0x21c   :  { %v6600_v42 = vpop.eup %6599 }
 0x21d   :  { %v6602_v5 = vpop.eup %6601  ;;  %946 = vrot.lane.b32.xlu1 %v6600_v42, %s7506_s23 }
 0x21e   :  { %956 = vrot.lane.b32.xlu0 %v6602_v5, %s7506_s23 }
 0x220   :  { %v6604_v7 = vpop.eup %6603 }
 0x221   :  { %v6606_v0 = vpop.eup %6605  ;;  %962 = vrot.lane.b32.xlu1 %v6604_v7, %s7506_s23 }
 0x222   :  { %960 = vrot.lane.b32.xlu0 %v6606_v0, %s7506_s23 }
 0x272   :  { %v935_v10 = vpop.permute.xlu0 %934 }
 0x273   :  { %v933_v14 = vpop.permute.xlu1 %932  ;;  %v981_v9 = vmul.f32 %v7894_v43, %v935_v10 }
 0x274   :  { %v980_v5 = vmul.f32 %v7897_v41, %v933_v14 }
 0x275   :  { %v1012_v42 = vrot.slane %v981_v9, 7 }
 0x276   :  { %v939_v53 = vpop.permute.xlu0 %938 }
 0x277   :  { %v983_v7 = vmul.f32 %v7904_v46, %v939_v53  ;;  %v1014_v12 = vsel %vm1013_vm2, %v1012_v42, %v980_v5 }
 0x27a   :  { %v937_v26 = vpop.permute.xlu1 %936 }
 0x27b   :  { %v982_v44 = vmul.f32 %v7909_v47, %v937_v26  ;;  %v1018_v26 = vrot.slane %v983_v7, 5 }
 0x27d   :  { %v1015_v3 = vrot.slane %v982_v44, 6 }
 0x27e   :  { %v943_v55 = vpop.permute.xlu1 %942 }
 0x27f   :  { %v941_v32 = vpop.permute.xlu0 %940  ;;  %v1017_v43 = vsel %vm1016_vm3, %v1015_v3, %v1014_v12  ;;  %v985_v10 = vmul.f32 %v7912_v27, %v943_v55 }
 0x280   :  { %v984_v0 = vmul.f32 %v7915_v28, %v941_v32  ;;  %v1020_v32 = vsel %vm1019_vm4, %v1018_v26, %v1017_v43 }
 0x281   :  { %v1024_v44 = vrot.slane %v985_v10, 3 }
 0x282   :  { %v945_v39 = vpop.permute.xlu1 %944  ;;  %v1021_v41 = vrot.slane %v984_v0, 4 }
 0x283   :  { %v951_v31 = vpop.permute.xlu0 %950  ;;  %v986_v14 = vmul.f32 %v7921_v34, %v945_v39 }
 0x284   :  { %v989_v47 = vmul.f32 %v7924_v22, %v951_v31  ;;  %v1023_v22 = vsel %vm1022_vm5, %v1021_v41, %v1020_v32 }
 0x285   :  { %v1027_v55 = vrot.slane %v986_v14, 2  ;;  %v1026_v5 = vsel %vm1025_vm6, %v1024_v44, %v1023_v22 }
 0x286   :  { %v1033_v3 = vrot.slane %v989_v47, 7 }
 0x287   :  { %v949_v36 = vpop.permute.xlu1 %948  ;;  %v1029_v43 = vsel %vm1028_vm7, %v1027_v55, %v1026_v5 }
 0x288   :  { %v955_v17 = vpop.permute.xlu0 %954  ;;  %v988_v46 = vmul.f32 %v7932_v59, %v949_v36 }
 0x289   :  { %v991_v27 = vmul.f32 %v7928_v48, %v955_v17 }
 0x28a   :  { %v1034_v34 = vsel %vm1013_vm2, %v1033_v3, %v988_v46 }
 0x28b   :  { %v953_v9 = vpop.permute.xlu1 %952  ;;  %v1037_v42 = vrot.slane %v991_v27, 5 }
 0x28c   :  { %v990_v28 = vmul.f32 %v7940_v45, %v953_v9  ;;  %v959_v53 = vpop.permute.xlu0 %958 }
 0x28d   :  { %v993_v48 = vmul.f32 %v7935_v62, %v959_v53 }
 0x28e   :  { %v1035_v12 = vrot.slane %v990_v28, 6 }
 0x28f   :  { %v947_v31 = vpop.permute.xlu1 %946  ;;  %v1041_v62 = vrot.slane %v993_v48, 3 }
 0x290   :  { %v987_v39 = vmul.f32 %v7948_v13, %v947_v31  ;;  %v957_v59 = vpop.permute.xlu0 %956  ;;  %v1036_v45 = vsel %vm1016_vm3, %v1035_v12, %v1034_v34 }
 0x291   :  { %v992_v36 = vmul.f32 %v7943_v8, %v957_v59  ;;  %v1038_v10 = vsel %vm1019_vm4, %v1037_v42, %v1036_v45 }
 0x292   :  { %v1030_v17 = vrot.slane %v987_v39, 1 }
 0x293   :  { %v1039_v7 = vrot.slane %v992_v36, 4  ;;  %v963_v0 = vpop.permute.xlu1 %962 }
 0x294   :  { %v995_v13 = vmul.f32 %v7956_v24, %v963_v0  ;;  %v961_v47 = vpop.permute.xlu0 %960  ;;  %v1032_v26 = vsel %vm1031_vm8, %v1030_v17, %v1029_v43 }
 0x295   :  { %v1040_v8 = vsel %vm1022_vm5, %v1039_v7, %v1038_v10  ;;  %v994_v41 = vmul.f32 %v7951_v19, %v961_v47  ;;  %1047 = vrot.lane.b32.xlu0 %v1032_v26, %s7507_s24 }
 0x296   :  { %v1045_v14 = vrot.slane %v995_v13, 1  ;;  %v1042_v46 = vsel %vm1025_vm6, %v1041_v62, %v1040_v8 }
 0x297   :  { %v1043_v9 = vrot.slane %v994_v41, 2 }
 0x299   :  { %v1044_v28 = vsel %vm1028_vm7, %v1043_v9, %v1042_v46 }
 0x29a   :  { %v1046_v53 = vsel %vm1031_vm8, %v1045_v14, %v1044_v28 }
 0x29b   :  { %1049 = vrot.lane.b32.xlu1 %v1046_v53, %s7507_s24 }
 0x307   :  { %v8073_v24 = vpop.permute.xlu0 %1047 }
 0x308   :  { %10726 = vst [vmem:[#allocation5_spill] sm:$0xff] %v8073_v24  ;;  %6223 = vmatprep.mubr.msk.f32.mxu1 %vm75_vm0, %v8073_v24 }
 0x30d   :  { %v8077_v19 = vpop.permute.xlu1 %1049 }
 0x30e   :  { %10727 = vst [vmem:[#allocation6_spill] sm:$0xff] %v8077_v19  ;;  %6224 = vmatmul.mubr.msk.f32.vlgmr.msra.gmra.mrb[2].mxu1 %vm75_vm0, %v8077_v19 }
 0x30f   :  { %6291 = vmatpush3.bf16.msra.mxu1 %v7606_v16 }
 0x310   :  { %6293 = vmatprep.subr.bf16.mxu1 %v7606_v16 }
 0x3e1   :  { %v8083_v32 = vpop.f32.mrb[2].mxu1 }
 0x3e2   :  { %v1139_v44 = vrot.slane %v8083_v32, 7  ;;  %v1121_v3 = vpop.f32.mrb[3].mxu1  ;;  %v1141_v12 = vrot.slane %v8083_v32, 2  ;;  %v8093_v22 = vadd.f32 %v8083_v32, %v7794_v18  ;;  %v1142_v55 = vrot.slane %v8083_v32, 3 }
 0x3e3   :  { %v1143_v39 = vrot.slane %v8083_v32, 4  ;;  %v1132_v36 = vrot.slane %v1121_v3, 7  ;;  %v1134_v17 = vrot.slane %v1121_v3, 2  ;;  %v1140_v7 = vrot.slane %v8083_v32, 1 }
 0x3e4   :  { %v8087_v27 = vadd.f32 %v1139_v44, %v7800_v21  ;;  %v8097_v31 = vadd.f32 %v1141_v12, %v7808_v25  ;;  %v8102_v59 = vadd.f32 %v1142_v55, %v7831_v38  ;;  %v8117_v0 = vadd.f32 %v1121_v3, %v7739_v50 }
 0x3e5   :  { %v8107_v45 = vadd.f32 %v1143_v39, %v7826_v35  ;;  %v8113_v5 = vadd.f32 %v1132_v36, %v7742_v52  ;;  %v1135_v10 = vrot.slane %v1121_v3, 3  ;;  %v8121_v13 = vadd.f32 %v1134_v17, %v7753_v57 }
 0x3e6   :  { %6607 = vtanh.f32 %v8087_v27  ;;  %v8125_v47 = vadd.f32 %v1140_v7, %v7811_v29  ;;  %v1133_v26 = vrot.slane %v1121_v3, 1  ;;  %v1144_v41 = vrot.slane %v8083_v32, 5 }
 0x3e7   :  { %6609 = vtanh.f32 %v8093_v22  ;;  %v8131_v62 = vadd.f32 %v1135_v10, %v7773_v4  ;;  %v1136_v14 = vrot.slane %v1121_v3, 4  ;;  %v1137_v28 = vrot.slane %v1121_v3, 5 }
 0x3e8   :  { %6611 = vtanh.f32 %v8097_v31  ;;  %v8136_v9 = vadd.f32 %v1133_v26, %v7758_v60  ;;  %v8140_v46 = vadd.f32 %v1144_v41, %v7851_v54  ;;  %v1138_v55 = vrot.slane %v1121_v3, 6 }
 0x3e9   :  { %6613 = vtanh.f32 %v8102_v59  ;;  %v8144_v53 = vadd.f32 %v1136_v14, %v7769_v1  ;;  %v5889_v41 = vmul.f32 -1.442695, %v8087_v27  ;;  %v5890_v14 = vmul.f32 -1.442695, %v8093_v22 }
 0x3ea   :  { %6615 = vtanh.f32 %v8107_v45  ;;  %v5881_v27 = vmul.f32 -1.442695, %v8113_v5  ;;  %v5882_v22 = vmul.f32 -1.442695, %v8117_v0 }
 0x3eb   :  { %6617 = vtanh.f32 %v8113_v5  ;;  %v5885_v5 = vmul.f32 -1.442695, %v8131_v62 }
 0x3ec   :  { %6619 = vtanh.f32 %v8117_v0  ;;  %v5883_v0 = vmul.f32 -1.442695, %v8136_v9 }
 0x3ed   :  { %6621 = vtanh.f32 %v8121_v13 }
 0x3ee   :  { %6623 = vtanh.f32 %v8125_v47 }
 0x3ef   :  { %6625 = vtanh.f32 %v8131_v62 }
 0x3f0   :  { %v6608_v34 = vpop.eup %6607  ;;  %6627 = vtanh.f32 %v8136_v9 }
 0x3f1   :  { %1386 = vrot.lane.b32.xlu0 %v6608_v34, %s7504_s0  ;;  %v6610_v42 = vpop.eup %6609  ;;  %6629 = vtanh.f32 %v8140_v46  ;;  %v8151_v34 = vadd.f32 %v1137_v28, %v7786_v11  ;;  %v5892_v28 = vmul.f32 -1.442695, %v8097_v31 }
 0x3f2   :  { %1388 = vrot.lane.b32.xlu1 %v6610_v42, %s7504_s0  ;;  %v6612_v48 = vpop.eup %6611  ;;  %6631 = vtanh.f32 %v8144_v53  ;;  %v1145_v42 = vrot.slane %v8083_v32, 6 }
 0x3f3   :  { %v6614_v43 = vpop.eup %6613  ;;  %6633 = vtanh.f32 %v8151_v34  ;;  %v5887_v62 = vmul.f32 -1.442695, %v8151_v34 }
 0x3f4   :  { %v6616_v8 = vpop.eup %6615  ;;  %v8164_v7 = vadd.f32 %v1145_v42, %v7855_v58 }
 0x3f5   :  { %1392 = vrot.lane.b32.xlu0 %v6612_v48, %s7504_s0  ;;  %v6618_v44 = vpop.eup %6617  ;;  %v8158_v48 = vadd.f32 %v1138_v55, %v7834_v40 }
 0x3f6   :  { %v6620_v12 = vpop.eup %6619 }
 0x3f7   :  { %1372 = vrot.lane.b32.xlu1 %v6620_v12, %s7504_s0  ;;  %v6622_v39 = vpop.eup %6621  ;;  %6635 = vtanh.f32 %v8158_v48  ;;  %v5893_v12 = vmul.f32 -1.442695, %v8102_v59  ;;  %v5891_v59 = vmul.f32 -1.442695, %v8125_v47  ;;  %v5895_v47 = vmul.f32 -1.442695, %v8140_v46 }
 0x3f8   :  { %v6624_v36 = vpop.eup %6623  ;;  %6637 = vtanh.f32 %v8164_v7 }
 0x3f9   :  { %1394 = vrot.lane.b32.xlu0 %v6614_v43, %s7504_s0  ;;  %v6626_v17 = vpop.eup %6625  ;;  %6639 = vpow2.f32 %v5889_v41 }
 0x3fa   :  { %v6628_v3 = vpop.eup %6627  ;;  %6641 = vpow2.f32 %v5890_v14  ;;  %v5886_v14 = vmul.f32 -1.442695, %v8144_v53 }
 0x3fb   :  { %1390 = vrot.lane.b32.xlu1 %v6624_v36, %s7504_s0  ;;  %v6630_v43 = vpop.eup %6629  ;;  %6643 = vpow2.f32 %v5892_v28 }
 0x3fc   :  { %v6632_v10 = vpop.eup %6631  ;;  %6645 = vpow2.f32 %v5893_v12 }
 0x3fd   :  { %1396 = vrot.lane.b32.xlu0 %v6616_v8, %s7504_s0  ;;  %v6634_v32 = vpop.eup %6633 }
 0x3ff   :  { %1374 = vrot.lane.b32.xlu1 %v6628_v3, %s7504_s0 }
 0x401   :  { %1370 = vrot.lane.b32.xlu0 %v6618_v44, %s7504_s0  ;;  %v6636_v26 = vpop.eup %6635 }
 0x402   :  { %v6638_v8 = vpop.eup %6637 }
 0x403   :  { %1380 = vrot.lane.b32.xlu1 %v6632_v10, %s7504_s0  ;;  %v6640_v44 = vpop.eup %6639 }
 0x404   :  { %v1234_v55 = vadd.f32 1.0, %v6640_v44  ;;  %v6642_v36 = vpop.eup %6641 }
 0x405   :  { %1376 = vrot.lane.b32.xlu0 %v6622_v39, %s7504_s0  ;;  %v5894_v39 = vmul.f32 -1.442695, %v8107_v45  ;;  %v1235_v42 = vadd.f32 1.0, %v6642_v36 }
 0x406   :  { %6647 = vrcp.f32 %v1234_v55 }
 0x407   :  { %1382 = vrot.lane.b32.xlu1 %v6634_v32, %s7504_s0  ;;  %6649 = vpow2.f32 %v5894_v39 }
 0x408   :  { %6651 = vrcp.f32 %v1235_v42 }
 0x409   :  { %1378 = vrot.lane.b32.xlu0 %v6626_v17, %s7504_s0  ;;  %v6644_v17 = vpop.eup %6643  ;;  %6653 = vpow2.f32 %v5881_v27  ;;  %v5888_v27 = vmul.f32 -1.442695, %v8158_v48 }
 0x40a   :  { %v1237_v3 = vadd.f32 1.0, %v6644_v17  ;;  %v6646_v31 = vpop.eup %6645  ;;  %6655 = vpow2.f32 %v5882_v22 }
 0x40b   :  { %1384 = vrot.lane.b32.xlu1 %v6636_v26, %s7504_s0  ;;  %v1238_v26 = vadd.f32 1.0, %v6646_v31 }
 0x40c   :  { %6657 = vrcp.f32 %v1237_v3 }
 0x40d   :  { %1398 = vrot.lane.b32.xlu0 %v6630_v43, %s7504_s0  ;;  %v5884_v43 = vmul.f32 -1.442695, %v8121_v13 }
 0x40f   :  { %1400 = vrot.lane.b32.xlu1 %v6638_v8, %s7504_s0  ;;  %6659 = vpow2.f32 %v5884_v43 }
 0x410   :  { %v8182_v10 = vpop.eup %6647  ;;  %6661 = vpow2.f32 %v5891_v59 }
 0x411   :  { %v6650_v8 = vpop.eup %6649  ;;  %6663 = vrcp.f32 %v1238_v26 }
 0x412   :  { %v1239_v13 = vadd.f32 1.0, %v6650_v8  ;;  %6665 = vpow2.f32 %v5885_v5  ;;  %v8189_v41 = vpop.eup %6651 }
 0x413   :  { %6667 = vpow2.f32 %v5883_v0  ;;  %v6654_v28 = vpop.eup %6653 }
 0x414   :  { %v6656_v44 = vpop.eup %6655  ;;  %6669 = vrcp.f32 %v1239_v13  ;;  %v1226_v46 = vadd.f32 1.0, %v6654_v28 }
 0x415   :  { %6671 = vpow2.f32 %v5895_v47  ;;  %v1227_v42 = vadd.f32 1.0, %v6656_v44 }
 0x416   :  { %v8194_v55 = vpop.eup %6657  ;;  %6673 = vpow2.f32 %v5886_v14 }
 0x417   :  { %6675 = vpow2.f32 %v5887_v62 }
 0x418   :  { %6677 = vrcp.f32 %v1226_v46 }
 0x419   :  { %v6660_v36 = vpop.eup %6659  ;;  %6679 = vrcp.f32 %v1227_v42 }
 0x41a   :  { %v6662_v17 = vpop.eup %6661  ;;  %v1229_v3 = vadd.f32 1.0, %v6660_v36  ;;  %6681 = vpow2.f32 %v5888_v27 }
 0x41b   :  { %v8200_v34 = vpop.eup %6663  ;;  %v1236_v43 = vadd.f32 1.0, %v6662_v17 }
 0x41c   :  { %v6666_v31 = vpop.eup %6665  ;;  %6683 = vrcp.f32 %v1229_v3 }
 0x41d   :  { %v1230_v8 = vadd.f32 1.0, %v6666_v31  ;;  %6685 = vrcp.f32 %v1236_v43 }
 0x463   :  { %v1387_v45 = vpop.permute.xlu0 %1386 }
 0x464   :  { %v1426_v32 = vmul.f32 %v8182_v10, %v1387_v45  ;;  %v1389_v12 = vpop.permute.xlu1 %1388  ;;  %v6668_v45 = vpop.eup %6667 }
 0x465   :  { %v1427_v9 = vmul.f32 %v8189_v41, %v1389_v12  ;;  %v8205_v26 = vpop.eup %6669  ;;  %v1228_v0 = vadd.f32 1.0, %v6668_v45 }
 0x466   :  { %1466 = vrot.lane.b32.xlu0 %v1426_v32, %s7505_s5  ;;  %v5896_v32 = vmul.f32 -1.442695, %v8164_v7  ;;  %v6672_v5 = vpop.eup %6671 }
 0x467   :  { %v1393_v39 = vpop.permute.xlu0 %1392  ;;  %1468 = vrot.lane.b32.xlu1 %v1427_v9, %s7505_s5  ;;  %v6674_v47 = vpop.eup %6673  ;;  %v1240_v14 = vadd.f32 1.0, %v6672_v5 }
 0x468   :  { %v1429_v53 = vmul.f32 %v8194_v55, %v1393_v39  ;;  %6687 = vpow2.f32 %v5896_v32  ;;  %v6676_v7 = vpop.eup %6675  ;;  %v1231_v28 = vadd.f32 1.0, %v6674_v47 }
 0x469   :  { %6689 = vrcp.f32 %v1230_v8  ;;  %v8209_v44 = vpop.eup %6677  ;;  %v1373_v9 = vpop.permute.xlu1 %1372  ;;  %v1232_v42 = vadd.f32 1.0, %v6676_v7 }
 0x46a   :  { %1472 = vrot.lane.b32.xlu0 %v1429_v53, %s7505_s5  ;;  %6691 = vrcp.f32 %v1228_v0  ;;  %v8211_v62 = vpop.eup %6679 }
 0x46b   :  { %v1395_v22 = vpop.permute.xlu0 %1394  ;;  %v1419_v46 = vmul.f32 %v8211_v62, %v1373_v9  ;;  %6693 = vrcp.f32 %v1240_v14  ;;  %v6682_v36 = vpop.eup %6681 }
 0x46c   :  { %v1430_v59 = vmul.f32 %v8200_v34, %v1395_v22  ;;  %6695 = vrcp.f32 %v1231_v28  ;;  %v8216_v53 = vpop.eup %6683 }
 0x46d   :  { %1452 = vrot.lane.b32.xlu1 %v1419_v46, %s7505_s5  ;;  %v8219_v27 = vpop.eup %6685  ;;  %v1391_v22 = vpop.permute.xlu1 %1390  ;;  %6697 = vrcp.f32 %v1232_v42 }
 0x46e   :  { %1474 = vrot.lane.b32.xlu0 %v1430_v59, %s7505_s5  ;;  %v1428_v31 = vmul.f32 %v8219_v27, %v1391_v22  ;;  %v1233_v59 = vadd.f32 1.0, %v6682_v36 }
 0x46f   :  { %v1397_v48 = vpop.permute.xlu0 %1396 }
 0x470   :  { %v1431_v13 = vmul.f32 %v8205_v26, %v1397_v48  ;;  %6699 = vrcp.f32 %v1233_v59  ;;  %v1314_v59 = vrot.slane %v7999_v33, 7  ;;  %v1318_v33 = vrot.slane %v8020_v23, 7 }
 0x471   :  { %1470 = vrot.lane.b32.xlu1 %v1428_v31, %s7505_s5  ;;  %v1375_v8 = vpop.permute.xlu1 %1374 }
 0x472   :  { %1476 = vrot.lane.b32.xlu0 %v1431_v13, %s7505_s5  ;;  %v6688_v43 = vpop.eup %6687 }
 0x473   :  { %v1371_v12 = vpop.permute.xlu0 %1370  ;;  %v8224_v45 = vpop.eup %6689  ;;  %v1241_v13 = vadd.f32 1.0, %v6688_v43 }
 0x474   :  { %v1418_v39 = vmul.f32 %v8209_v44, %v1371_v12  ;;  %v8227_v48 = vpop.eup %6691 }
 0x475   :  { %v1420_v0 = vmul.f32 %v8227_v48, %v1375_v8  ;;  %v8232_v47 = vpop.eup %6693  ;;  %v1381_v28 = vpop.permute.xlu1 %1380  ;;  %6701 = vrcp.f32 %v1241_v13  ;;  %v1317_v13 = vrot.slane %v8001_v63, 7 }
 0x476   :  { %1450 = vrot.lane.b32.xlu0 %v1418_v39, %s7505_s5  ;;  %v8235_v7 = vpop.eup %6695 }
 0x477   :  { %v1377_v17 = vpop.permute.xlu0 %1376  ;;  %1454 = vrot.lane.b32.xlu1 %v1420_v0, %s7505_s5  ;;  %v1423_v9 = vmul.f32 %v8235_v7, %v1381_v28  ;;  %v8241_v39 = vpop.eup %6697  ;;  %v1315_v0 = vrot.slane %v7993_v20, 7  ;;  %v1350_v20 = vmul.f32 %v8200_v34, %v1318_v33 }
 0x478   :  { %v1421_v3 = vmul.f32 %v8216_v53, %v1377_v17 }
 0x479   :  { %v1383_v46 = vpop.permute.xlu1 %1382 }
 0x47a   :  { %1456 = vrot.lane.b32.xlu0 %v1421_v3, %s7505_s5  ;;  %v1424_v36 = vmul.f32 %v8241_v39, %v1383_v46  ;;  %v8245_v42 = vpop.eup %6699 }
 0x47b   :  { %v1379_v32 = vpop.permute.xlu0 %1378  ;;  %1460 = vrot.lane.b32.xlu1 %v1423_v9, %s7505_s5  ;;  %v1349_v9 = vmul.f32 %v8194_v55, %v1317_v13 }
 0x47c   :  { %v1422_v5 = vmul.f32 %v8224_v45, %v1379_v32  ;;  %v1346_v32 = vmul.f32 %v8182_v10, %v1314_v59 }
 0x47d   :  { %v1385_v17 = vpop.permute.xlu1 %1384 }
 0x47e   :  { %1458 = vrot.lane.b32.xlu0 %v1422_v5, %s7505_s5  ;;  %v1425_v22 = vmul.f32 %v8245_v42, %v1385_v17 }
 0x47f   :  { %v1399_v14 = vpop.permute.xlu0 %1398  ;;  %1462 = vrot.lane.b32.xlu1 %v1424_v36, %s7505_s5  ;;  %v8249_v3 = vpop.eup %6701 }
 0x480   :  { %v1432_v12 = vmul.f32 %v8232_v47, %v1399_v14  ;;  %v1347_v14 = vmul.f32 %v8189_v41, %v1315_v0  ;;  %v1307_v0 = vrot.slane %v7963_v61, 7 }
 0x481   :  { %v1401_v31 = vpop.permute.xlu1 %1400 }
 0x482   :  { %1478 = vrot.lane.b32.xlu0 %v1432_v12, %s7505_s5  ;;  %v1433_v43 = vmul.f32 %v8249_v3, %v1401_v31 }
 0x483   :  { %1464 = vrot.lane.b32.xlu1 %v1425_v22, %s7505_s5  ;;  %v1319_v22 = vrot.slane %v8010_v56, 7 }
 0x485   :  { %v1351_v23 = vmul.f32 %v8205_v26, %v1319_v22 }
 0x487   :  { %1480 = vrot.lane.b32.xlu1 %v1433_v43, %s7505_s5 }
 0x4d8   :  { %v1467_v8 = vpop.permute.xlu0 %1466 }
 0x4d9   :  { %v8255_v5 = vadd.f32 %v1467_v8, %v1346_v32  ;;  %v1469_v28 = vpop.permute.xlu1 %1468  ;;  %v1306_v8 = vrot.slane %v7965_v6, 7  ;;  %v1316_v6 = vrot.slane %v8008_v49, 7  ;;  %v1308_v49 = vrot.slane %v7974_v30, 7 }
 0x4da   :  { %v8261_v12 = vadd.f32 %v1469_v28, %v1347_v14  ;;  %v1339_v14 = vmul.f32 %v8211_v62, %v1307_v0  ;;  %v1311_v30 = vrot.slane %v7979_v51, 7 }
 0x4db   :  { %6703 = vtanh.f32 %v8255_v5  ;;  %v1338_v56 = vmul.f32 %v8209_v44, %v1306_v8 }
 0x4dc   :  { %v1473_v46 = vpop.permute.xlu0 %1472  ;;  %6705 = vtanh.f32 %v8261_v12 }
 0x4dd   :  { %v8266_v36 = vadd.f32 %v1473_v46, %v1349_v9  ;;  %v1309_v9 = vrot.slane %v7970_v15, 7  ;;  %v1310_v15 = vrot.slane %v7981_v2, 7  ;;  %v1320_v2 = vrot.slane %v8029_v37, 7 }
 0x4df   :  { %10728 = vst [vmem:[#allocation7_spill] sm:$0xff] %v8266_v36  ;;  %6707 = vtanh.f32 %v8266_v36  ;;  %v1453_v46 = vpop.permute.xlu1 %1452  ;;  %v1342_v0 = vmul.f32 %v8224_v45, %v1310_v15  ;;  %v10731_v15 = vld [vmem:[#allocation2_spill] sm:$0xff] }
 0x4e0   :  { %v1475_v63 = vpop.permute.xlu0 %1474 }
 0x4e1   :  { %v8272_v31 = vadd.f32 %v1475_v63, %v1350_v20  ;;  %v1341_v20 = vmul.f32 %v8216_v53, %v1309_v9  ;;  %v1348_v63 = vmul.f32 %v8219_v27, %v1316_v6  ;;  %v1343_v6 = vmul.f32 %v8235_v7, %v1311_v30 }
 0x4e3   :  { %6709 = vtanh.f32 %v8272_v31 }
 0x4e4   :  { %v1477_v43 = vpop.permute.xlu0 %1476 }
 0x4e5   :  { %v6704_v17 = vpop.eup %6703  ;;  %v8276_v59 = vadd.f32 %v1477_v43, %v1351_v23  ;;  %v1471_v23 = vpop.permute.xlu1 %1470 }
 0x4e6   :  { %1562 = vrot.lane.b32.xlu0 %v6704_v17, %s7506_s23  ;;  %v6706_v32 = vpop.eup %6705  ;;  %v8289_v17 = vadd.f32 %v1453_v46, %v1339_v14  ;;  %v1352_v46 = vmul.f32 %v8232_v47, %v1320_v2 }
 0x4e7   :  { %6711 = vtanh.f32 %v8276_v59  ;;  %1564 = vrot.lane.b32.xlu1 %v6706_v32, %s7506_s23  ;;  %v8300_v32 = vadd.f32 %v1471_v23, %v1348_v63  ;;  %v1312_v23 = vrot.slane %v10731_v15, 7 }
 0x4e8   :  { %v1451_v28 = vpop.permute.xlu0 %1450  ;;  %10729 = vst [vmem:[#allocation8_spill] sm:$0xff] %v8289_v17 }
 0x4e9   :  { %v6708_v13 = vpop.eup %6707  ;;  %v8286_v33 = vadd.f32 %v1451_v28, %v1338_v56  ;;  %v1455_v14 = vpop.permute.xlu1 %1454  ;;  %v1344_v51 = vmul.f32 %v8241_v39, %v1312_v23 }
 0x4ea   :  { %1568 = vrot.lane.b32.xlu0 %v6708_v13, %s7506_s23  ;;  %v1340_v13 = vmul.f32 %v8227_v48, %v1308_v49 }
 0x4eb   :  { %6713 = vtanh.f32 %v8286_v33 }
 0x4ec   :  { %6715 = vtanh.f32 %v8289_v17  ;;  %v1457_v22 = vpop.permute.xlu0 %1456  ;;  %v8311_v9 = vadd.f32 %v1455_v14, %v1340_v13 }
 0x4ed   :  { %v6710_v61 = vpop.eup %6709  ;;  %v8297_v43 = vadd.f32 %v1457_v22, %v1341_v20  ;;  %v1461_v63 = vpop.permute.xlu1 %1460 }
 0x4ee   :  { %1570 = vrot.lane.b32.xlu0 %v6710_v61, %s7506_s23  ;;  %v8320_v49 = vadd.f32 %v1461_v63, %v1343_v6 }
 0x4ef   :  { %6717 = vtanh.f32 %v8297_v43 }
 0x4f0   :  { %6719 = vtanh.f32 %v8300_v32  ;;  %v1459_v56 = vpop.permute.xlu0 %1458  ;;  %10732 = vst [vmem:[#allocation2_spill] sm:$0xff] %v8320_v49 }
 0x4f1   :  { %v6712_v8 = vpop.eup %6711  ;;  %v8308_v28 = vadd.f32 %v1459_v56, %v1342_v0  ;;  %v1463_v0 = vpop.permute.xlu1 %1462  ;;  %v10733_v56 = vld [vmem:[#allocation3_spill] sm:$0xff] }
 0x4f2   :  { %1572 = vrot.lane.b32.xlu0 %v6712_v8, %s7506_s23  ;;  %v1313_v2 = vrot.slane %v10733_v56, 7  ;;  %v8328_v14 = vadd.f32 %v1463_v0, %v1344_v51 }
 0x4f3   :  { %6721 = vtanh.f32 %v8308_v28 }
 0x4f4   :  { %6723 = vtanh.f32 %v8311_v9  ;;  %v1479_v61 = vpop.permute.xlu0 %1478  ;;  %10734 = vst [vmem:[#allocation3_spill] sm:$0xff] %v8328_v14  ;;  %v1345_v30 = vmul.f32 %v8245_v42, %v1313_v2 }
 0x4f5   :  { %v6714_v20 = vpop.eup %6713  ;;  %v8317_v22 = vadd.f32 %v1479_v61, %v1352_v46  ;;  %v1465_v6 = vpop.permute.xlu1 %1464 }
 0x4f6   :  { %v6716_v37 = vpop.eup %6715  ;;  %1546 = vrot.lane.b32.xlu0 %v6714_v20, %s7506_s23  ;;  %v10735_v20 = vld [vmem:[#allocation4_spill] sm:$0xff] }
 0x4f7   :  { %10730 = vst [vmem:[#allocation9_spill] sm:$0xff] %v8317_v22  ;;  %1548 = vrot.lane.b32.xlu1 %v6716_v37, %s7506_s23  ;;  %6725 = vtanh.f32 %v8317_v22  ;;  %v1321_v63 = vrot.slane %v10735_v20, 7  ;;  %v8335_v37 = vadd.f32 %v1465_v6, %v1345_v30 }
 0x4f8   :  { %6727 = vtanh.f32 %v8320_v49 }
 0x4f9   :  { %v6718_v8 = vpop.eup %6717  ;;  %6729 = vtanh.f32 %v8328_v14  ;;  %10736 = vst [vmem:[#allocation4_spill] sm:$0xff] %v8335_v37  ;;  %v1353_v15 = vmul.f32 %v8249_v3, %v1321_v63  ;;  %v1481_v51 = vpop.permute.xlu1 %1480 }
 0x4fa   :  { %v6720_v13 = vpop.eup %6719  ;;  %1552 = vrot.lane.b32.xlu0 %v6718_v8, %s7506_s23  ;;  %6731 = vtanh.f32 %v8335_v37 }
 0x4fb   :  { %1566 = vrot.lane.b32.xlu1 %v6720_v13, %s7506_s23  ;;  %v8341_v0 = vadd.f32 %v1481_v51, %v1353_v15 }
 0x4fd   :  { %v6722_v46 = vpop.eup %6721  ;;  %10737 = vst [vmem:[#allocation10_spill] sm:$0xff] %v8341_v0  ;;  %6733 = vtanh.f32 %v8341_v0 }
 0x4fe   :  { %v6724_v61 = vpop.eup %6723  ;;  %1554 = vrot.lane.b32.xlu0 %v6722_v46, %s7506_s23 }
 0x4ff   :  { %1550 = vrot.lane.b32.xlu1 %v6724_v61, %s7506_s23 }
 0x501   :  { %v6726_v23 = vpop.eup %6725 }
 0x502   :  { %v6728_v8 = vpop.eup %6727  ;;  %1574 = vrot.lane.b32.xlu0 %v6726_v23, %s7506_s23 }
 0x503   :  { %1556 = vrot.lane.b32.xlu1 %v6728_v8, %s7506_s23  ;;  %v6730_v13 = vpop.eup %6729 }
 0x504   :  { %v6732_v56 = vpop.eup %6731 }
 0x507   :  { %1558 = vrot.lane.b32.xlu1 %v6730_v13, %s7506_s23  ;;  %v6734_v2 = vpop.eup %6733 }
 0x50b   :  { %1560 = vrot.lane.b32.xlu1 %v6732_v56, %s7506_s23 }
 0x50f   :  { %1576 = vrot.lane.b32.xlu1 %v6734_v2, %s7506_s23 }
 0x558   :  { %v1563_v30 = vpop.permute.xlu0 %1562 }
 0x559   :  { %v1565_v20 = vpop.permute.xlu1 %1564  ;;  %v1602_v2 = vmul.f32 %v8182_v10, %v1563_v30 }
 0x55a   :  { %v1603_v10 = vmul.f32 %v8189_v41, %v1565_v20 }
 0x55b   :  { %v1640_v36 = vrot.slane %v1602_v2, 1 }
 0x55c   :  { %v1569_v46 = vpop.permute.xlu0 %1568 }
 0x560   :  { %v1571_v6 = vpop.permute.xlu0 %1570 }
 0x564   :  { %v1573_v61 = vpop.permute.xlu0 %1572 }
 0x568   :  { %v1547_v63 = vpop.permute.xlu0 %1546 }
 0x569   :  { %v1549_v15 = vpop.permute.xlu1 %1548  ;;  %v1594_v23 = vmul.f32 %v8209_v44, %v1547_v63 }
 0x56a   :  { %v1595_v37 = vmul.f32 %v8211_v62, %v1549_v15  ;;  %v1605_v62 = vmul.f32 %v8194_v55, %v1569_v46 }
 0x56b   :  { %v1626_v19 = vrot.slane %v1594_v23, 1 }
 0x56c   :  { %v1553_v51 = vpop.permute.xlu0 %1552  ;;  %v1644_v55 = vrot.slane %v1605_v62, 6 }
 0x56d   :  { %v1567_v8 = vpop.permute.xlu1 %1566  ;;  %v1597_v13 = vmul.f32 %v8216_v53, %v1553_v51  ;;  %v1627_v17 = vsel %vm1013_vm2, %v1595_v37, %v1626_v19  ;;  %v1641_v37 = vsel %vm1013_vm2, %v1603_v10, %v1640_v36 }
 0x56e   :  { %v1604_v22 = vmul.f32 %v8219_v27, %v1567_v8  ;;  %v1606_v27 = vmul.f32 %v8200_v34, %v1571_v6 }
 0x56f   :  { %v1630_v44 = vrot.slane %v1597_v13, 6 }
 0x570   :  { %v1555_v24 = vpop.permute.xlu0 %1554  ;;  %v1642_v51 = vrot.slane %v1604_v22, 7  ;;  %v1646_v30 = vrot.slane %v1606_v27, 5 }
 0x571   :  { %v1551_v0 = vpop.permute.xlu1 %1550  ;;  %v1598_v56 = vmul.f32 %v8224_v45, %v1555_v24 }
 0x572   :  { %v1596_v14 = vmul.f32 %v8227_v48, %v1551_v0  ;;  %v1607_v0 = vmul.f32 %v8205_v26, %v1573_v61 }
 0x573   :  { %v1632_v23 = vrot.slane %v1598_v56, 5 }
 0x574   :  { %v1628_v63 = vrot.slane %v1596_v14, 7  ;;  %v1575_v48 = vpop.permute.xlu0 %1574  ;;  %v1648_v20 = vrot.slane %v1607_v0, 4 }
 0x575   :  { %v1557_v49 = vpop.permute.xlu1 %1556  ;;  %v1608_v41 = vmul.f32 %v8232_v47, %v1575_v48 }
 0x576   :  { %v1599_v53 = vmul.f32 %v8235_v7, %v1557_v49  ;;  %v1629_v24 = vsel %vm1016_vm3, %v1628_v63, %v1627_v17  ;;  %v1643_v17 = vsel %vm1016_vm3, %v1642_v51, %v1641_v37 }
 0x577   :  { %v1631_v45 = vsel %vm1019_vm4, %v1630_v44, %v1629_v24  ;;  %v1645_v6 = vsel %vm1019_vm4, %v1644_v55, %v1643_v17  ;;  %v1650_v15 = vrot.slane %v1608_v41, 3 }
 0x578   :  { %v1633_v14 = vsel %vm1022_vm5, %v1632_v23, %v1631_v45  ;;  %v1634_v7 = vrot.slane %v1599_v53, 4 }
 0x579   :  { %v1559_v19 = vpop.permute.xlu1 %1558 }
 0x57a   :  { %v1600_v22 = vmul.f32 %v8241_v39, %v1559_v19  ;;  %v1635_v49 = vsel %vm1025_vm6, %v1634_v7, %v1633_v14  ;;  %v1647_v39 = vsel %vm1022_vm5, %v1646_v30, %v1645_v6 }
 0x57b   :  { %v1649_v47 = vsel %vm1025_vm6, %v1648_v20, %v1647_v39 }
 0x57c   :  { %v1636_v46 = vrot.slane %v1600_v22, 3  ;;  %v1651_v2 = vsel %vm1028_vm7, %v1650_v15, %v1649_v47 }
 0x57d   :  { %v1561_v34 = vpop.permute.xlu1 %1560 }
 0x57e   :  { %v1601_v36 = vmul.f32 %v8245_v42, %v1561_v34  ;;  %v1637_v26 = vsel %vm1028_vm7, %v1636_v46, %v1635_v49 }
 0x580   :  { %v1638_v61 = vrot.slane %v1601_v36, 2 }
 0x581   :  { %v1577_v8 = vpop.permute.xlu1 %1576 }
 0x582   :  { %v1609_v13 = vmul.f32 %v8249_v3, %v1577_v8  ;;  %v8377_v56 = vsel %vm1031_vm8, %v1638_v61, %v1637_v26 }
 0x583   :  { %10738 = vst [vmem:[#allocation11_spill] sm:$0xff] %v8377_v56  ;;  %1654 = vrot.lane.b32.xlu0 %v8377_v56, %s7507_s24 }
 0x584   :  { %v1652_v42 = vrot.slane %v1609_v13, 2 }
 0x586   :  { %v8383_v44 = vsel %vm1031_vm8, %v1652_v42, %v1651_v2 }
 0x587   :  { %10739 = vst [vmem:[#allocation12_spill] sm:$0xff] %v8383_v44  ;;  %1656 = vrot.lane.b32.xlu1 %v8383_v44, %s7507_s24 }
 0x5f5   :  { %v1655_v23 = vpop.permute.xlu0 %1654 }
 0x5f6   :  { %6230 = vmatprep.mubr.msk.f32.mxu1 %vm75_vm0, %v1655_v23 }
 0x5f9   :  { %v1657_v3 = vpop.permute.xlu1 %1656 }
 0x5fa   :  { %6231 = vmatmul.mubr.msk.f32.vlgmr.msra.gmra.mrb[4].mxu1 %vm75_vm0, %v1657_v3 }
 0x5fb   :  { %6295 = vmatpush3.bf16.msra.mxu1 %v7606_v16 }
 0x5fc   :  { %6297 = vmatprep.subr.bf16.mxu1 %v7606_v16 }
 0x6cd   :  { %v8393_v53 = vpop.f32.mrb[4].mxu1 }
 0x6ce   :  { %v1746_v51 = vrot.slane %v8393_v53, 6  ;;  %v1728_v24 = vpop.f32.mrb[5].mxu1  ;;  %v1749_v62 = vrot.slane %v8393_v53, 2  ;;  %v8403_v45 = vadd.f32 %v8393_v53, %v7811_v29  ;;  %v1750_v48 = vrot.slane %v8393_v53, 3 }
 0x6cf   :  { %v1739_v37 = vrot.slane %v1728_v24, 6  ;;  %v1741_v7 = vrot.slane %v1728_v24, 1  ;;  %v1747_v41 = vrot.slane %v8393_v53, 7  ;;  %v8422_v55 = vadd.f32 %v1728_v24, %v7758_v60 }
 0x6d0   :  { %v8397_v10 = vadd.f32 %v1746_v51, %v7800_v21  ;;  %v8407_v27 = vadd.f32 %v1749_v62, %v7831_v38  ;;  %v8412_v14 = vadd.f32 %v1750_v48, %v7826_v35  ;;  %v1742_v49 = vrot.slane %v1728_v24, 2 }
 0x6d1   :  { %v8417_v22 = vadd.f32 %v1739_v37, %v7742_v52  ;;  %v8426_v30 = vadd.f32 %v1741_v7, %v7753_v57  ;;  %v1748_v34 = vrot.slane %v8393_v53, 1  ;;  %v8431_v6 = vadd.f32 %v1747_v41, %v7794_v18 }
 0x6d2   :  { %6735 = vtanh.f32 %v8397_v10  ;;  %v1743_v20 = vrot.slane %v1728_v24, 3  ;;  %v8436_v36 = vadd.f32 %v1742_v49, %v7773_v4  ;;  %v1740_v26 = vrot.slane %v1728_v24, 7 }
 0x6d3   :  { %6737 = vtanh.f32 %v8403_v45  ;;  %v8440_v15 = vadd.f32 %v1748_v34, %v7808_v25  ;;  %v1751_v61 = vrot.slane %v8393_v53, 4  ;;  %v1744_v47 = vrot.slane %v1728_v24, 4 }
 0x6d4   :  { %6739 = vtanh.f32 %v8407_v27  ;;  %v8445_v39 = vadd.f32 %v1743_v20, %v7769_v1  ;;  %v8450_v13 = vadd.f32 %v1740_v26, %v7739_v50  ;;  %v1745_v3 = vrot.slane %v1728_v24, 5 }
 0x6d5   :  { %6741 = vtanh.f32 %v8412_v14  ;;  %v8454_v42 = vadd.f32 %v1751_v61, %v7851_v54  ;;  %v8459_v51 = vadd.f32 %v1744_v47, %v7786_v11  ;;  %v5907_v34 = vmul.f32 -1.442695, %v8397_v10 }
 0x6d6   :  { %6743 = vtanh.f32 %v8417_v22  ;;  %v8467_v37 = vadd.f32 %v1745_v3, %v7834_v40  ;;  %v5909_v20 = vmul.f32 -1.442695, %v8403_v45  ;;  %v5911_v26 = vmul.f32 -1.442695, %v8407_v27 }
 0x6d7   :  { %6745 = vtanh.f32 %v8422_v55  ;;  %v5901_v10 = vmul.f32 -1.442695, %v8422_v55  ;;  %v5910_v55 = vmul.f32 -1.442695, %v8440_v15 }
 0x6d8   :  { %6747 = vtanh.f32 %v8426_v30 }
 0x6d9   :  { %6749 = vtanh.f32 %v8431_v6 }
 0x6da   :  { %6751 = vtanh.f32 %v8436_v36 }
 0x6db   :  { %6753 = vtanh.f32 %v8440_v15 }
 0x6dc   :  { %v6736_v19 = vpop.eup %6735  ;;  %6755 = vtanh.f32 %v8445_v39 }
 0x6dd   :  { %1993 = vrot.lane.b32.xlu0 %v6736_v19, %s7504_s0  ;;  %v6738_v0 = vpop.eup %6737  ;;  %6757 = vtanh.f32 %v8450_v13  ;;  %v1752_v19 = vrot.slane %v8393_v53, 5 }
 0x6de   :  { %1997 = vrot.lane.b32.xlu1 %v6738_v0, %s7504_s0  ;;  %v6740_v17 = vpop.eup %6739  ;;  %6759 = vtanh.f32 %v8454_v42 }
 0x6df   :  { %v6742_v46 = vpop.eup %6741  ;;  %6761 = vtanh.f32 %v8459_v51  ;;  %v8473_v7 = vadd.f32 %v1752_v19, %v7855_v58 }
 0x6e0   :  { %v6744_v8 = vpop.eup %6743  ;;  %6763 = vtanh.f32 %v8467_v37 }
 0x6e1   :  { %2001 = vrot.lane.b32.xlu0 %v6740_v17, %s7504_s0  ;;  %v6746_v2 = vpop.eup %6745  ;;  %6765 = vtanh.f32 %v8473_v7 }
 0x6e2   :  { %1981 = vrot.lane.b32.xlu1 %v6746_v2, %s7504_s0  ;;  %v6748_v23 = vpop.eup %6747  ;;  %6767 = vpow2.f32 %v5907_v34 }
 0x6e3   :  { %v6750_v62 = vpop.eup %6749  ;;  %6769 = vpow2.f32 %v5909_v20 }
 0x6e4   :  { %v6752_v48 = vpop.eup %6751  ;;  %6771 = vpow2.f32 %v5911_v26 }
 0x6e5   :  { %2003 = vrot.lane.b32.xlu0 %v6742_v46, %s7504_s0  ;;  %v6754_v24 = vpop.eup %6753 }
 0x6e6   :  { %1995 = vrot.lane.b32.xlu1 %v6750_v62, %s7504_s0  ;;  %v6756_v0 = vpop.eup %6755 }
 0x6e7   :  { %v6758_v17 = vpop.eup %6757 }
 0x6e8   :  { %v6760_v53 = vpop.eup %6759 }
 0x6e9   :  { %1977 = vrot.lane.b32.xlu0 %v6744_v8, %s7504_s0  ;;  %v6762_v41 = vpop.eup %6761  ;;  %v5912_v8 = vmul.f32 -1.442695, %v8412_v14  ;;  %v5908_v14 = vmul.f32 -1.442695, %v8431_v6  ;;  %v5900_v6 = vmul.f32 -1.442695, %v8450_v13 }
 0x6ea   :  { %1999 = vrot.lane.b32.xlu1 %v6754_v24, %s7504_s0  ;;  %v6764_v49 = vpop.eup %6763 }
 0x6eb   :  { %v6766_v46 = vpop.eup %6765  ;;  %6773 = vpow2.f32 %v5912_v8 }
 0x6ec   :  { %v6768_v61 = vpop.eup %6767 }
 0x6ed   :  { %1983 = vrot.lane.b32.xlu0 %v6748_v23, %s7504_s0  ;;  %v1841_v47 = vadd.f32 1.0, %v6768_v61  ;;  %v6770_v2 = vpop.eup %6769  ;;  %v5899_v23 = vmul.f32 -1.442695, %v8417_v22 }
 0x6ee   :  { %1979 = vrot.lane.b32.xlu1 %v6758_v17, %s7504_s0  ;;  %v6772_v3 = vpop.eup %6771  ;;  %v1843_v62 = vadd.f32 1.0, %v6770_v2 }
 0x6ef   :  { %6775 = vrcp.f32 %v1841_v47  ;;  %v1845_v45 = vadd.f32 1.0, %v6772_v3  ;;  %v5906_v3 = vmul.f32 -1.442695, %v8467_v37 }
 0x6f0   :  { %6777 = vpow2.f32 %v5899_v23 }
 0x6f1   :  { %1985 = vrot.lane.b32.xlu0 %v6752_v48, %s7504_s0  ;;  %v5902_v48 = vmul.f32 -1.442695, %v8426_v30  ;;  %6779 = vrcp.f32 %v1843_v62  ;;  %v5904_v30 = vmul.f32 -1.442695, %v8445_v39  ;;  %v5905_v39 = vmul.f32 -1.442695, %v8459_v51 }
 0x6f2   :  { %1989 = vrot.lane.b32.xlu1 %v6762_v41, %s7504_s0  ;;  %6781 = vpow2.f32 %v5901_v10 }
 0x6f3   :  { %6783 = vpow2.f32 %v5902_v48 }
 0x6f4   :  { %6785 = vrcp.f32 %v1845_v45 }
 0x6f5   :  { %1987 = vrot.lane.b32.xlu0 %v6756_v0, %s7504_s0  ;;  %v6774_v27 = vpop.eup %6773  ;;  %v5903_v0 = vmul.f32 -1.442695, %v8436_v36  ;;  %6787 = vpow2.f32 %v5908_v14  ;;  %v5914_v14 = vmul.f32 -1.442695, %v8473_v7 }
 0x6f6   :  { %1991 = vrot.lane.b32.xlu1 %v6764_v49, %s7504_s0  ;;  %v1846_v17 = vadd.f32 1.0, %v6774_v27  ;;  %v5913_v49 = vmul.f32 -1.442695, %v8454_v42 }
 0x6f7   :  { %6789 = vpow2.f32 %v5903_v0 }
 0x6f8   :  { %6791 = vrcp.f32 %v1846_v17 }
 0x6f9   :  { %2005 = vrot.lane.b32.xlu0 %v6760_v53, %s7504_s0  ;;  %v8490_v19 = vpop.eup %6775  ;;  %6793 = vpow2.f32 %v5910_v55 }
 0x6fa   :  { %2007 = vrot.lane.b32.xlu1 %v6766_v46, %s7504_s0  ;;  %v6778_v53 = vpop.eup %6777  ;;  %6795 = vpow2.f32 %v5904_v30 }
 0x6fb   :  { %v8499_v41 = vpop.eup %6779  ;;  %v1833_v26 = vadd.f32 1.0, %v6778_v53  ;;  %6797 = vpow2.f32 %v5900_v6 }
 0x6fc   :  { %v6782_v36 = vpop.eup %6781  ;;  %6799 = vpow2.f32 %v5913_v49 }
 0x6fd   :  { %v6784_v34 = vpop.eup %6783  ;;  %v1835_v8 = vadd.f32 1.0, %v6782_v36  ;;  %6801 = vrcp.f32 %v1833_v26 }
 0x6fe   :  { %v8503_v15 = vpop.eup %6785  ;;  %v1836_v2 = vadd.f32 1.0, %v6784_v34  ;;  %6803 = vpow2.f32 %v5905_v39 }
 0x6ff   :  { %v6788_v47 = vpop.eup %6787  ;;  %6805 = vrcp.f32 %v1835_v8 }
 0x700   :  { %v1842_v51 = vadd.f32 1.0, %v6788_v47  ;;  %6807 = vrcp.f32 %v1836_v2 }
 0x701   :  { %v6790_v42 = vpop.eup %6789  ;;  %6809 = vpow2.f32 %v5906_v3 }
 0x702   :  { %v8509_v23 = vpop.eup %6791  ;;  %v1837_v45 = vadd.f32 1.0, %v6790_v42  ;;  %6811 = vrcp.f32 %v1842_v51 }
 0x703   :  { %v6794_v48 = vpop.eup %6793 }
 0x704   :  { %v6796_v27 = vpop.eup %6795  ;;  %6813 = vrcp.f32 %v1837_v45 }
 0x705   :  { %v6798_v0 = vpop.eup %6797  ;;  %6815 = vpow2.f32 %v5914_v14 }
 0x706   :  { %v6800_v37 = vpop.eup %6799  ;;  %v1834_v30 = vadd.f32 1.0, %v6798_v0 }
 0x707   :  { %v8515_v17 = vpop.eup %6801  ;;  %v1847_v7 = vadd.f32 1.0, %v6800_v37 }
 0x708   :  { %v6804_v53 = vpop.eup %6803 }
 0x709   :  { %v8518_v36 = vpop.eup %6805  ;;  %v1839_v26 = vadd.f32 1.0, %v6804_v53 }
 0x70a   :  { %v8522_v34 = vpop.eup %6807 }
 0x70b   :  { %v6810_v39 = vpop.eup %6809 }
 0x70c   :  { %v8526_v8 = vpop.eup %6811  ;;  %v1840_v3 = vadd.f32 1.0, %v6810_v39 }
 0x70e   :  { %v8530_v42 = vpop.eup %6813 }
 0x74f   :  { %v1994_v24 = vpop.permute.xlu0 %1993 }
 0x750   :  { %v2033_v22 = vmul.f32 %v8490_v19, %v1994_v24  ;;  %v1998_v46 = vpop.permute.xlu1 %1997  ;;  %v1844_v24 = vadd.f32 1.0, %v6794_v48 }
 0x751   :  { %v2035_v20 = vmul.f32 %v8499_v41, %v1998_v46 }
 0x752   :  { %2073 = vrot.lane.b32.xlu0 %v2033_v22, %s7505_s5  ;;  %v1838_v22 = vadd.f32 1.0, %v6796_v27  ;;  %6817 = vrcp.f32 %v1844_v24 }
 0x753   :  { %v2002_v61 = vpop.permute.xlu0 %2001  ;;  %2077 = vrot.lane.b32.xlu1 %v2035_v20, %s7505_s5 }
 0x754   :  { %v2037_v13 = vmul.f32 %v8503_v15, %v2002_v61  ;;  %v1982_v49 = vpop.permute.xlu1 %1981  ;;  %6819 = vrcp.f32 %v1838_v22 }
 0x755   :  { %v2027_v46 = vmul.f32 %v8518_v36, %v1982_v49  ;;  %6821 = vrcp.f32 %v1834_v30 }
 0x756   :  { %2081 = vrot.lane.b32.xlu0 %v2037_v13, %s7505_s5  ;;  %6823 = vrcp.f32 %v1847_v7 }
 0x757   :  { %v2004_v62 = vpop.permute.xlu0 %2003  ;;  %2061 = vrot.lane.b32.xlu1 %v2027_v46, %s7505_s5  ;;  %6825 = vrcp.f32 %v1839_v26 }
 0x758   :  { %v2038_v10 = vmul.f32 %v8509_v23, %v2004_v62  ;;  %v1996_v13 = vpop.permute.xlu1 %1995  ;;  %v6816_v62 = vpop.eup %6815  ;;  %6827 = vrcp.f32 %v1840_v3 }
 0x759   :  { %v2034_v47 = vmul.f32 %v8526_v8, %v1996_v13  ;;  %v1848_v24 = vadd.f32 1.0, %v6816_v62 }
 0x75a   :  { %2083 = vrot.lane.b32.xlu0 %v2038_v10, %s7505_s5 }
 0x75b   :  { %v1978_v55 = vpop.permute.xlu0 %1977  ;;  %2075 = vrot.lane.b32.xlu1 %v2034_v47, %s7505_s5  ;;  %6829 = vrcp.f32 %v1848_v24 }
 0x75c   :  { %v2025_v6 = vmul.f32 %v8515_v17, %v1978_v55  ;;  %v8534_v10 = vpop.eup %6817  ;;  %v2000_v48 = vpop.permute.xlu1 %1999 }
 0x75d   :  { %v2036_v45 = vmul.f32 %v8534_v10, %v2000_v48  ;;  %v1923_v48 = vrot.slane %v8300_v32, 7 }
 0x75e   :  { %2057 = vrot.lane.b32.xlu0 %v2025_v6, %s7505_s5  ;;  %v8538_v27 = vpop.eup %6819 }
 0x75f   :  { %v1984_v20 = vpop.permute.xlu0 %1983  ;;  %2079 = vrot.lane.b32.xlu1 %v2036_v45, %s7505_s5  ;;  %v8542_v22 = vpop.eup %6821  ;;  %v1925_v45 = vrot.slane %v8272_v31, 7 }
 0x760   :  { %v2028_v61 = vmul.f32 %v8522_v34, %v1984_v20  ;;  %v1980_v37 = vpop.permute.xlu1 %1979  ;;  %v8546_v30 = vpop.eup %6823 }
 0x761   :  { %v2026_v55 = vmul.f32 %v8542_v22, %v1980_v37  ;;  %v8550_v49 = vpop.eup %6825  ;;  %v1957_v37 = vmul.f32 %v8503_v15, %v1925_v45 }
 0x762   :  { %2063 = vrot.lane.b32.xlu0 %v2028_v61, %s7505_s5  ;;  %v8555_v20 = vpop.eup %6827 }
 0x763   :  { %v1986_v2 = vpop.permute.xlu0 %1985  ;;  %2059 = vrot.lane.b32.xlu1 %v2026_v55, %s7505_s5 }
 0x764   :  { %v2029_v51 = vmul.f32 %v8530_v42, %v1986_v2  ;;  %v1990_v7 = vpop.permute.xlu1 %1989  ;;  %v1921_v2 = vrot.slane %v8255_v5, 7 }
 0x765   :  { %v2031_v46 = vmul.f32 %v8550_v49, %v1990_v7  ;;  %v8559_v61 = vpop.eup %6829 }
 0x766   :  { %2065 = vrot.lane.b32.xlu0 %v2029_v51, %s7505_s5  ;;  %v1953_v3 = vmul.f32 %v8490_v19, %v1921_v2  ;;  %v1916_v2 = vrot.slane %v8297_v43, 7 }
 0x767   :  { %v1988_v14 = vpop.permute.xlu0 %1987  ;;  %2069 = vrot.lane.b32.xlu1 %v2031_v46, %s7505_s5  ;;  %v1913_v46 = vrot.slane %v8286_v33, 7  ;;  %v1922_v33 = vrot.slane %v8261_v12, 7  ;;  %v10741_v12 = vld [vmem:[#allocation7_spill] sm:$0xff] }
 0x768   :  { %v2030_v0 = vmul.f32 %v8538_v27, %v1988_v14  ;;  %v1992_v26 = vpop.permute.xlu1 %1991  ;;  %v1955_v14 = vmul.f32 %v8499_v41, %v1923_v48 }
 0x769   :  { %v2032_v39 = vmul.f32 %v8555_v20, %v1992_v26  ;;  %v1954_v43 = vmul.f32 %v8526_v8, %v1922_v33 }
 0x76a   :  { %2067 = vrot.lane.b32.xlu0 %v2030_v0, %s7505_s5 }
 0x76b   :  { %v2006_v53 = vpop.permute.xlu0 %2005  ;;  %2071 = vrot.lane.b32.xlu1 %v2032_v39, %s7505_s5  ;;  %v1945_v39 = vmul.f32 %v8515_v17, %v1913_v46 }
 0x76c   :  { %v2039_v6 = vmul.f32 %v8546_v30, %v2006_v53  ;;  %v2008_v13 = vpop.permute.xlu1 %2007  ;;  %v1926_v53 = vrot.slane %v8276_v59, 7  ;;  %v1915_v59 = vrot.slane %v8311_v9, 7  ;;  %v1948_v9 = vmul.f32 %v8522_v34, %v1916_v2 }
 0x76d   :  { %v2040_v47 = vmul.f32 %v8559_v61, %v2008_v13 }
 0x76e   :  { %2085 = vrot.lane.b32.xlu0 %v2039_v6, %s7505_s5  ;;  %v1958_v31 = vmul.f32 %v8509_v23, %v1926_v53  ;;  %v1924_v53 = vrot.slane %v10741_v12, 7 }
 0x76f   :  { %2087 = vrot.lane.b32.xlu1 %v2040_v47, %s7505_s5 }
 0x7c4   :  { %v2074_v62 = vpop.permute.xlu0 %2073 }
 0x7c5   :  { %v8565_v51 = vadd.f32 %v2074_v62, %v1953_v3  ;;  %v2078_v24 = vpop.permute.xlu1 %2077  ;;  %v1947_v3 = vmul.f32 %v8518_v36, %v1915_v59  ;;  %v1956_v59 = vmul.f32 %v8534_v10, %v1924_v53  ;;  %v10746_v53 = vld [vmem:[#allocation3_spill] sm:$0xff] }
 0x7c6   :  { %v8571_v0 = vadd.f32 %v2078_v24, %v1955_v14 }
 0x7c7   :  { %6831 = vtanh.f32 %v8565_v51 }
 0x7c8   :  { %v2082_v55 = vpop.permute.xlu0 %2081  ;;  %6833 = vtanh.f32 %v8571_v0 }
 0x7c9   :  { %v8576_v6 = vadd.f32 %v2082_v55, %v1957_v37  ;;  %v2062_v48 = vpop.permute.xlu1 %2061  ;;  %v1917_v37 = vrot.slane %v8308_v28, 7 }
 0x7ca   :  { %v8594_v45 = vadd.f32 %v2062_v48, %v1947_v3 }
 0x7cb   :  { %10740 = vst [vmem:[#allocation13_spill] sm:$0xff] %v8576_v6  ;;  %6835 = vtanh.f32 %v8576_v6 }
 0x7cc   :  { %v2084_v32 = vpop.permute.xlu0 %2083 }
 0x7cd   :  { %v8581_v7 = vadd.f32 %v2084_v32, %v1958_v31  ;;  %v1949_v32 = vmul.f32 %v8530_v42, %v1917_v37 }
 0x7cf   :  { %6837 = vtanh.f32 %v8581_v7 }
 0x7d0   :  { %v2058_v47 = vpop.permute.xlu0 %2057 }
 0x7d1   :  { %v6832_v5 = vpop.eup %6831  ;;  %v8590_v62 = vadd.f32 %v2058_v47, %v1945_v39  ;;  %v10743_v47 = vld [vmem:[#allocation8_spill] sm:$0xff] }
 0x7d2   :  { %2169 = vrot.lane.b32.xlu0 %v6832_v5, %s7506_s23  ;;  %v6834_v26 = vpop.eup %6833  ;;  %v2076_v5 = vpop.permute.xlu1 %2075  ;;  %v1914_v2 = vrot.slane %v10743_v47, 7 }
 0x7d3   :  { %2173 = vrot.lane.b32.xlu1 %v6834_v26, %s7506_s23  ;;  %6839 = vtanh.f32 %v8590_v62  ;;  %v8605_v31 = vadd.f32 %v2076_v5, %v1954_v43  ;;  %v10742_v26 = vld [vmem:[#allocation2_spill] sm:$0xff] }
 0x7d4   :  { %v2064_v24 = vpop.permute.xlu0 %2063  ;;  %6841 = vtanh.f32 %v8594_v45  ;;  %v1918_v28 = vrot.slane %v10742_v26, 7  ;;  %v1946_v37 = vmul.f32 %v8542_v22, %v1914_v2 }
 0x7d5   :  { %v6836_v13 = vpop.eup %6835  ;;  %v8601_v55 = vadd.f32 %v2064_v24, %v1948_v9 }
 0x7d6   :  { %2177 = vrot.lane.b32.xlu0 %v6836_v13, %s7506_s23  ;;  %v2080_v13 = vpop.permute.xlu1 %2079  ;;  %v1950_v48 = vmul.f32 %v8538_v27, %v1918_v28 }
 0x7d7   :  { %6843 = vtanh.f32 %v8601_v55  ;;  %v8615_v3 = vadd.f32 %v2080_v13, %v1956_v59 }
 0x7d8   :  { %v2066_v46 = vpop.permute.xlu0 %2065  ;;  %6845 = vtanh.f32 %v8605_v31 }
 0x7d9   :  { %v6838_v14 = vpop.eup %6837  ;;  %v8612_v39 = vadd.f32 %v2066_v46, %v1949_v32  ;;  %v1919_v32 = vrot.slane %v10746_v53, 7  ;;  %v10751_v53 = vld [vmem:[#allocation10_spill] sm:$0xff] }
 0x7da   :  { %2179 = vrot.lane.b32.xlu0 %v6838_v14, %s7506_s23  ;;  %v10744_v14 = vld [vmem:[#allocation9_spill] sm:$0xff]  ;;  %v2060_v5 = vpop.permute.xlu1 %2059 }
 0x7db   :  { %6847 = vtanh.f32 %v8612_v39  ;;  %v1927_v24 = vrot.slane %v10744_v14, 7  ;;  %v8626_v46 = vadd.f32 %v2060_v5, %v1946_v37  ;;  %v1951_v13 = vmul.f32 %v8550_v49, %v1919_v32 }
 0x7dc   :  { %v2068_v33 = vpop.permute.xlu0 %2067  ;;  %6849 = vtanh.f32 %v8615_v3  ;;  %v1928_v32 = vrot.slane %v10751_v53, 7 }
 0x7dd   :  { %v6840_v9 = vpop.eup %6839  ;;  %v8622_v43 = vadd.f32 %v2068_v33, %v1950_v48  ;;  %10747 = vst [vmem:[#allocation2_spill] sm:$0xff] %v8626_v46  ;;  %v1959_v26 = vmul.f32 %v8546_v30, %v1927_v24  ;;  %v10749_v33 = vld [vmem:[#allocation4_spill] sm:$0xff] }
 0x7de   :  { %2153 = vrot.lane.b32.xlu0 %v6840_v9, %s7506_s23  ;;  %v6842_v12 = vpop.eup %6841  ;;  %v2070_v2 = vpop.permute.xlu1 %2069  ;;  %v1920_v9 = vrot.slane %v10749_v33, 7 }
 0x7df   :  { %10745 = vst [vmem:[#allocation7_spill] sm:$0xff] %v8622_v43  ;;  %6851 = vtanh.f32 %v8622_v43  ;;  %2157 = vrot.lane.b32.xlu1 %v6842_v12, %s7506_s23  ;;  %v8637_v14 = vadd.f32 %v2070_v2, %v1951_v13 }
 0x7e0   :  { %v2086_v28 = vpop.permute.xlu0 %2085  ;;  %6853 = vtanh.f32 %v8626_v46  ;;  %v1952_v37 = vmul.f32 %v8555_v20, %v1920_v9 }
 0x7e1   :  { %v6844_v59 = vpop.eup %6843  ;;  %v8633_v47 = vadd.f32 %v2086_v28, %v1959_v26  ;;  %10750 = vst [vmem:[#allocation9_spill] sm:$0xff] %v8637_v14 }
 0x7e2   :  { %2159 = vrot.lane.b32.xlu0 %v6844_v59, %s7506_s23  ;;  %v6846_v48 = vpop.eup %6845  ;;  %v2072_v5 = vpop.permute.xlu1 %2071  ;;  %v1960_v59 = vmul.f32 %v8559_v61, %v1928_v32 }
 0x7e3   :  { %10748 = vst [vmem:[#allocation8_spill] sm:$0xff] %v8633_v47  ;;  %6855 = vtanh.f32 %v8633_v47  ;;  %2171 = vrot.lane.b32.xlu1 %v6846_v48, %s7506_s23  ;;  %v8645_v26 = vadd.f32 %v2072_v5, %v1952_v37 }
 0x7e4   :  { %6857 = vtanh.f32 %v8637_v14 }
 0x7e5   :  { %v6848_v24 = vpop.eup %6847  ;;  %10752 = vst [vmem:[#allocation3_spill] sm:$0xff] %v8645_v26  ;;  %6859 = vtanh.f32 %v8645_v26 }
 0x7e6   :  { %2161 = vrot.lane.b32.xlu0 %v6848_v24, %s7506_s23  ;;  %v6850_v12 = vpop.eup %6849  ;;  %v2088_v13 = vpop.permute.xlu1 %2087 }
 0x7e7   :  { %2175 = vrot.lane.b32.xlu1 %v6850_v12, %s7506_s23  ;;  %v8651_v48 = vadd.f32 %v2088_v13, %v1960_v59 }
 0x7e9   :  { %v6852_v28 = vpop.eup %6851  ;;  %10753 = vst [vmem:[#allocation4_spill] sm:$0xff] %v8651_v48  ;;  %6861 = vtanh.f32 %v8651_v48 }
 0x7ea   :  { %2163 = vrot.lane.b32.xlu0 %v6852_v28, %s7506_s23  ;;  %v6854_v2 = vpop.eup %6853 }
 0x7eb   :  { %2155 = vrot.lane.b32.xlu1 %v6854_v2, %s7506_s23 }
 0x7ed   :  { %v6856_v33 = vpop.eup %6855 }
 0x7ee   :  { %2181 = vrot.lane.b32.xlu0 %v6856_v33, %s7506_s23  ;;  %v6858_v9 = vpop.eup %6857 }
 0x7ef   :  { %2165 = vrot.lane.b32.xlu1 %v6858_v9, %s7506_s23  ;;  %v6860_v24 = vpop.eup %6859 }
 0x7f3   :  { %2167 = vrot.lane.b32.xlu1 %v6860_v24, %s7506_s23  ;;  %v6862_v37 = vpop.eup %6861 }
 0x7f7   :  { %2183 = vrot.lane.b32.xlu1 %v6862_v37, %s7506_s23 }
 0x844   :  { %v2170_v5 = vpop.permute.xlu0 %2169 }
 0x845   :  { %v2174_v32 = vpop.permute.xlu1 %2173  ;;  %v2209_v9 = vmul.f32 %v8490_v19, %v2170_v5 }
 0x847   :  { %v2247_v14 = vrot.slane %v2209_v9, 2 }
 0x848   :  { %v2178_v12 = vpop.permute.xlu0 %2177 }
 0x84c   :  { %v2180_v53 = vpop.permute.xlu0 %2179 }
 0x850   :  { %v2154_v28 = vpop.permute.xlu0 %2153 }
 0x851   :  { %v2158_v59 = vpop.permute.xlu1 %2157  ;;  %v2201_v44 = vmul.f32 %v8515_v17, %v2154_v28 }
 0x854   :  { %v2160_v13 = vpop.permute.xlu0 %2159 }
 0x855   :  { %v2172_v2 = vpop.permute.xlu1 %2171  ;;  %v2204_v26 = vmul.f32 %v8522_v34, %v2160_v13  ;;  %v2213_v34 = vmul.f32 %v8503_v15, %v2178_v12 }
 0x856   :  { %v2210_v33 = vmul.f32 %v8526_v8, %v2172_v2  ;;  %v2233_v8 = vrot.slane %v2201_v44, 2 }
 0x857   :  { %v2237_v17 = vrot.slane %v2204_v26, 7  ;;  %v2253_v15 = vrot.slane %v2213_v34, 6 }
 0x858   :  { %v2162_v63 = vpop.permute.xlu0 %2161  ;;  %v2248_v48 = vrot.slane %v2210_v33, 1  ;;  %v2211_v33 = vmul.f32 %v8499_v41, %v2174_v32 }
 0x859   :  { %v2176_v56 = vpop.permute.xlu1 %2175  ;;  %v2205_v46 = vmul.f32 %v8530_v42, %v2162_v63 }
 0x85a   :  { %v2212_v37 = vmul.f32 %v8534_v10, %v2176_v56  ;;  %v2249_v2 = vsel %vm1013_vm2, %v2248_v48, %v2247_v14  ;;  %v2203_v56 = vmul.f32 %v8518_v36, %v2158_v59  ;;  %v2214_v14 = vmul.f32 %v8509_v23, %v2180_v53 }
 0x85b   :  { %v2239_v63 = vrot.slane %v2205_v46, 6  ;;  %v2250_v44 = vsel %vm1016_vm3, %v2211_v33, %v2249_v2 }
 0x85c   :  { %v2164_v24 = vpop.permute.xlu0 %2163  ;;  %v2251_v19 = vrot.slane %v2212_v37, 7  ;;  %v2255_v59 = vrot.slane %v2214_v14, 5 }
 0x85d   :  { %v2156_v47 = vpop.permute.xlu1 %2155  ;;  %v2206_v43 = vmul.f32 %v8538_v27, %v2164_v24 }
 0x85e   :  { %v2202_v6 = vmul.f32 %v8542_v22, %v2156_v47  ;;  %v2252_v41 = vsel %vm1019_vm4, %v2251_v19, %v2250_v44 }
 0x85f   :  { %v2241_v27 = vrot.slane %v2206_v43, 5  ;;  %v2254_v12 = vsel %vm1022_vm5, %v2253_v15, %v2252_v41 }
 0x860   :  { %v2234_v5 = vrot.slane %v2202_v6, 1  ;;  %v2182_v28 = vpop.permute.xlu0 %2181  ;;  %v2256_v24 = vsel %vm1025_vm6, %v2255_v59, %v2254_v12 }
 0x861   :  { %v2166_v10 = vpop.permute.xlu1 %2165  ;;  %v2215_v6 = vmul.f32 %v8546_v30, %v2182_v28 }
 0x862   :  { %v2235_v42 = vsel %vm1013_vm2, %v2234_v5, %v2233_v8  ;;  %v2207_v22 = vmul.f32 %v8550_v49, %v2166_v10 }
 0x863   :  { %v2236_v47 = vsel %vm1016_vm3, %v2203_v56, %v2235_v42  ;;  %v2257_v32 = vrot.slane %v2215_v6, 4 }
 0x864   :  { %v2238_v36 = vsel %vm1019_vm4, %v2237_v17, %v2236_v47  ;;  %v2243_v26 = vrot.slane %v2207_v22, 4 }
 0x865   :  { %v2240_v46 = vsel %vm1022_vm5, %v2239_v63, %v2238_v36  ;;  %v2168_v48 = vpop.permute.xlu1 %2167 }
 0x866   :  { %v2208_v49 = vmul.f32 %v8555_v20, %v2168_v48  ;;  %v2242_v43 = vsel %vm1025_vm6, %v2241_v27, %v2240_v46  ;;  %v2258_v20 = vsel %vm1028_vm7, %v2257_v32, %v2256_v24 }
 0x867   :  { %v2244_v30 = vsel %vm1028_vm7, %v2243_v26, %v2242_v43 }
 0x868   :  { %v2245_v23 = vrot.slane %v2208_v49, 3 }
 0x869   :  { %v2184_v53 = vpop.permute.xlu1 %2183 }
 0x86a   :  { %v2216_v13 = vmul.f32 %v8559_v61, %v2184_v53  ;;  %v8686_v9 = vsel %vm1031_vm8, %v2245_v23, %v2244_v30 }
 0x86b   :  { %10754 = vst [vmem:[#allocation10_spill] sm:$0xff] %v8686_v9  ;;  %2261 = vrot.lane.b32.xlu0 %v8686_v9, %s7507_s24 }
 0x86c   :  { %v2259_v37 = vrot.slane %v2216_v13, 3 }
 0x86e   :  { %v8693_v8 = vsel %vm1031_vm8, %v2259_v37, %v2258_v20 }
 0x86f   :  { %10755 = vst [vmem:[#allocation14_spill] sm:$0xff] %v8693_v8  ;;  %2263 = vrot.lane.b32.xlu1 %v8693_v8, %s7507_s24 }
 0x8dd   :  { %v2262_v61 = vpop.permute.xlu0 %2261 }
 0x8de   :  { %6237 = vmatprep.mubr.msk.f32.mxu1 %vm75_vm0, %v2262_v61 }
 0x8e1   :  { %v2264_v19 = vpop.permute.xlu1 %2263 }
 0x8e2   :  { %6238 = vmatmul.mubr.msk.f32.vlgmr.msra.gmra.mrb[6].mxu1 %vm75_vm0, %v2264_v19 }
 0x8e3   :  { %6299 = vmatpush3.bf16.msra.mxu1 %v7606_v16 }
 0x8e4   :  { %6301 = vmatprep.subr.bf16.mxu1 %v7606_v16 }
 0x9b5   :  { %v8703_v5 = vpop.f32.mrb[6].mxu1 }
 0x9b6   :  { %v2335_v17 = vpop.f32.mrb[7].mxu1  ;;  %v2354_v28 = vrot.slane %v8703_v5, 6  ;;  %v2357_v33 = vrot.slane %v8703_v5, 2  ;;  %v8712_v34 = vadd.f32 %v8703_v5, %v7808_v25  ;;  %v2353_v6 = vrot.slane %v8703_v5, 5 }
 0x9b7   :  { %v2346_v63 = vrot.slane %v2335_v17, 5  ;;  %v2348_v27 = vrot.slane %v2335_v17, 7  ;;  %v8727_v14 = vadd.f32 %v2335_v17, %v7753_v57  ;;  %v2349_v41 = vrot.slane %v2335_v17, 1 }
 0x9b8   :  { %v8708_v56 = vadd.f32 %v2354_v28, %v7794_v18  ;;  %v8715_v10 = vadd.f32 %v2357_v33, %v7826_v35  ;;  %v2355_v15 = vrot.slane %v8703_v5, 7  ;;  %v8736_v26 = vadd.f32 %v2353_v6, %v7800_v21 }
 0x9b9   :  { %v8722_v44 = vadd.f32 %v2346_v63, %v7742_v52  ;;  %v8731_v36 = vadd.f32 %v2348_v27, %v7758_v60  ;;  %v2350_v46 = vrot.slane %v2335_v17, 2  ;;  %v8740_v48 = vadd.f32 %v2349_v41, %v7773_v4 }
 0x9ba   :  { %6863 = vtanh.f32 %v8708_v56  ;;  %v2356_v49 = vrot.slane %v8703_v5, 1  ;;  %v8745_v43 = vadd.f32 %v2355_v15, %v7811_v29  ;;  %v2351_v12 = vrot.slane %v2335_v17, 3 }
 0x9bb   :  { %6865 = vtanh.f32 %v8712_v34  ;;  %v8749_v32 = vadd.f32 %v2350_v46, %v7769_v1  ;;  %v2347_v23 = vrot.slane %v2335_v17, 6  ;;  %v2358_v53 = vrot.slane %v8703_v5, 3 }
 0x9bc   :  { %6867 = vtanh.f32 %v8715_v10  ;;  %v8753_v59 = vadd.f32 %v2356_v49, %v7831_v38  ;;  %v8759_v13 = vadd.f32 %v2351_v12, %v7786_v11  ;;  %v2352_v37 = vrot.slane %v2335_v17, 4 }
 0x9bd   :  { %6869 = vtanh.f32 %v8722_v44  ;;  %v8765_v61 = vadd.f32 %v2347_v23, %v7739_v50  ;;  %v8769_v19 = vadd.f32 %v2358_v53, %v7851_v54  ;;  %v2359_v63 = vrot.slane %v8703_v5, 4 }
 0x9be   :  { %6871 = vtanh.f32 %v8727_v14  ;;  %v5926_v49 = vmul.f32 -1.442695, %v8708_v56  ;;  %v5928_v12 = vmul.f32 -1.442695, %v8712_v34  ;;  %v5925_v34 = vmul.f32 -1.442695, %v8736_v26 }
 0x9bf   :  { %6873 = vtanh.f32 %v8731_v36  ;;  %v8782_v27 = vadd.f32 %v2359_v63, %v7855_v58  ;;  %v5919_v63 = vmul.f32 -1.442695, %v8731_v36  ;;  %v5929_v36 = vmul.f32 -1.442695, %v8753_v59 }
 0x9c0   :  { %6875 = vtanh.f32 %v8736_v26  ;;  %v5923_v26 = vmul.f32 -1.442695, %v8759_v13 }
 0x9c1   :  { %6877 = vtanh.f32 %v8740_v48 }
 0x9c2   :  { %6879 = vtanh.f32 %v8745_v43 }
 0x9c3   :  { %6881 = vtanh.f32 %v8749_v32 }
 0x9c4   :  { %v6864_v42 = vpop.eup %6863  ;;  %6883 = vtanh.f32 %v8753_v59  ;;  %v5918_v59 = vmul.f32 -1.442695, %v8765_v61 }
 0x9c5   :  { %2602 = vrot.lane.b32.xlu0 %v6864_v42, %s7504_s0  ;;  %v6866_v22 = vpop.eup %6865  ;;  %6885 = vtanh.f32 %v8759_v13  ;;  %v8775_v42 = vadd.f32 %v2352_v37, %v7834_v40 }
 0x9c6   :  { %2606 = vrot.lane.b32.xlu1 %v6866_v22, %s7504_s0  ;;  %v6868_v47 = vpop.eup %6867  ;;  %6887 = vtanh.f32 %v8765_v61 }
 0x9c7   :  { %v6870_v30 = vpop.eup %6869  ;;  %6889 = vtanh.f32 %v8769_v19 }
 0x9c8   :  { %v6872_v24 = vpop.eup %6871  ;;  %6891 = vtanh.f32 %v8775_v42 }
 0x9c9   :  { %2610 = vrot.lane.b32.xlu0 %v6868_v47, %s7504_s0  ;;  %v6874_v20 = vpop.eup %6873  ;;  %6893 = vtanh.f32 %v8782_v27 }
 0x9ca   :  { %2590 = vrot.lane.b32.xlu1 %v6872_v24, %s7504_s0  ;;  %v6876_v28 = vpop.eup %6875  ;;  %6895 = vpow2.f32 %v5926_v49  ;;  %v5917_v24 = vmul.f32 -1.442695, %v8722_v44  ;;  %v5927_v44 = vmul.f32 -1.442695, %v8745_v43 }
 0x9cb   :  { %v6878_v33 = vpop.eup %6877  ;;  %6897 = vpow2.f32 %v5928_v12 }
 0x9cc   :  { %v6880_v17 = vpop.eup %6879 }
 0x9cd   :  { %2584 = vrot.lane.b32.xlu0 %v6870_v30, %s7504_s0  ;;  %v6882_v22 = vpop.eup %6881  ;;  %v5930_v30 = vmul.f32 -1.442695, %v8715_v10  ;;  %v5921_v10 = vmul.f32 -1.442695, %v8740_v48 }
 0x9ce   :  { %2600 = vrot.lane.b32.xlu1 %v6876_v28, %s7504_s0  ;;  %v6884_v5 = vpop.eup %6883 }
 0x9cf   :  { %v6886_v47 = vpop.eup %6885  ;;  %6899 = vpow2.f32 %v5930_v30 }
 0x9d0   :  { %v6888_v6 = vpop.eup %6887  ;;  %6901 = vpow2.f32 %v5917_v24  ;;  %v5924_v24 = vmul.f32 -1.442695, %v8775_v42 }
 0x9d1   :  { %2588 = vrot.lane.b32.xlu0 %v6874_v20, %s7504_s0  ;;  %v6890_v41 = vpop.eup %6889 }
 0x9d2   :  { %2604 = vrot.lane.b32.xlu1 %v6880_v17, %s7504_s0  ;;  %v6892_v15 = vpop.eup %6891  ;;  %v5922_v17 = vmul.f32 -1.442695, %v8749_v32  ;;  %v5931_v32 = vmul.f32 -1.442695, %v8769_v19 }
 0x9d3   :  { %v6894_v46 = vpop.eup %6893 }
 0x9d4   :  { %v6896_v23 = vpop.eup %6895 }
 0x9d5   :  { %2592 = vrot.lane.b32.xlu0 %v6878_v33, %s7504_s0  ;;  %v6898_v53 = vpop.eup %6897  ;;  %v2449_v20 = vadd.f32 1.0, %v6896_v23  ;;  %v5920_v33 = vmul.f32 -1.442695, %v8727_v14 }
 0x9d6   :  { %2608 = vrot.lane.b32.xlu1 %v6884_v5, %s7504_s0  ;;  %v2451_v28 = vadd.f32 1.0, %v6898_v53 }
 0x9d7   :  { %6903 = vrcp.f32 %v2449_v20 }
 0x9d8   :  { %6905 = vrcp.f32 %v2451_v28 }
 0x9d9   :  { %2594 = vrot.lane.b32.xlu0 %v6882_v22, %s7504_s0  ;;  %v6900_v37 = vpop.eup %6899  ;;  %6907 = vpow2.f32 %v5920_v33  ;;  %v5932_v33 = vmul.f32 -1.442695, %v8782_v27 }
 0x9da   :  { %2586 = vrot.lane.b32.xlu1 %v6888_v6, %s7504_s0  ;;  %v2453_v56 = vadd.f32 1.0, %v6900_v37  ;;  %6909 = vpow2.f32 %v5919_v63  ;;  %v6902_v14 = vpop.eup %6901 }
 0x9db   :  { %v2440_v43 = vadd.f32 1.0, %v6902_v14 }
 0x9dc   :  { %6911 = vrcp.f32 %v2453_v56 }
 0x9dd   :  { %2596 = vrot.lane.b32.xlu0 %v6886_v47, %s7504_s0  ;;  %6913 = vpow2.f32 %v5925_v34 }
 0x9de   :  { %2598 = vrot.lane.b32.xlu1 %v6892_v15, %s7504_s0  ;;  %6915 = vpow2.f32 %v5921_v10 }
 0x9df   :  { %6917 = vpow2.f32 %v5927_v44 }
 0x9e0   :  { %6919 = vpow2.f32 %v5922_v17 }
 0x9e1   :  { %2612 = vrot.lane.b32.xlu0 %v6890_v41, %s7504_s0  ;;  %v8803_v22 = vpop.eup %6903  ;;  %6921 = vpow2.f32 %v5929_v36 }
 0x9e2   :  { %2614 = vrot.lane.b32.xlu1 %v6894_v46, %s7504_s0  ;;  %v8806_v47 = vpop.eup %6905  ;;  %6923 = vpow2.f32 %v5923_v26 }
 0x9e3   :  { %v6908_v6 = vpop.eup %6907  ;;  %6925 = vrcp.f32 %v2440_v43 }
 0x9e4   :  { %v6910_v15 = vpop.eup %6909  ;;  %v2443_v13 = vadd.f32 1.0, %v6908_v6  ;;  %6927 = vpow2.f32 %v5931_v32 }
 0x9e5   :  { %v2442_v53 = vadd.f32 1.0, %v6910_v15  ;;  %6929 = vpow2.f32 %v5918_v59 }
 0x9e6   :  { %v8813_v49 = vpop.eup %6911  ;;  %6931 = vrcp.f32 %v2443_v13 }
 0x9e7   :  { %v6914_v23 = vpop.eup %6913  ;;  %6933 = vrcp.f32 %v2442_v53 }
 0x9e8   :  { %v6916_v19 = vpop.eup %6915  ;;  %v2448_v20 = vadd.f32 1.0, %v6914_v23  ;;  %6935 = vpow2.f32 %v5924_v24 }
 0x9e9   :  { %v6918_v61 = vpop.eup %6917  ;;  %v2444_v37 = vadd.f32 1.0, %v6916_v19 }
 0x9ea   :  { %v6920_v28 = vpop.eup %6919  ;;  %6937 = vrcp.f32 %v2448_v20  ;;  %v2450_v63 = vadd.f32 1.0, %v6918_v61 }
 0x9eb   :  { %v6922_v56 = vpop.eup %6921  ;;  %6939 = vrcp.f32 %v2444_v37  ;;  %v2445_v34 = vadd.f32 1.0, %v6920_v28 }
 0x9ec   :  { %v6924_v10 = vpop.eup %6923  ;;  %6941 = vpow2.f32 %v5932_v33  ;;  %v2452_v36 = vadd.f32 1.0, %v6922_v56 }
 0x9ed   :  { %v8821_v44 = vpop.eup %6925  ;;  %6943 = vrcp.f32 %v2450_v63  ;;  %v2446_v26 = vadd.f32 1.0, %v6924_v10 }
 0x9ee   :  { %v6928_v42 = vpop.eup %6927  ;;  %6945 = vrcp.f32 %v2445_v34 }
 0x9ef   :  { %6947 = vrcp.f32 %v2452_v36  ;;  %v2454_v59 = vadd.f32 1.0, %v6928_v42 }
 0x9f0   :  { %6949 = vrcp.f32 %v2446_v26 }
 0xa37   :  { %v2603_v5 = vpop.permute.xlu0 %2602 }
 0xa38   :  { %v2641_v48 = vmul.f32 %v8803_v22, %v2603_v5  ;;  %v2607_v41 = vpop.permute.xlu1 %2606  ;;  %v6930_v5 = vpop.eup %6929 }
 0xa39   :  { %v2643_v46 = vmul.f32 %v8806_v47, %v2607_v41  ;;  %v8824_v27 = vpop.eup %6931  ;;  %v2441_v32 = vadd.f32 1.0, %v6930_v5 }
 0xa3a   :  { %2682 = vrot.lane.b32.xlu0 %v2641_v48, %s7505_s5  ;;  %v8827_v6 = vpop.eup %6933 }
 0xa3b   :  { %v2611_v12 = vpop.permute.xlu0 %2610  ;;  %2686 = vrot.lane.b32.xlu1 %v2643_v46, %s7505_s5  ;;  %v6936_v46 = vpop.eup %6935  ;;  %6951 = vrcp.f32 %v2441_v32 }
 0xa3c   :  { %v2645_v30 = vmul.f32 %v8813_v49, %v2611_v12  ;;  %v2591_v48 = vpop.permute.xlu1 %2590  ;;  %v8832_v12 = vpop.eup %6937  ;;  %v2447_v24 = vadd.f32 1.0, %v6936_v46  ;;  %6953 = vrcp.f32 %v2454_v59 }
 0xa3d   :  { %v2635_v41 = vmul.f32 %v8824_v27, %v2591_v48 }
 0xa3e   :  { %2690 = vrot.lane.b32.xlu0 %v2645_v30, %s7505_s5  ;;  %v8835_v30 = vpop.eup %6939  ;;  %6955 = vrcp.f32 %v2447_v24  ;;  %v2529_v24 = vrot.slane %v8605_v31, 7 }
 0xa3f   :  { %v2585_v17 = vpop.permute.xlu0 %2584  ;;  %2670 = vrot.lane.b32.xlu1 %v2635_v41, %s7505_s5  ;;  %v6942_v20 = vpop.eup %6941 }
 0xa40   :  { %v2632_v14 = vmul.f32 %v8821_v44, %v2585_v17  ;;  %v2601_v13 = vpop.permute.xlu1 %2600  ;;  %v8840_v61 = vpop.eup %6943  ;;  %v2455_v34 = vadd.f32 1.0, %v6942_v20  ;;  %v2531_v20 = vrot.slane %v8615_v3, 7 }
 0xa41   :  { %v2640_v23 = vmul.f32 %v8832_v12, %v2601_v13  ;;  %v8843_v28 = vpop.eup %6945 }
 0xa42   :  { %2664 = vrot.lane.b32.xlu0 %v2632_v14, %s7505_s5  ;;  %v8848_v10 = vpop.eup %6947  ;;  %6957 = vrcp.f32 %v2455_v34 }
 0xa43   :  { %v2589_v43 = vpop.permute.xlu0 %2588  ;;  %2680 = vrot.lane.b32.xlu1 %v2640_v23, %s7505_s5  ;;  %v8851_v42 = vpop.eup %6949 }
 0xa44   :  { %v2634_v15 = vmul.f32 %v8827_v6, %v2589_v43  ;;  %v2605_v37 = vpop.permute.xlu1 %2604 }
 0xa45   :  { %v2642_v33 = vmul.f32 %v8840_v61, %v2605_v37  ;;  %v8856_v26 = vpop.eup %6951  ;;  %v2561_v37 = vmul.f32 %v8803_v22, %v2529_v24 }
 0xa46   :  { %2668 = vrot.lane.b32.xlu0 %v2634_v15, %s7505_s5  ;;  %v8859_v41 = vpop.eup %6953 }
 0xa47   :  { %v2593_v53 = vpop.permute.xlu0 %2592  ;;  %2684 = vrot.lane.b32.xlu1 %v2642_v33, %s7505_s5 }
 0xa48   :  { %v2636_v19 = vmul.f32 %v8835_v30, %v2593_v53  ;;  %v2609_v17 = vpop.permute.xlu1 %2608  ;;  %v8864_v46 = vpop.eup %6955 }
 0xa49   :  { %v2644_v14 = vmul.f32 %v8848_v10, %v2609_v17 }
 0xa4a   :  { %2672 = vrot.lane.b32.xlu0 %v2636_v19, %s7505_s5 }
 0xa4b   :  { %v2595_v63 = vpop.permute.xlu0 %2594  ;;  %2688 = vrot.lane.b32.xlu1 %v2644_v14, %s7505_s5 }
 0xa4c   :  { %v2637_v56 = vmul.f32 %v8843_v28, %v2595_v63  ;;  %v2587_v48 = vpop.permute.xlu1 %2586  ;;  %v8869_v23 = vpop.eup %6957  ;;  %v2533_v63 = vrot.slane %v8581_v7, 7  ;;  %v2520_v7 = vrot.slane %v8590_v62, 7 }
 0xa4d   :  { %v2633_v43 = vmul.f32 %v8856_v26, %v2587_v48 }
 0xa4e   :  { %2674 = vrot.lane.b32.xlu0 %v2637_v56, %s7505_s5  ;;  %v2563_v56 = vmul.f32 %v8806_v47, %v2531_v20  ;;  %v2528_v20 = vrot.slane %v8565_v51, 7 }
 0xa4f   :  { %v2597_v36 = vpop.permute.xlu0 %2596  ;;  %2666 = vrot.lane.b32.xlu1 %v2633_v43, %s7505_s5  ;;  %v2552_v43 = vmul.f32 %v8821_v44, %v2520_v7 }
 0xa50   :  { %v2638_v5 = vmul.f32 %v8851_v42, %v2597_v36  ;;  %v2599_v59 = vpop.permute.xlu1 %2598  ;;  %v2565_v36 = vmul.f32 %v8813_v49, %v2533_v63 }
 0xa51   :  { %v2639_v13 = vmul.f32 %v8864_v46, %v2599_v59 }
 0xa52   :  { %2676 = vrot.lane.b32.xlu0 %v2638_v5, %s7505_s5 }
 0xa53   :  { %v2613_v15 = vpop.permute.xlu0 %2612  ;;  %2678 = vrot.lane.b32.xlu1 %v2639_v13, %s7505_s5  ;;  %v2522_v13 = vrot.slane %v8594_v45, 7  ;;  %v2560_v45 = vmul.f32 %v8832_v12, %v2528_v20 }
 0xa54   :  { %v2646_v32 = vmul.f32 %v8859_v41, %v2613_v15  ;;  %v2615_v53 = vpop.permute.xlu1 %2614  ;;  %v2523_v15 = vrot.slane %v8601_v55, 7 }
 0xa55   :  { %v2647_v19 = vmul.f32 %v8869_v23, %v2615_v53  ;;  %v2554_v24 = vmul.f32 %v8827_v6, %v2522_v13 }
 0xa56   :  { %2692 = vrot.lane.b32.xlu0 %v2646_v32, %s7505_s5 }
 0xa57   :  { %2694 = vrot.lane.b32.xlu1 %v2647_v19, %s7505_s5  ;;  %v2555_v19 = vmul.f32 %v8824_v27, %v2523_v15 }
 0xaac   :  { %v2683_v33 = vpop.permute.xlu0 %2682 }
 0xaad   :  { %v8878_v34 = vadd.f32 %v2683_v33, %v2561_v37  ;;  %v2687_v17 = vpop.permute.xlu1 %2686  ;;  %v2524_v33 = vrot.slane %v8612_v39, 7 }
 0xaae   :  { %v8880_v14 = vadd.f32 %v2687_v17, %v2563_v56 }
 0xaaf   :  { %6959 = vtanh.f32 %v8878_v34  ;;  %v2556_v17 = vmul.f32 %v8835_v30, %v2524_v33 }
 0xab0   :  { %v2691_v5 = vpop.permute.xlu0 %2690  ;;  %6961 = vtanh.f32 %v8880_v14 }
 0xab1   :  { %v8885_v31 = vadd.f32 %v2691_v5, %v2565_v36  ;;  %v2671_v62 = vpop.permute.xlu1 %2670  ;;  %v2530_v36 = vrot.slane %v8571_v0, 7 }
 0xab2   :  { %v8901_v55 = vadd.f32 %v2671_v62, %v2555_v19  ;;  %v10760_v62 = vld [vmem:[#allocation9_spill] sm:$0xff] }
 0xab3   :  { %10756 = vst [vmem:[#allocation15_spill] sm:$0xff] %v8885_v31  ;;  %6963 = vtanh.f32 %v8885_v31  ;;  %v2562_v39 = vmul.f32 %v8840_v61, %v2530_v36 }
 0xab4   :  { %v2665_v32 = vpop.permute.xlu0 %2664  ;;  %10757 = vst [vmem:[#allocation16_spill] sm:$0xff] %v8901_v55 }
 0xab5   :  { %v8894_v53 = vadd.f32 %v2665_v32, %v2552_v43  ;;  %v2681_v56 = vpop.permute.xlu1 %2680  ;;  %v10759_v32 = vld [vmem:[#allocation13_spill] sm:$0xff] }
 0xab6   :  { %v8911_v5 = vadd.f32 %v2681_v56, %v2560_v45 }
 0xab7   :  { %6965 = vtanh.f32 %v8894_v53 }
 0xab8   :  { %v2669_v37 = vpop.permute.xlu0 %2668  ;;  %6967 = vtanh.f32 %v8901_v55 }
 0xab9   :  { %v6960_v3 = vpop.eup %6959  ;;  %v8904_v63 = vadd.f32 %v2669_v37, %v2554_v24  ;;  %v2685_v43 = vpop.permute.xlu1 %2684  ;;  %v2526_v24 = vrot.slane %v10760_v62, 7  ;;  %v10765_v62 = vld [vmem:[#allocation3_spill] sm:$0xff] }
 0xaba   :  { %2778 = vrot.lane.b32.xlu0 %v6960_v3, %s7506_s23  ;;  %v6962_v48 = vpop.eup %6961  ;;  %v10758_v3 = vld [vmem:[#allocation7_spill] sm:$0xff]  ;;  %v8921_v13 = vadd.f32 %v2685_v43, %v2562_v39  ;;  %v10763_v39 = vld [vmem:[#allocation8_spill] sm:$0xff] }
 0xabb   :  { %2782 = vrot.lane.b32.xlu1 %v6962_v48, %s7506_s23  ;;  %6969 = vtanh.f32 %v8904_v63  ;;  %v2525_v7 = vrot.slane %v10758_v3, 7  ;;  %v2558_v45 = vmul.f32 %v8851_v42, %v2526_v24  ;;  %v2534_v43 = vrot.slane %v10763_v39, 7 }
 0xabc   :  { %v2673_v51 = vpop.permute.xlu0 %2672  ;;  %6971 = vtanh.f32 %v8911_v5  ;;  %v2527_v24 = vrot.slane %v10765_v62, 7 }
 0xabd   :  { %v6964_v59 = vpop.eup %6963  ;;  %v8914_v48 = vadd.f32 %v2673_v51, %v2556_v17  ;;  %v2557_v15 = vmul.f32 %v8843_v28, %v2525_v7  ;;  %v2689_v33 = vpop.permute.xlu1 %2688  ;;  %v10761_v17 = vld [vmem:[#allocation2_spill] sm:$0xff] }
 0xabe   :  { %2786 = vrot.lane.b32.xlu0 %v6964_v59, %s7506_s23  ;;  %v2532_v59 = vrot.slane %v10759_v32, 7  ;;  %v2521_v36 = vrot.slane %v10761_v17, 7  ;;  %v2559_v17 = vmul.f32 %v8864_v46, %v2527_v24 }
 0xabf   :  { %6973 = vtanh.f32 %v8914_v48 }
 0xac0   :  { %v2675_v0 = vpop.permute.xlu0 %2674  ;;  %6975 = vtanh.f32 %v8921_v13  ;;  %v2564_v37 = vmul.f32 %v8848_v10, %v2532_v59  ;;  %v2553_v32 = vmul.f32 %v8856_v26, %v2521_v36 }
 0xac1   :  { %v6966_v19 = vpop.eup %6965  ;;  %v8924_v20 = vadd.f32 %v2675_v0, %v2557_v15  ;;  %v2667_v59 = vpop.permute.xlu1 %2666  ;;  %v2566_v0 = vmul.f32 %v8859_v41, %v2534_v43 }
 0xac2   :  { %2760 = vrot.lane.b32.xlu0 %v6966_v19, %s7506_s23  ;;  %v6968_v56 = vpop.eup %6967  ;;  %v8932_v51 = vadd.f32 %v2689_v33, %v2564_v37  ;;  %v8944_v37 = vadd.f32 %v2667_v59, %v2553_v32 }
 0xac3   :  { %6977 = vtanh.f32 %v8924_v20  ;;  %2766 = vrot.lane.b32.xlu1 %v6968_v56, %s7506_s23 }
 0xac4   :  { %10762 = vst [vmem:[#allocation7_spill] sm:$0xff] %v8932_v51  ;;  %v2677_v3 = vpop.permute.xlu0 %2676  ;;  %6979 = vtanh.f32 %v8932_v51  ;;  %10766 = vst [vmem:[#allocation9_spill] sm:$0xff] %v8944_v37 }
 0xac5   :  { %v6970_v7 = vpop.eup %6969  ;;  %v8936_v15 = vadd.f32 %v2677_v3, %v2558_v45  ;;  %v2679_v36 = vpop.permute.xlu1 %2678 }
 0xac6   :  { %2764 = vrot.lane.b32.xlu0 %v6970_v7, %s7506_s23  ;;  %v6972_v19 = vpop.eup %6971  ;;  %v10768_v7 = vld [vmem:[#allocation4_spill] sm:$0xff]  ;;  %v8954_v43 = vadd.f32 %v2679_v36, %v2559_v17 }
 0xac7   :  { %10764 = vst [vmem:[#allocation13_spill] sm:$0xff] %v8936_v15  ;;  %6981 = vtanh.f32 %v8936_v15  ;;  %2776 = vrot.lane.b32.xlu1 %v6972_v19, %s7506_s23  ;;  %v2535_v39 = vrot.slane %v10768_v7, 7 }
 0xac8   :  { %v2693_v33 = vpop.permute.xlu0 %2692  ;;  %6983 = vtanh.f32 %v8944_v37  ;;  %10769 = vst [vmem:[#allocation8_spill] sm:$0xff] %v8954_v43 }
 0xac9   :  { %v6974_v56 = vpop.eup %6973  ;;  %v8947_v45 = vadd.f32 %v2693_v33, %v2566_v0  ;;  %v2567_v59 = vmul.f32 %v8869_v23, %v2535_v39  ;;  %v2695_v0 = vpop.permute.xlu1 %2694 }
 0xaca   :  { %2768 = vrot.lane.b32.xlu0 %v6974_v56, %s7506_s23  ;;  %v6976_v3 = vpop.eup %6975 }
 0xacb   :  { %10767 = vst [vmem:[#allocation2_spill] sm:$0xff] %v8947_v45  ;;  %6985 = vtanh.f32 %v8947_v45  ;;  %2780 = vrot.lane.b32.xlu1 %v6976_v3, %s7506_s23  ;;  %v8960_v62 = vadd.f32 %v2695_v0, %v2567_v59 }
 0xacc   :  { %6987 = vtanh.f32 %v8954_v43 }
 0xacd   :  { %v6978_v32 = vpop.eup %6977  ;;  %10770 = vst [vmem:[#allocation3_spill] sm:$0xff] %v8960_v62  ;;  %6989 = vtanh.f32 %v8960_v62 }
 0xace   :  { %2770 = vrot.lane.b32.xlu0 %v6978_v32, %s7506_s23  ;;  %v6980_v19 = vpop.eup %6979 }
 0xacf   :  { %2784 = vrot.lane.b32.xlu1 %v6980_v19, %s7506_s23 }
 0xad1   :  { %v6982_v24 = vpop.eup %6981 }
 0xad2   :  { %2772 = vrot.lane.b32.xlu0 %v6982_v24, %s7506_s23  ;;  %v6984_v33 = vpop.eup %6983 }
 0xad3   :  { %2762 = vrot.lane.b32.xlu1 %v6984_v33, %s7506_s23 }
 0xad5   :  { %v6986_v56 = vpop.eup %6985 }
 0xad6   :  { %2788 = vrot.lane.b32.xlu0 %v6986_v56, %s7506_s23  ;;  %v6988_v17 = vpop.eup %6987 }
 0xad7   :  { %2774 = vrot.lane.b32.xlu1 %v6988_v17, %s7506_s23  ;;  %v6990_v36 = vpop.eup %6989 }
 0xadb   :  { %2790 = vrot.lane.b32.xlu1 %v6990_v36, %s7506_s23 }
 0xb2c   :  { %v2779_v3 = vpop.permute.xlu0 %2778 }
 0xb2d   :  { %v2783_v39 = vpop.permute.xlu1 %2782  ;;  %v2817_v8 = vmul.f32 %v8803_v22, %v2779_v3 }
 0xb2e   :  { %v2819_v15 = vmul.f32 %v8806_v47, %v2783_v39 }
 0xb2f   :  { %v2855_v45 = vrot.slane %v2817_v8, 2 }
 0xb30   :  { %v2787_v7 = vpop.permute.xlu0 %2786 }
 0xb34   :  { %v2761_v32 = vpop.permute.xlu0 %2760 }
 0xb35   :  { %v2767_v59 = vpop.permute.xlu1 %2766  ;;  %v2808_v37 = vmul.f32 %v8821_v44, %v2761_v32  ;;  %v2821_v44 = vmul.f32 %v8813_v49, %v2787_v7 }
 0xb38   :  { %v2765_v0 = vpop.permute.xlu0 %2764 }
 0xb39   :  { %v2777_v19 = vpop.permute.xlu1 %2776  ;;  %v2810_v43 = vmul.f32 %v8827_v6, %v2765_v0  ;;  %v2840_v6 = vrot.slane %v2808_v37, 3  ;;  %v2862_v37 = vrot.slane %v2821_v44, 6 }
 0xb3a   :  { %v2816_v9 = vmul.f32 %v8832_v12, %v2777_v19 }
 0xb3c   :  { %v2769_v24 = vpop.permute.xlu0 %2768  ;;  %v2854_v62 = vrot.slane %v2816_v9, 3 }
 0xb3d   :  { %v2781_v2 = vpop.permute.xlu1 %2780 }
 0xb3e   :  { %v2818_v56 = vmul.f32 %v8840_v61, %v2781_v2  ;;  %v2856_v12 = vsel %vm1013_vm2, %v2855_v45, %v2854_v62  ;;  %v2812_v2 = vmul.f32 %v8835_v30, %v2769_v24  ;;  %v2811_v45 = vmul.f32 %v8824_v27, %v2767_v59 }
 0xb3f   :  { %v2843_v62 = vrot.slane %v2810_v43, 1 }
 0xb40   :  { %v2771_v33 = vpop.permute.xlu0 %2770  ;;  %v2857_v36 = vrot.slane %v2818_v56, 1 }
 0xb41   :  { %v2785_v17 = vpop.permute.xlu1 %2784  ;;  %v2813_v47 = vmul.f32 %v8843_v28, %v2771_v33 }
 0xb42   :  { %v2820_v55 = vmul.f32 %v8848_v10, %v2785_v17  ;;  %v2858_v9 = vsel %vm1016_vm3, %v2857_v36, %v2856_v12 }
 0xb43   :  { %v2848_v7 = vrot.slane %v2813_v47, 6 }
 0xb44   :  { %v2773_v51 = vpop.permute.xlu0 %2772  ;;  %v2860_v3 = vrot.slane %v2820_v55, 7 }
 0xb45   :  { %v2763_v31 = vpop.permute.xlu1 %2762  ;;  %v2814_v10 = vmul.f32 %v8851_v42, %v2773_v51 }
 0xb46   :  { %v2809_v22 = vmul.f32 %v8856_v26, %v2763_v31  ;;  %v2859_v26 = vsel %vm1019_vm4, %v2819_v15, %v2858_v9  ;;  %v2846_v31 = vrot.slane %v2812_v2, 7 }
 0xb47   :  { %v2861_v42 = vsel %vm1022_vm5, %v2860_v3, %v2859_v26  ;;  %v2850_v49 = vrot.slane %v2814_v10, 5 }
 0xb48   :  { %v2789_v61 = vpop.permute.xlu0 %2788  ;;  %v2841_v32 = vrot.slane %v2809_v22, 2 }
 0xb49   :  { %v2822_v8 = vmul.f32 %v8859_v41, %v2789_v61  ;;  %v2775_v30 = vpop.permute.xlu1 %2774 }
 0xb4a   :  { %v2842_v39 = vsel %vm1013_vm2, %v2841_v32, %v2840_v6  ;;  %v2815_v55 = vmul.f32 %v8864_v46, %v2775_v30  ;;  %v2863_v46 = vsel %vm1025_vm6, %v2862_v37, %v2861_v42 }
 0xb4b   :  { %v2844_v41 = vsel %vm1016_vm3, %v2843_v62, %v2842_v39  ;;  %v2864_v51 = vrot.slane %v2822_v8, 5 }
 0xb4c   :  { %v2845_v28 = vsel %vm1019_vm4, %v2811_v45, %v2844_v41  ;;  %v2852_v59 = vrot.slane %v2815_v55, 4 }
 0xb4d   :  { %v2847_v27 = vsel %vm1022_vm5, %v2846_v31, %v2845_v28  ;;  %v2791_v43 = vpop.permute.xlu1 %2790  ;;  %v2865_v24 = vsel %vm1028_vm7, %v2864_v51, %v2863_v46 }
 0xb4e   :  { %v2849_v15 = vsel %vm1025_vm6, %v2848_v7, %v2847_v27  ;;  %v2823_v0 = vmul.f32 %v8869_v23, %v2791_v43 }
 0xb4f   :  { %v2851_v19 = vsel %vm1028_vm7, %v2850_v49, %v2849_v15 }
 0xb50   :  { %v2866_v33 = vrot.slane %v2823_v0, 4  ;;  %v8998_v56 = vsel %vm1031_vm8, %v2852_v59, %v2851_v19 }
 0xb51   :  { %10771 = vst [vmem:[#allocation4_spill] sm:$0xff] %v8998_v56  ;;  %2868 = vrot.lane.b32.xlu0 %v8998_v56, %s7507_s24 }
 0xb52   :  { %v9003_v17 = vsel %vm1031_vm8, %v2866_v33, %v2865_v24 }
 0xb53   :  { %10772 = vst [vmem:[#allocation17_spill] sm:$0xff] %v9003_v17  ;;  %2870 = vrot.lane.b32.xlu1 %v9003_v17, %s7507_s24 }
 0xbc3   :  { %v2869_v23 = vpop.permute.xlu0 %2868 }
 0xbc4   :  { %6244 = vmatprep.mubr.msk.f32.mxu1 %vm75_vm0, %v2869_v23 }
 0xbc5   :  { %v2871_v36 = vpop.permute.xlu1 %2870 }
 0xbc6   :  { %6245 = vmatmul.mubr.msk.f32.vlgmr.msra.gmra.mrb[8].mxu1 %vm75_vm0, %v2871_v36 }
 0xbc7   :  { %6303 = vmatpush3.bf16.msra.mxu1 %v7606_v16 }
 0xbc8   :  { %6305 = vmatprep.subr.bf16.mxu1 %v7606_v16 }
 0xc99   :  { %v9011_v12 = vpop.f32.mrb[8].mxu1 }
 0xc9a   :  { %v2942_v2 = vpop.f32.mrb[9].mxu1  ;;  %v2961_v22 = vrot.slane %v9011_v12, 5  ;;  %v2962_v61 = vrot.slane %v9011_v12, 6  ;;  %v2960_v47 = vrot.slane %v9011_v12, 4  ;;  %v2963_v26 = vrot.slane %v9011_v12, 7 }
 0xc9b   :  { %v2953_v10 = vrot.slane %v2942_v2, 4  ;;  %v2955_v44 = vrot.slane %v2942_v2, 6  ;;  %v2957_v62 = vrot.slane %v2942_v2, 1  ;;  %v9033_v30 = vadd.f32 %v2942_v2, %v7773_v4 }
 0xc9c   :  { %v9016_v9 = vadd.f32 %v2961_v22, %v7794_v18  ;;  %v9019_v3 = vadd.f32 %v2962_v61, %v7811_v29  ;;  %v9038_v31 = vadd.f32 %v2960_v47, %v7800_v21  ;;  %v2958_v39 = vrot.slane %v2942_v2, 2 }
 0xc9d   :  { %v9025_v6 = vadd.f32 %v2953_v10, %v7742_v52  ;;  %v9029_v45 = vadd.f32 %v2955_v44, %v7758_v60  ;;  %v9042_v55 = vadd.f32 %v2957_v62, %v7769_v1  ;;  %v2964_v42 = vrot.slane %v9011_v12, 1 }
 0xc9e   :  { %6991 = vtanh.f32 %v9016_v9  ;;  %v9047_v41 = vadd.f32 %v2963_v26, %v7808_v25  ;;  %v2959_v49 = vrot.slane %v2942_v2, 3  ;;  %v9051_v51 = vadd.f32 %v2958_v39, %v7786_v11 }
 0xc9f   :  { %6993 = vtanh.f32 %v9019_v3  ;;  %v2965_v28 = vrot.slane %v9011_v12, 2  ;;  %v9056_v7 = vadd.f32 %v2964_v42, %v7826_v35  ;;  %v2954_v27 = vrot.slane %v2942_v2, 5 }
 0xca0   :  { %6995 = vtanh.f32 %v9025_v6  ;;  %v9061_v43 = vadd.f32 %v2959_v49, %v7834_v40  ;;  %v2956_v46 = vrot.slane %v2942_v2, 7  ;;  %v2966_v22 = vrot.slane %v9011_v12, 3 }
 0xca1   :  { %6997 = vtanh.f32 %v9029_v45  ;;  %v9065_v0 = vadd.f32 %v2965_v28, %v7851_v54  ;;  %v9071_v19 = vadd.f32 %v2954_v27, %v7739_v50  ;;  %v9086_v61 = vadd.f32 %v9011_v12, %v7831_v38 }
 0xca2   :  { %6999 = vtanh.f32 %v9033_v30  ;;  %v9078_v23 = vadd.f32 %v2956_v46, %v7753_v57  ;;  %v9092_v44 = vadd.f32 %v2966_v22, %v7855_v58  ;;  %v5944_v39 = vmul.f32 -1.442695, %v9016_v9 }
 0xca3   :  { %7001 = vtanh.f32 %v9038_v31  ;;  %v5945_v42 = vmul.f32 -1.442695, %v9019_v3  ;;  %v5940_v9 = vmul.f32 -1.442695, %v9042_v55  ;;  %v5946_v3 = vmul.f32 -1.442695, %v9047_v41 }
 0xca4   :  { %7003 = vtanh.f32 %v9042_v55 }
 0xca5   :  { %7005 = vtanh.f32 %v9047_v41  ;;  %v5949_v41 = vmul.f32 -1.442695, %v9065_v0 }
 0xca6   :  { %7007 = vtanh.f32 %v9051_v51 }
 0xca7   :  { %7009 = vtanh.f32 %v9056_v7 }
 0xca8   :  { %v6992_v8 = vpop.eup %6991  ;;  %7011 = vtanh.f32 %v9061_v43 }
 0xca9   :  { %3209 = vrot.lane.b32.xlu0 %v6992_v8, %s7504_s0  ;;  %v6994_v32 = vpop.eup %6993  ;;  %7013 = vtanh.f32 %v9065_v0  ;;  %v5938_v0 = vmul.f32 -1.442695, %v9078_v23 }
 0xcaa   :  { %v6996_v37 = vpop.eup %6995  ;;  %7015 = vtanh.f32 %v9071_v19 }
 0xcab   :  { %v6998_v15 = vpop.eup %6997  ;;  %7017 = vtanh.f32 %v9078_v23  ;;  %v5950_v23 = vmul.f32 -1.442695, %v9092_v44 }
 0xcac   :  { %v7000_v59 = vpop.eup %6999  ;;  %7019 = vtanh.f32 %v9086_v61 }
 0xcad   :  { %3211 = vrot.lane.b32.xlu0 %v6994_v32, %s7504_s0  ;;  %3199 = vrot.lane.b32.xlu1 %v7000_v59, %s7504_s0  ;;  %v7002_v24 = vpop.eup %7001  ;;  %7021 = vtanh.f32 %v9092_v44  ;;  %v5937_v59 = vmul.f32 -1.442695, %v9029_v45  ;;  %v5948_v45 = vmul.f32 -1.442695, %v9056_v7 }
 0xcae   :  { %v7004_v33 = vpop.eup %7003  ;;  %7023 = vpow2.f32 %v5944_v39 }
 0xcaf   :  { %v7006_v36 = vpop.eup %7005  ;;  %7025 = vpow2.f32 %v5945_v42 }
 0xcb0   :  { %v7008_v2 = vpop.eup %7007 }
 0xcb1   :  { %3191 = vrot.lane.b32.xlu0 %v6996_v37, %s7504_s0  ;;  %3207 = vrot.lane.b32.xlu1 %v7002_v24, %s7504_s0  ;;  %v7010_v10 = vpop.eup %7009  ;;  %v5935_v37 = vmul.f32 -1.442695, %v9025_v6  ;;  %v5943_v24 = vmul.f32 -1.442695, %v9038_v31  ;;  %v5941_v6 = vmul.f32 -1.442695, %v9051_v51 }
 0xcb2   :  { %v7012_v8 = vpop.eup %7011  ;;  %v5942_v31 = vmul.f32 -1.442695, %v9061_v43 }
 0xcb3   :  { %v7014_v32 = vpop.eup %7013  ;;  %7027 = vpow2.f32 %v5935_v37 }
 0xcb4   :  { %v7016_v47 = vpop.eup %7015 }
 0xcb5   :  { %3195 = vrot.lane.b32.xlu0 %v6998_v15, %s7504_s0  ;;  %3213 = vrot.lane.b32.xlu1 %v7006_v36, %s7504_s0  ;;  %v7018_v12 = vpop.eup %7017  ;;  %v5939_v15 = vmul.f32 -1.442695, %v9033_v30 }
 0xcb6   :  { %v7020_v62 = vpop.eup %7019 }
 0xcb7   :  { %v7022_v26 = vpop.eup %7021 }
 0xcb8   :  { %v7024_v49 = vpop.eup %7023 }
 0xcb9   :  { %3201 = vrot.lane.b32.xlu0 %v7004_v33, %s7504_s0  ;;  %3217 = vrot.lane.b32.xlu1 %v7010_v10, %s7504_s0  ;;  %v3056_v28 = vadd.f32 1.0, %v7024_v49  ;;  %v7026_v27 = vpop.eup %7025  ;;  %v5947_v49 = vmul.f32 -1.442695, %v9086_v61 }
 0xcba   :  { %v3057_v46 = vadd.f32 1.0, %v7026_v27 }
 0xcbb   :  { %7029 = vrcp.f32 %v3056_v28 }
 0xcbc   :  { %7031 = vpow2.f32 %v5939_v15 }
 0xcbd   :  { %3203 = vrot.lane.b32.xlu0 %v7008_v2, %s7504_s0  ;;  %3193 = vrot.lane.b32.xlu1 %v7016_v47, %s7504_s0  ;;  %7033 = vpow2.f32 %v5937_v59  ;;  %v7028_v33 = vpop.eup %7027 }
 0xcbe   :  { %7035 = vrcp.f32 %v3057_v46  ;;  %v3047_v22 = vadd.f32 1.0, %v7028_v33 }
 0xcbf   :  { %7037 = vpow2.f32 %v5943_v24 }
 0xcc0   :  { %7039 = vpow2.f32 %v5940_v9 }
 0xcc1   :  { %3205 = vrot.lane.b32.xlu0 %v7012_v8, %s7504_s0  ;;  %3197 = vrot.lane.b32.xlu1 %v7018_v12, %s7504_s0  ;;  %7041 = vpow2.f32 %v5946_v3  ;;  %v5936_v8 = vmul.f32 -1.442695, %v9071_v19 }
 0xcc2   :  { %7043 = vpow2.f32 %v5941_v6 }
 0xcc3   :  { %7045 = vpow2.f32 %v5948_v45 }
 0xcc4   :  { %7047 = vpow2.f32 %v5942_v31 }
 0xcc5   :  { %3219 = vrot.lane.b32.xlu0 %v7014_v32, %s7504_s0  ;;  %3215 = vrot.lane.b32.xlu1 %v7020_v62, %s7504_s0  ;;  %v9110_v30 = vpop.eup %7029  ;;  %7049 = vrcp.f32 %v3047_v22 }
 0xcc6   :  { %v7032_v55 = vpop.eup %7031  ;;  %7051 = vpow2.f32 %v5949_v41 }
 0xcc7   :  { %v7034_v10 = vpop.eup %7033  ;;  %v3051_v7 = vadd.f32 1.0, %v7032_v55  ;;  %7053 = vpow2.f32 %v5936_v8 }
 0xcc8   :  { %v9117_v51 = vpop.eup %7035  ;;  %v3049_v12 = vadd.f32 1.0, %v7034_v10 }
 0xcc9   :  { %3221 = vrot.lane.b32.xlu1 %v7022_v26, %s7504_s0  ;;  %v7038_v43 = vpop.eup %7037  ;;  %7055 = vrcp.f32 %v3051_v7 }
 0xcca   :  { %v7040_v62 = vpop.eup %7039  ;;  %v3055_v26 = vadd.f32 1.0, %v7038_v43  ;;  %7057 = vrcp.f32 %v3049_v12 }
 0xccb   :  { %v7042_v39 = vpop.eup %7041  ;;  %v3052_v19 = vadd.f32 1.0, %v7040_v62  ;;  %7059 = vpow2.f32 %v5938_v0 }
 0xccc   :  { %v7044_v42 = vpop.eup %7043  ;;  %7061 = vrcp.f32 %v3055_v26  ;;  %v3058_v37 = vadd.f32 1.0, %v7042_v39 }
 0xccd   :  { %v7046_v28 = vpop.eup %7045  ;;  %7063 = vrcp.f32 %v3052_v19  ;;  %v3053_v27 = vadd.f32 1.0, %v7044_v42 }
 0xcce   :  { %v7048_v15 = vpop.eup %7047  ;;  %7065 = vpow2.f32 %v5947_v49  ;;  %v3060_v3 = vadd.f32 1.0, %v7046_v28 }
 0xccf   :  { %v9124_v59 = vpop.eup %7049  ;;  %7067 = vrcp.f32 %v3058_v37  ;;  %v3054_v61 = vadd.f32 1.0, %v7048_v15 }
 0xcd0   :  { %v7052_v24 = vpop.eup %7051  ;;  %7069 = vrcp.f32 %v3053_v27 }
 0xcd1   :  { %v7054_v6 = vpop.eup %7053  ;;  %7071 = vpow2.f32 %v5950_v23  ;;  %v3061_v10 = vadd.f32 1.0, %v7052_v24 }
 0xcd2   :  { %7073 = vrcp.f32 %v3060_v3  ;;  %v3048_v55 = vadd.f32 1.0, %v7054_v6 }
 0xcd3   :  { %v9128_v33 = vpop.eup %7055  ;;  %7075 = vrcp.f32 %v3054_v61 }
 0xcd4   :  { %v9131_v45 = vpop.eup %7057  ;;  %7077 = vrcp.f32 %v3048_v55 }
 0xcd5   :  { %v7060_v22 = vpop.eup %7059  ;;  %7079 = vrcp.f32 %v3061_v10 }
 0xcd6   :  { %v9135_v41 = vpop.eup %7061  ;;  %v3050_v62 = vadd.f32 1.0, %v7060_v22 }
 0xcd7   :  { %v9139_v8 = vpop.eup %7063 }
 0xcd8   :  { %v7066_v12 = vpop.eup %7065  ;;  %7081 = vrcp.f32 %v3050_v62 }
 0xcd9   :  { %v9143_v0 = vpop.eup %7067  ;;  %v3059_v28 = vadd.f32 1.0, %v7066_v12 }
 0xcda   :  { %v9147_v26 = vpop.eup %7069 }
 0xcdb   :  { %v7072_v37 = vpop.eup %7071  ;;  %7083 = vrcp.f32 %v3059_v28 }
 0xcdc   :  { %v9151_v27 = vpop.eup %7073  ;;  %v3062_v3 = vadd.f32 1.0, %v7072_v37 }
 0xcdd   :  { %v9155_v15 = vpop.eup %7075 }
 0xcde   :  { %v9159_v6 = vpop.eup %7077  ;;  %7085 = vrcp.f32 %v3062_v3 }
 0xcdf   :  { %v9163_v61 = vpop.eup %7079 }
 0xce2   :  { %v9169_v55 = vpop.eup %7081 }
 0xd1b   :  { %v3210_v36 = vpop.permute.xlu0 %3209 }
 0xd1c   :  { %v3248_v2 = vmul.f32 %v9110_v30, %v3210_v36 }
 0xd1e   :  { %3289 = vrot.lane.b32.xlu0 %v3248_v2, %s7505_s5 }
 0xd1f   :  { %v3212_v32 = vpop.permute.xlu0 %3211  ;;  %v3200_v36 = vpop.permute.xlu1 %3199 }
 0xd20   :  { %v3249_v47 = vmul.f32 %v9117_v51, %v3212_v32  ;;  %v3243_v44 = vmul.f32 %v9128_v33, %v3200_v36 }
 0xd22   :  { %3291 = vrot.lane.b32.xlu0 %v3249_v47, %s7505_s5  ;;  %3279 = vrot.lane.b32.xlu1 %v3243_v44, %s7505_s5 }
 0xd23   :  { %v3192_v46 = vpop.permute.xlu0 %3191  ;;  %v3208_v32 = vpop.permute.xlu1 %3207 }
 0xd24   :  { %v3239_v9 = vmul.f32 %v9124_v59, %v3192_v46  ;;  %v3247_v47 = vmul.f32 %v9135_v41, %v3208_v32  ;;  %v9173_v32 = vpop.eup %7083 }
 0xd26   :  { %3271 = vrot.lane.b32.xlu0 %v3239_v9, %s7505_s5  ;;  %3287 = vrot.lane.b32.xlu1 %v3247_v47, %s7505_s5 }
 0xd27   :  { %v3196_v31 = vpop.permute.xlu0 %3195  ;;  %v3214_v39 = vpop.permute.xlu1 %3213 }
 0xd28   :  { %v3241_v2 = vmul.f32 %v9131_v45, %v3196_v31  ;;  %v3250_v42 = vmul.f32 %v9143_v0, %v3214_v39  ;;  %v3136_v39 = vrot.slane %v8878_v34, 7 }
 0xd2a   :  { %3275 = vrot.lane.b32.xlu0 %v3241_v2, %s7505_s5  ;;  %3293 = vrot.lane.b32.xlu1 %v3250_v42, %s7505_s5 }
 0xd2b   :  { %v3202_v7 = vpop.permute.xlu0 %3201  ;;  %v3218_v23 = vpop.permute.xlu1 %3217 }
 0xd2c   :  { %v3244_v43 = vmul.f32 %v9139_v8, %v3202_v7  ;;  %v3252_v24 = vmul.f32 %v9151_v27, %v3218_v23 }
 0xd2e   :  { %3281 = vrot.lane.b32.xlu0 %v3244_v43, %s7505_s5  ;;  %3297 = vrot.lane.b32.xlu1 %v3252_v24, %s7505_s5  ;;  %v9177_v43 = vpop.eup %7085 }
 0xd2f   :  { %v3204_v19 = vpop.permute.xlu0 %3203  ;;  %v3194_v36 = vpop.permute.xlu1 %3193 }
 0xd30   :  { %v3245_v49 = vmul.f32 %v9147_v26, %v3204_v19  ;;  %v3240_v44 = vmul.f32 %v9159_v6, %v3194_v36  ;;  %v3168_v19 = vmul.f32 %v9110_v30, %v3136_v39  ;;  %v3129_v36 = vrot.slane %v8904_v63, 7 }
 0xd32   :  { %3283 = vrot.lane.b32.xlu0 %v3245_v49, %s7505_s5  ;;  %3273 = vrot.lane.b32.xlu1 %v3240_v44, %s7505_s5  ;;  %v3137_v49 = vrot.slane %v8921_v13, 7 }
 0xd33   :  { %v3206_v46 = vpop.permute.xlu0 %3205  ;;  %v3198_v22 = vpop.permute.xlu1 %3197 }
 0xd34   :  { %v3246_v9 = vmul.f32 %v9155_v15, %v3206_v46  ;;  %v3242_v10 = vmul.f32 %v9169_v55, %v3198_v22  ;;  %v3169_v28 = vmul.f32 %v9117_v51, %v3137_v49  ;;  %v10774_v49 = vld [vmem:[#allocation13_spill] sm:$0xff] }
 0xd36   :  { %3285 = vrot.lane.b32.xlu0 %v3246_v9, %s7505_s5  ;;  %3277 = vrot.lane.b32.xlu1 %v3242_v10, %s7505_s5  ;;  %v3127_v9 = vrot.slane %v8894_v53, 7  ;;  %v3161_v53 = vmul.f32 %v9131_v45, %v3129_v36 }
 0xd37   :  { %v3220_v31 = vpop.permute.xlu0 %3219  ;;  %v3216_v7 = vpop.permute.xlu1 %3215 }
 0xd38   :  { %v3253_v2 = vmul.f32 %v9163_v61, %v3220_v31  ;;  %v3251_v47 = vmul.f32 %v9173_v32, %v3216_v7  ;;  %v3159_v34 = vmul.f32 %v9124_v59, %v3127_v9  ;;  %v3131_v31 = vrot.slane %v8914_v48, 7 }
 0xd39   :  { %v3135_v7 = vrot.slane %v8911_v5, 7  ;;  %v3133_v5 = vrot.slane %v10774_v49, 7 }
 0xd3a   :  { %3299 = vrot.lane.b32.xlu0 %v3253_v2, %s7505_s5  ;;  %3295 = vrot.lane.b32.xlu1 %v3251_v47, %s7505_s5  ;;  %v3163_v2 = vmul.f32 %v9128_v33, %v3131_v31  ;;  %v3132_v47 = vrot.slane %v8924_v20, 7 }
 0xd3b   :  { %v3222_v12 = vpop.permute.xlu1 %3221  ;;  %v3167_v48 = vmul.f32 %v9135_v41, %v3135_v7 }
 0xd3c   :  { %v3254_v62 = vmul.f32 %v9177_v43, %v3222_v12 }
 0xd3e   :  { %3301 = vrot.lane.b32.xlu1 %v3254_v62, %s7505_s5  ;;  %v3164_v62 = vmul.f32 %v9139_v8, %v3132_v47 }
 0xd90   :  { %v3290_v42 = vpop.permute.xlu0 %3289 }
 0xd91   :  { %v9184_v37 = vadd.f32 %v3290_v42, %v3168_v19  ;;  %v3138_v42 = vrot.slane %v8880_v14, 7  ;;  %v10777_v14 = vld [vmem:[#allocation8_spill] sm:$0xff] }
 0xd92   :  { %v3134_v31 = vrot.slane %v10777_v14, 7 }
 0xd93   :  { %7087 = vtanh.f32 %v9184_v37 }
 0xd94   :  { %v3292_v23 = vpop.permute.xlu0 %3291  ;;  %v3280_v22 = vpop.permute.xlu1 %3279 }
 0xd95   :  { %v9188_v46 = vadd.f32 %v3292_v23, %v3169_v28  ;;  %v9204_v12 = vadd.f32 %v3280_v22, %v3163_v2  ;;  %v3170_v23 = vmul.f32 %v9143_v0, %v3138_v42 }
 0xd97   :  { %7089 = vtanh.f32 %v9188_v46  ;;  %10773 = vst [vmem:[#allocation18_spill] sm:$0xff] %v9204_v12 }
 0xd98   :  { %v3272_v3 = vpop.permute.xlu0 %3271  ;;  %v3288_v39 = vpop.permute.xlu1 %3287 }
 0xd99   :  { %v9196_v44 = vadd.f32 %v3272_v3, %v3159_v34  ;;  %v9214_v28 = vadd.f32 %v3288_v39, %v3167_v48 }
 0xd9b   :  { %7091 = vtanh.f32 %v9196_v44  ;;  %10775 = vst [vmem:[#allocation13_spill] sm:$0xff] %v9214_v28 }
 0xd9c   :  { %v3276_v10 = vpop.permute.xlu0 %3275  ;;  %7093 = vtanh.f32 %v9204_v12  ;;  %v3294_v9 = vpop.permute.xlu1 %3293 }
 0xd9d   :  { %v7088_v24 = vpop.eup %7087  ;;  %v9206_v63 = vadd.f32 %v3276_v10, %v3161_v53  ;;  %v9224_v2 = vadd.f32 %v3294_v9, %v3170_v23  ;;  %v3166_v10 = vmul.f32 %v9155_v15, %v3134_v31 }
 0xd9e   :  { %3385 = vrot.lane.b32.xlu0 %v7088_v24, %s7506_s23  ;;  %v3165_v24 = vmul.f32 %v9147_v26, %v3133_v5 }
 0xd9f   :  { %7095 = vtanh.f32 %v9206_v63 }
 0xda0   :  { %v3282_v19 = vpop.permute.xlu0 %3281  ;;  %7097 = vtanh.f32 %v9214_v28  ;;  %v3298_v7 = vpop.permute.xlu1 %3297 }
 0xda1   :  { %v7090_v13 = vpop.eup %7089  ;;  %v9216_v20 = vadd.f32 %v3282_v19, %v3164_v62  ;;  %v10779_v62 = vld [vmem:[#allocation9_spill] sm:$0xff]  ;;  %v10780_v19 = vld [vmem:[#allocation2_spill] sm:$0xff] }
 0xda2   :  { %3387 = vrot.lane.b32.xlu0 %v7090_v13, %s7506_s23  ;;  %v10776_v13 = vld [vmem:[#allocation15_spill] sm:$0xff]  ;;  %v3128_v39 = vrot.slane %v10779_v62, 7  ;;  %v3141_v42 = vrot.slane %v10780_v19, 7 }
 0xda3   :  { %7099 = vtanh.f32 %v9216_v20  ;;  %v3140_v36 = vrot.slane %v10776_v13, 7  ;;  %v10786_v62 = vld [vmem:[#allocation7_spill] sm:$0xff] }
 0xda4   :  { %v3284_v34 = vpop.permute.xlu0 %3283  ;;  %7101 = vtanh.f32 %v9224_v2  ;;  %v3173_v9 = vmul.f32 %v9163_v61, %v3141_v42 }
 0xda5   :  { %v7092_v3 = vpop.eup %7091  ;;  %v9226_v53 = vadd.f32 %v3284_v34, %v3165_v24  ;;  %v3172_v22 = vmul.f32 %v9151_v27, %v3140_v36  ;;  %v3160_v24 = vmul.f32 %v9159_v6, %v3128_v39  ;;  %v3274_v34 = vpop.permute.xlu1 %3273  ;;  %v10783_v36 = vld [vmem:[#allocation16_spill] sm:$0xff]  ;;  %v3139_v39 = vrot.slane %v10786_v62, 7 }
 0xda6   :  { %3367 = vrot.lane.b32.xlu0 %v7092_v3, %s7506_s23  ;;  %v7094_v48 = vpop.eup %7093  ;;  %v3130_v14 = vrot.slane %v10783_v36, 7 }
 0xda7   :  { %10778 = vst [vmem:[#allocation15_spill] sm:$0xff] %v9226_v53  ;;  %7103 = vtanh.f32 %v9226_v53  ;;  %v9235_v49 = vadd.f32 %v3298_v7, %v3172_v22  ;;  %3375 = vrot.lane.b32.xlu1 %v7094_v48, %s7506_s23  ;;  %v9246_v31 = vadd.f32 %v3274_v34, %v3160_v24  ;;  %v10788_v34 = vld [vmem:[#allocation3_spill] sm:$0xff] }
 0xda8   :  { %v3286_v47 = vpop.permute.xlu0 %3285  ;;  %v3162_v7 = vmul.f32 %v9169_v55, %v3130_v14 }
 0xda9   :  { %10781 = vst [vmem:[#allocation8_spill] sm:$0xff] %v9235_v49  ;;  %v9237_v5 = vadd.f32 %v3286_v47, %v3166_v10  ;;  %v7096_v23 = vpop.eup %7095  ;;  %7105 = vtanh.f32 %v9235_v49  ;;  %10784 = vst [vmem:[#allocation2_spill] sm:$0xff] %v9246_v31  ;;  %v3278_v47 = vpop.permute.xlu1 %3277 }
 0xdaa   :  { %3371 = vrot.lane.b32.xlu0 %v7096_v23, %s7506_s23  ;;  %v7098_v13 = vpop.eup %7097  ;;  %v9256_v19 = vadd.f32 %v3278_v47, %v3162_v7  ;;  %v3171_v23 = vmul.f32 %v9173_v32, %v3139_v39 }
 0xdab   :  { %10782 = vst [vmem:[#allocation9_spill] sm:$0xff] %v9237_v5  ;;  %7107 = vtanh.f32 %v9237_v5  ;;  %3383 = vrot.lane.b32.xlu1 %v7098_v13, %s7506_s23 }
 0xdac   :  { %v3300_v3 = vpop.permute.xlu0 %3299  ;;  %7109 = vtanh.f32 %v9246_v31  ;;  %10787 = vst [vmem:[#allocation7_spill] sm:$0xff] %v9256_v19 }
 0xdad   :  { %v9248_v22 = vadd.f32 %v3300_v3, %v3173_v9  ;;  %v7100_v10 = vpop.eup %7099  ;;  %v3296_v24 = vpop.permute.xlu1 %3295  ;;  %v3142_v3 = vrot.slane %v10788_v34, 7 }
 0xdae   :  { %3377 = vrot.lane.b32.xlu0 %v7100_v10, %s7506_s23  ;;  %v7102_v48 = vpop.eup %7101  ;;  %v9263_v13 = vadd.f32 %v3296_v24, %v3171_v23 }
 0xdaf   :  { %10785 = vst [vmem:[#allocation16_spill] sm:$0xff] %v9248_v22  ;;  %7111 = vtanh.f32 %v9248_v22  ;;  %3389 = vrot.lane.b32.xlu1 %v7102_v48, %s7506_s23  ;;  %v3174_v14 = vmul.f32 %v9177_v43, %v3142_v3 }
 0xdb0   :  { %7113 = vtanh.f32 %v9256_v19  ;;  %10789 = vst [vmem:[#allocation3_spill] sm:$0xff] %v9263_v13 }
 0xdb1   :  { %v7104_v42 = vpop.eup %7103  ;;  %7115 = vtanh.f32 %v9263_v13  ;;  %v3302_v10 = vpop.permute.xlu1 %3301 }
 0xdb2   :  { %3379 = vrot.lane.b32.xlu0 %v7104_v42, %s7506_s23  ;;  %v9269_v47 = vadd.f32 %v3302_v10, %v3174_v14 }
 0xdb3   :  { %v7106_v9 = vpop.eup %7105 }
 0xdb4   :  { %3393 = vrot.lane.b32.xlu1 %v7106_v9, %s7506_s23  ;;  %10790 = vst [vmem:[#allocation19_spill] sm:$0xff] %v9269_v47  ;;  %7117 = vtanh.f32 %v9269_v47 }
 0xdb5   :  { %v7108_v36 = vpop.eup %7107 }
 0xdb6   :  { %3381 = vrot.lane.b32.xlu0 %v7108_v36, %s7506_s23  ;;  %v7110_v7 = vpop.eup %7109 }
 0xdb8   :  { %3369 = vrot.lane.b32.xlu1 %v7110_v7, %s7506_s23 }
 0xdb9   :  { %v7112_v48 = vpop.eup %7111 }
 0xdba   :  { %3395 = vrot.lane.b32.xlu0 %v7112_v48, %s7506_s23  ;;  %v7114_v62 = vpop.eup %7113 }
 0xdbb   :  { %v7116_v39 = vpop.eup %7115 }
 0xdbc   :  { %3373 = vrot.lane.b32.xlu1 %v7114_v62, %s7506_s23 }
 0xdbe   :  { %v7118_v42 = vpop.eup %7117 }
 0xdc0   :  { %3391 = vrot.lane.b32.xlu1 %v7116_v39, %s7506_s23 }
 0xdc4   :  { %3397 = vrot.lane.b32.xlu1 %v7118_v42, %s7506_s23 }
 0xe10   :  { %v3386_v23 = vpop.permute.xlu0 %3385 }
 0xe11   :  { %v3424_v39 = vmul.f32 %v9110_v30, %v3386_v23 }
 0xe13   :  { %v3462_v28 = vrot.slane %v3424_v39, 3 }
 0xe14   :  { %v3388_v24 = vpop.permute.xlu0 %3387 }
 0xe15   :  { %v3425_v47 = vmul.f32 %v9117_v51, %v3388_v24 }
 0xe17   :  { %v3464_v53 = vrot.slane %v3425_v47, 2 }
 0xe18   :  { %v3368_v9 = vpop.permute.xlu0 %3367 }
 0xe19   :  { %v3376_v34 = vpop.permute.xlu1 %3375  ;;  %v3415_v62 = vmul.f32 %v9124_v59, %v3368_v9 }
 0xe1b   :  { %v3447_v49 = vrot.slane %v3415_v62, 4 }
 0xe1c   :  { %v3372_v3 = vpop.permute.xlu0 %3371 }
 0xe1d   :  { %v3384_v36 = vpop.permute.xlu1 %3383  ;;  %v3417_v12 = vmul.f32 %v9131_v45, %v3372_v3 }
 0xe1e   :  { %v3423_v56 = vmul.f32 %v9135_v41, %v3384_v36 }
 0xe1f   :  { %v3450_v9 = vrot.slane %v3417_v12, 2 }
 0xe20   :  { %v3378_v14 = vpop.permute.xlu0 %3377  ;;  %v3461_v31 = vrot.slane %v3423_v56, 4 }
 0xe21   :  { %v3390_v10 = vpop.permute.xlu1 %3389  ;;  %v3420_v41 = vmul.f32 %v9139_v8, %v3378_v14  ;;  %v3419_v8 = vmul.f32 %v9128_v33, %v3376_v34 }
 0xe22   :  { %v3426_v22 = vmul.f32 %v9143_v0, %v3390_v10 }
 0xe23   :  { %v3455_v24 = vrot.slane %v3420_v41, 7 }
 0xe24   :  { %v3380_v7 = vpop.permute.xlu0 %3379  ;;  %v3466_v56 = vrot.slane %v3426_v22, 1 }
 0xe25   :  { %v3421_v0 = vmul.f32 %v9147_v26, %v3380_v7 }
 0xe26   :  { %v3394_v17 = vpop.permute.xlu1 %3393 }
 0xe27   :  { %v3428_v23 = vmul.f32 %v9151_v27, %v3394_v17 }
 0xe28   :  { %v3382_v48 = vpop.permute.xlu0 %3381 }
 0xe29   :  { %v3422_v45 = vmul.f32 %v9155_v15, %v3382_v48  ;;  %v3469_v27 = vrot.slane %v3428_v23, 7 }
 0xe2a   :  { %v3370_v42 = vpop.permute.xlu1 %3369 }
 0xe2b   :  { %v3416_v19 = vmul.f32 %v9159_v6, %v3370_v42  ;;  %v3463_v6 = vsel %vm1013_vm2, %v3462_v28, %v3461_v31  ;;  %v3459_v31 = vrot.slane %v3422_v45, 5 }
 0xe2c   :  { %v3396_v5 = vpop.permute.xlu0 %3395 }
 0xe2d   :  { %v3448_v13 = vrot.slane %v3416_v19, 3  ;;  %v3429_v19 = vmul.f32 %v9163_v61, %v3396_v5  ;;  %v3457_v5 = vrot.slane %v3421_v0, 6 }
 0xe2e   :  { %v3374_v59 = vpop.permute.xlu1 %3373 }
 0xe2f   :  { %v3449_v30 = vsel %vm1013_vm2, %v3448_v13, %v3447_v49  ;;  %v3418_v51 = vmul.f32 %v9169_v55, %v3374_v59  ;;  %v3465_v55 = vsel %vm1016_vm3, %v3464_v53, %v3463_v6  ;;  %v3471_v17 = vrot.slane %v3429_v19, 6 }
 0xe30   :  { %v3451_v12 = vsel %vm1016_vm3, %v3450_v9, %v3449_v30  ;;  %v3467_v26 = vsel %vm1019_vm4, %v3466_v56, %v3465_v55 }
 0xe31   :  { %v3452_v47 = vrot.slane %v3418_v51, 1 }
 0xe32   :  { %v3392_v49 = vpop.permute.xlu1 %3391 }
 0xe33   :  { %v3453_v15 = vsel %vm1019_vm4, %v3452_v47, %v3451_v12  ;;  %v3427_v28 = vmul.f32 %v9173_v32, %v3392_v49 }
 0xe34   :  { %v3454_v61 = vsel %vm1022_vm5, %v3419_v8, %v3453_v15 }
 0xe35   :  { %v3468_v33 = vsel %vm1022_vm5, %v3427_v28, %v3467_v26  ;;  %v3456_v22 = vsel %vm1025_vm6, %v3455_v24, %v3454_v61 }
 0xe36   :  { %v3398_v13 = vpop.permute.xlu1 %3397  ;;  %v3458_v34 = vsel %vm1028_vm7, %v3457_v5, %v3456_v22  ;;  %v3470_v32 = vsel %vm1025_vm6, %v3469_v27, %v3468_v33 }
 0xe37   :  { %v3430_v53 = vmul.f32 %v9177_v43, %v3398_v13  ;;  %v9304_v3 = vsel %vm1031_vm8, %v3459_v31, %v3458_v34  ;;  %v3472_v36 = vsel %vm1028_vm7, %v3471_v17, %v3470_v32 }
 0xe38   :  { %10791 = vst [vmem:[#allocation20_spill] sm:$0xff] %v9304_v3  ;;  %3475 = vrot.lane.b32.xlu0 %v9304_v3, %s7507_s24 }
 0xe39   :  { %v3473_v14 = vrot.slane %v3430_v53, 5 }
 0xe3b   :  { %v9311_v10 = vsel %vm1031_vm8, %v3473_v14, %v3472_v36 }
 0xe3c   :  { %10792 = vst [vmem:[#allocation21_spill] sm:$0xff] %v9311_v10  ;;  %3477 = vrot.lane.b32.xlu1 %v9311_v10, %s7507_s24 }
 0xeaa   :  { %v3476_v43 = vpop.permute.xlu0 %3475 }
 0xeab   :  { %6251 = vmatprep.mubr.msk.f32.mxu1 %vm75_vm0, %v3476_v43 }
 0xeae   :  { %v3478_v48 = vpop.permute.xlu1 %3477 }
 0xeaf   :  { %6252 = vmatmul.mubr.msk.f32.vlgmr.msra.gmra.mrb[10].mxu1 %vm75_vm0, %v3478_v48 }
 0xeb0   :  { %6307 = vmatpush3.bf16.msra.mxu1 %v7606_v16 }
 0xeb1   :  { %6309 = vmatprep.subr.bf16.mxu1 %v7606_v16 }
 0xf82   :  { %v9321_v62 = vpop.f32.mrb[10].mxu1 }
 0xf83   :  { %v9323_v39 = vpop.f32.mrb[11].mxu1  ;;  %v3568_v42 = vrot.slane %v9321_v62, 4  ;;  %v3569_v41 = vrot.slane %v9321_v62, 5  ;;  %v3570_v9 = vrot.slane %v9321_v62, 6  ;;  %v3567_v8 = vrot.slane %v9321_v62, 3 }
 0xf84   :  { %v3560_v45 = vrot.slane %v9323_v39, 3  ;;  %v3562_v56 = vrot.slane %v9323_v39, 5  ;;  %v3565_v23 = vrot.slane %v9323_v39, 1  ;;  %v9355_v24 = vadd.f32 %v9323_v39, %v7769_v1 }
 0xf85   :  { %v9328_v59 = vadd.f32 %v3568_v42, %v7794_v18  ;;  %v9332_v30 = vadd.f32 %v3569_v41, %v7811_v29  ;;  %v9336_v51 = vadd.f32 %v3570_v9, %v7808_v25  ;;  %v3566_v49 = vrot.slane %v9323_v39, 2 }
 0xf86   :  { %v9344_v0 = vadd.f32 %v3560_v45, %v7742_v52  ;;  %v9349_v47 = vadd.f32 %v3562_v56, %v7758_v60  ;;  %v9360_v55 = vadd.f32 %v3565_v23, %v7786_v11  ;;  %v3571_v15 = vrot.slane %v9321_v62, 7 }
 0xf87   :  { %7119 = vtanh.f32 %v9328_v59  ;;  %v9365_v28 = vadd.f32 %v3567_v8, %v7800_v21  ;;  %v9369_v31 = vadd.f32 %v3566_v49, %v7834_v40  ;;  %v3572_v26 = vrot.slane %v9321_v62, 1 }
 0xf88   :  { %7121 = vtanh.f32 %v9332_v30  ;;  %v9374_v61 = vadd.f32 %v3571_v15, %v7831_v38  ;;  %v9380_v17 = vadd.f32 %v9321_v62, %v7826_v35  ;;  %v3561_v33 = vrot.slane %v9323_v39, 4 }
 0xf89   :  { %7123 = vtanh.f32 %v9336_v51  ;;  %v9384_v27 = vadd.f32 %v3572_v26, %v7851_v54  ;;  %v3563_v34 = vrot.slane %v9323_v39, 6  ;;  %v3564_v14 = vrot.slane %v9323_v39, 7 }
 0xf8a   :  { %7125 = vtanh.f32 %v9344_v0  ;;  %v9394_v53 = vadd.f32 %v3561_v33, %v7739_v50  ;;  %v3573_v41 = vrot.slane %v9321_v62, 2  ;;  %v5962_v8 = vmul.f32 -1.442695, %v9328_v59 }
 0xf8b   :  { %7127 = vtanh.f32 %v9349_v47  ;;  %v9400_v43 = vadd.f32 %v3563_v34, %v7753_v57  ;;  %v9407_v9 = vadd.f32 %v3564_v14, %v7773_v4  ;;  %v5964_v49 = vmul.f32 -1.442695, %v9336_v51 }
 0xf8c   :  { %7129 = vtanh.f32 %v9355_v24  ;;  %v5953_v26 = vmul.f32 -1.442695, %v9344_v0  ;;  %v5960_v0 = vmul.f32 -1.442695, %v9369_v31  ;;  %v5966_v14 = vmul.f32 -1.442695, %v9380_v17 }
 0xf8d   :  { %7131 = vtanh.f32 %v9360_v55 }
 0xf8e   :  { %7133 = vtanh.f32 %v9365_v28 }
 0xf8f   :  { %7135 = vtanh.f32 %v9369_v31 }
 0xf90   :  { %7137 = vtanh.f32 %v9374_v61 }
 0xf91   :  { %v7120_v6 = vpop.eup %7119  ;;  %7139 = vtanh.f32 %v9380_v17 }
 0xf92   :  { %3816 = vrot.lane.b32.xlu0 %v7120_v6, %s7504_s0  ;;  %v7122_v19 = vpop.eup %7121  ;;  %7141 = vtanh.f32 %v9384_v27  ;;  %v9413_v6 = vadd.f32 %v3573_v41, %v7855_v58 }
 0xf93   :  { %v7124_v12 = vpop.eup %7123  ;;  %7143 = vtanh.f32 %v9394_v53 }
 0xf94   :  { %v7126_v5 = vpop.eup %7125  ;;  %7145 = vtanh.f32 %v9400_v43 }
 0xf95   :  { %v7128_v22 = vpop.eup %7127  ;;  %7147 = vtanh.f32 %v9407_v9 }
 0xf96   :  { %3818 = vrot.lane.b32.xlu0 %v7122_v19, %s7504_s0  ;;  %v7130_v13 = vpop.eup %7129  ;;  %7149 = vtanh.f32 %v9413_v6 }
 0xf97   :  { %3808 = vrot.lane.b32.xlu1 %v7130_v13, %s7504_s0  ;;  %v7132_v32 = vpop.eup %7131  ;;  %7151 = vpow2.f32 %v5962_v8  ;;  %v5958_v13 = vmul.f32 -1.442695, %v9355_v24 }
 0xf98   :  { %v7134_v36 = vpop.eup %7133 }
 0xf99   :  { %v7136_v48 = vpop.eup %7135 }
 0xf9a   :  { %3820 = vrot.lane.b32.xlu0 %v7124_v12, %s7504_s0  ;;  %v7138_v42 = vpop.eup %7137  ;;  %v5963_v12 = vmul.f32 -1.442695, %v9332_v30  ;;  %v5959_v30 = vmul.f32 -1.442695, %v9360_v55 }
 0xf9b   :  { %3814 = vrot.lane.b32.xlu1 %v7134_v36, %s7504_s0  ;;  %v7140_v45 = vpop.eup %7139 }
 0xf9c   :  { %v7142_v39 = vpop.eup %7141  ;;  %7153 = vpow2.f32 %v5963_v12  ;;  %v5956_v12 = vmul.f32 -1.442695, %v9400_v43 }
 0xf9d   :  { %v7144_v56 = vpop.eup %7143  ;;  %7155 = vpow2.f32 %v5964_v49 }
 0xf9e   :  { %3798 = vrot.lane.b32.xlu0 %v7126_v5, %s7504_s0  ;;  %v7146_v62 = vpop.eup %7145  ;;  %7157 = vpow2.f32 %v5953_v26 }
 0xf9f   :  { %3822 = vrot.lane.b32.xlu1 %v7138_v42, %s7504_s0  ;;  %v7148_v19 = vpop.eup %7147 }
 0xfa0   :  { %v7150_v23 = vpop.eup %7149 }
 0xfa1   :  { %v7152_v15 = vpop.eup %7151 }
 0xfa2   :  { %3802 = vrot.lane.b32.xlu0 %v7128_v22, %s7504_s0  ;;  %v3663_v5 = vadd.f32 1.0, %v7152_v15  ;;  %v5955_v22 = vmul.f32 -1.442695, %v9349_v47  ;;  %v5965_v47 = vmul.f32 -1.442695, %v9374_v61 }
 0xfa3   :  { %3826 = vrot.lane.b32.xlu1 %v7142_v39, %s7504_s0  ;;  %v5954_v39 = vmul.f32 -1.442695, %v9394_v53 }
 0xfa4   :  { %7159 = vrcp.f32 %v3663_v5 }
 0xfa5   :  { %7161 = vpow2.f32 %v5955_v22 }
 0xfa6   :  { %3810 = vrot.lane.b32.xlu0 %v7132_v32, %s7504_s0  ;;  %v7154_v33 = vpop.eup %7153  ;;  %v5961_v32 = vmul.f32 -1.442695, %v9365_v28  ;;  %7163 = vpow2.f32 %v5958_v13  ;;  %v5967_v28 = vmul.f32 -1.442695, %v9384_v27 }
 0xfa7   :  { %3800 = vrot.lane.b32.xlu1 %v7144_v56, %s7504_s0  ;;  %v3664_v34 = vadd.f32 1.0, %v7154_v33  ;;  %v7156_v59 = vpop.eup %7155  ;;  %v5957_v33 = vmul.f32 -1.442695, %v9407_v9 }
 0xfa8   :  { %v3665_v51 = vadd.f32 1.0, %v7156_v59  ;;  %v7158_v36 = vpop.eup %7157 }
 0xfa9   :  { %7165 = vrcp.f32 %v3664_v34  ;;  %v3654_v41 = vadd.f32 1.0, %v7158_v36 }
 0xfaa   :  { %3812 = vrot.lane.b32.xlu0 %v7136_v48, %s7504_s0  ;;  %7167 = vpow2.f32 %v5961_v32 }
 0xfab   :  { %3804 = vrot.lane.b32.xlu1 %v7146_v62, %s7504_s0  ;;  %7169 = vpow2.f32 %v5959_v30  ;;  %v5968_v30 = vmul.f32 -1.442695, %v9413_v6 }
 0xfac   :  { %7171 = vrcp.f32 %v3665_v51 }
 0xfad   :  { %7173 = vpow2.f32 %v5960_v0 }
 0xfae   :  { %3824 = vrot.lane.b32.xlu0 %v7140_v45, %s7504_s0  ;;  %v9431_v24 = vpop.eup %7159  ;;  %7175 = vpow2.f32 %v5965_v47 }
 0xfaf   :  { %3806 = vrot.lane.b32.xlu1 %v7148_v19, %s7504_s0  ;;  %v7162_v42 = vpop.eup %7161  ;;  %7177 = vpow2.f32 %v5966_v14 }
 0xfb0   :  { %v7164_v45 = vpop.eup %7163  ;;  %7179 = vpow2.f32 %v5967_v28  ;;  %v3656_v27 = vadd.f32 1.0, %v7162_v42 }
 0xfb1   :  { %7181 = vrcp.f32 %v3654_v41  ;;  %v3659_v19 = vadd.f32 1.0, %v7164_v45 }
 0xfb2   :  { %7183 = vpow2.f32 %v5954_v39 }
 0xfb3   :  { %3828 = vrot.lane.b32.xlu1 %v7150_v23, %s7504_s0  ;;  %v9437_v31 = vpop.eup %7165  ;;  %7185 = vrcp.f32 %v3656_v27 }
 0xfb4   :  { %v7168_v56 = vpop.eup %7167  ;;  %7187 = vrcp.f32 %v3659_v19 }
 0xfb5   :  { %v7170_v62 = vpop.eup %7169  ;;  %v3662_v26 = vadd.f32 1.0, %v7168_v56  ;;  %7189 = vpow2.f32 %v5956_v12 }
 0xfb6   :  { %v9442_v23 = vpop.eup %7171  ;;  %v3660_v15 = vadd.f32 1.0, %v7170_v62 }
 0xfb7   :  { %v7174_v53 = vpop.eup %7173 }
 0xfb8   :  { %v7176_v5 = vpop.eup %7175  ;;  %7191 = vrcp.f32 %v3660_v15  ;;  %v3661_v13 = vadd.f32 1.0, %v7174_v53 }
 0xfb9   :  { %v7178_v22 = vpop.eup %7177  ;;  %7193 = vrcp.f32 %v3662_v26  ;;  %v3666_v59 = vadd.f32 1.0, %v7176_v5 }
 0xfba   :  { %v7180_v34 = vpop.eup %7179  ;;  %7195 = vpow2.f32 %v5957_v33  ;;  %v3667_v0 = vadd.f32 1.0, %v7178_v22 }
 0xfbb   :  { %v9448_v43 = vpop.eup %7181  ;;  %7197 = vrcp.f32 %v3661_v13  ;;  %v3668_v36 = vadd.f32 1.0, %v7180_v34 }
 0xfbc   :  { %v7184_v47 = vpop.eup %7183  ;;  %7199 = vrcp.f32 %v3666_v59 }
 0xfbd   :  { %v9453_v9 = vpop.eup %7185  ;;  %7201 = vpow2.f32 %v5968_v30  ;;  %v3655_v41 = vadd.f32 1.0, %v7184_v47 }
 0xfbe   :  { %7203 = vrcp.f32 %v3667_v0 }
 0xfbf   :  { %7205 = vrcp.f32 %v3668_v36 }
 0xfc0   :  { %7207 = vrcp.f32 %v3655_v41 }
0x1004   :  { %v3817_v48 = vpop.permute.xlu0 %3816 }
0x1005   :  { %v3855_v55 = vmul.f32 %v9431_v24, %v3817_v48  ;;  %v9455_v48 = vpop.eup %7187 }
0x1006   :  { %v7190_v42 = vpop.eup %7189 }
0x1007   :  { %3896 = vrot.lane.b32.xlu0 %v3855_v55, %s7505_s5  ;;  %v9460_v45 = vpop.eup %7191  ;;  %v3657_v19 = vadd.f32 1.0, %v7190_v42 }
0x1008   :  { %v3819_v61 = vpop.permute.xlu0 %3818  ;;  %v9463_v39 = vpop.eup %7193 }
0x1009   :  { %v3856_v17 = vmul.f32 %v9437_v31, %v3819_v61  ;;  %v3809_v28 = vpop.permute.xlu1 %3808  ;;  %v7196_v62 = vpop.eup %7195  ;;  %7209 = vrcp.f32 %v3657_v19 }
0x100a   :  { %v3851_v6 = vmul.f32 %v9455_v48, %v3809_v28  ;;  %v3658_v33 = vadd.f32 1.0, %v7196_v62 }
0x100b   :  { %3898 = vrot.lane.b32.xlu0 %v3856_v17, %s7505_s5 }
0x100c   :  { %v3821_v8 = vpop.permute.xlu0 %3820  ;;  %3888 = vrot.lane.b32.xlu1 %v3851_v6, %s7505_s5  ;;  %7211 = vrcp.f32 %v3658_v33 }
0x100d   :  { %v3857_v49 = vmul.f32 %v9442_v23, %v3821_v8  ;;  %v3815_v17 = vpop.permute.xlu1 %3814  ;;  %v9468_v8 = vpop.eup %7197 }
0x100e   :  { %v3854_v27 = vmul.f32 %v9463_v39, %v3815_v17 }
0x100f   :  { %3900 = vrot.lane.b32.xlu0 %v3857_v49, %s7505_s5  ;;  %v9471_v49 = vpop.eup %7199 }
0x1010   :  { %v3799_v32 = vpop.permute.xlu0 %3798  ;;  %3894 = vrot.lane.b32.xlu1 %v3854_v27, %s7505_s5  ;;  %v7202_v5 = vpop.eup %7201  ;;  %v3743_v27 = vrot.slane %v9184_v37, 7 }
0x1011   :  { %v3846_v51 = vmul.f32 %v9448_v43, %v3799_v32  ;;  %v3823_v15 = vpop.permute.xlu1 %3822  ;;  %v9476_v22 = vpop.eup %7203 }
0x1012   :  { %v3858_v26 = vmul.f32 %v9471_v49, %v3823_v15  ;;  %v9479_v34 = vpop.eup %7205  ;;  %v3775_v62 = vmul.f32 %v9431_v24, %v3743_v27 }
0x1013   :  { %3878 = vrot.lane.b32.xlu0 %v3846_v51, %s7505_s5  ;;  %v3669_v51 = vadd.f32 1.0, %v7202_v5  ;;  %v9485_v0 = vpop.eup %7207  ;;  %v3745_v5 = vrot.slane %v9224_v2, 7 }
0x1014   :  { %v3803_v14 = vpop.permute.xlu0 %3802  ;;  %3902 = vrot.lane.b32.xlu1 %v3858_v26, %s7505_s5 }
0x1015   :  { %v3848_v55 = vmul.f32 %v9453_v9, %v3803_v14  ;;  %v3827_v59 = vpop.permute.xlu1 %3826  ;;  %7213 = vrcp.f32 %v3669_v51  ;;  %v9489_v14 = vpop.eup %7209  ;;  %v3777_v37 = vmul.f32 %v9442_v23, %v3745_v5  ;;  %v10796_v5 = vld [vmem:[#allocation9_spill] sm:$0xff] }
0x1016   :  { %v3860_v30 = vmul.f32 %v9479_v34, %v3827_v59  ;;  %v9493_v6 = vpop.eup %7211 }
0x1017   :  { %3882 = vrot.lane.b32.xlu0 %v3848_v55, %s7505_s5 }
0x1018   :  { %v3811_v61 = vpop.permute.xlu0 %3810  ;;  %3906 = vrot.lane.b32.xlu1 %v3860_v30, %s7505_s5 }
0x1019   :  { %v3852_v56 = vmul.f32 %v9460_v45, %v3811_v61  ;;  %v3801_v47 = vpop.permute.xlu1 %3800 }
0x101a   :  { %v3847_v36 = vmul.f32 %v9485_v0, %v3801_v47  ;;  %v3736_v47 = vrot.slane %v9206_v63, 7  ;;  %v10794_v63 = vld [vmem:[#allocation13_spill] sm:$0xff] }
0x101b   :  { %3890 = vrot.lane.b32.xlu0 %v3852_v56, %s7505_s5 }
0x101c   :  { %v3813_v12 = vpop.permute.xlu0 %3812  ;;  %3880 = vrot.lane.b32.xlu1 %v3847_v36, %s7505_s5 }
0x101d   :  { %v3853_v53 = vmul.f32 %v9468_v8, %v3813_v12  ;;  %v3805_v28 = vpop.permute.xlu1 %3804  ;;  %v3744_v12 = vrot.slane %v9188_v46, 7 }
0x101e   :  { %v3849_v55 = vmul.f32 %v9489_v14, %v3805_v28  ;;  %v3739_v28 = vrot.slane %v9216_v20, 7 }
0x101f   :  { %3892 = vrot.lane.b32.xlu0 %v3853_v53, %s7505_s5  ;;  %v9497_v61 = vpop.eup %7213  ;;  %v3776_v53 = vmul.f32 %v9437_v31, %v3744_v12 }
0x1020   :  { %v3825_v13 = vpop.permute.xlu0 %3824  ;;  %3884 = vrot.lane.b32.xlu1 %v3849_v55, %s7505_s5  ;;  %v3768_v55 = vmul.f32 %v9453_v9, %v3736_v47 }
0x1021   :  { %v3859_v32 = vmul.f32 %v9476_v22, %v3825_v13  ;;  %v3807_v42 = vpop.permute.xlu1 %3806 }
0x1022   :  { %v3850_v41 = vmul.f32 %v9493_v6, %v3807_v42 }
0x1023   :  { %3904 = vrot.lane.b32.xlu0 %v3859_v32, %s7505_s5  ;;  %v3734_v32 = vrot.slane %v9196_v44, 7  ;;  %v3771_v44 = vmul.f32 %v9455_v48, %v3739_v28 }
0x1024   :  { %3886 = vrot.lane.b32.xlu1 %v3850_v41, %s7505_s5 }
0x1025   :  { %v3829_v17 = vpop.permute.xlu1 %3828  ;;  %v3766_v30 = vmul.f32 %v9448_v43, %v3734_v32  ;;  %v10797_v32 = vld [vmem:[#allocation3_spill] sm:$0xff] }
0x1026   :  { %v3861_v56 = vmul.f32 %v9497_v61, %v3829_v17  ;;  %v10793_v17 = vld [vmem:[#allocation15_spill] sm:$0xff] }
0x1028   :  { %3908 = vrot.lane.b32.xlu1 %v3861_v56, %s7505_s5  ;;  %v3740_v56 = vrot.slane %v10793_v17, 7 }
0x102a   :  { %v3772_v20 = vmul.f32 %v9460_v45, %v3740_v56  ;;  %v10800_v56 = vld [vmem:[#allocation16_spill] sm:$0xff] }
0x1079   :  { %v3897_v19 = vpop.permute.xlu0 %3896 }
0x107a   :  { %v9504_v15 = vadd.f32 %v3897_v19, %v3775_v62  ;;  %v3742_v19 = vrot.slane %v10794_v63, 7 }
0x107c   :  { %7215 = vtanh.f32 %v9504_v15 }
0x107d   :  { %v3899_v26 = vpop.permute.xlu0 %3898 }
0x107e   :  { %v9509_v33 = vadd.f32 %v3899_v26, %v3776_v53  ;;  %v3889_v27 = vpop.permute.xlu1 %3888  ;;  %v3774_v53 = vmul.f32 %v9463_v39, %v3742_v19 }
0x107f   :  { %v9531_v12 = vadd.f32 %v3889_v27, %v3771_v44  ;;  %v10799_v44 = vld [vmem:[#allocation8_spill] sm:$0xff]  ;;  %v3748_v27 = vrot.slane %v10800_v56, 7 }
0x1080   :  { %7217 = vtanh.f32 %v9509_v33 }
0x1081   :  { %v3901_v13 = vpop.permute.xlu0 %3900  ;;  %10795 = vst [vmem:[#allocation15_spill] sm:$0xff] %v9531_v12 }
0x1082   :  { %v9513_v59 = vadd.f32 %v3901_v13, %v3777_v37  ;;  %v3741_v37 = vrot.slane %v10796_v5, 7  ;;  %v3895_v13 = vpop.permute.xlu1 %3894 }
0x1084   :  { %7219 = vtanh.f32 %v9513_v59 }
0x1085   :  { %v3879_v51 = vpop.permute.xlu0 %3878 }
0x1086   :  { %v7216_v46 = vpop.eup %7215  ;;  %v9520_v36 = vadd.f32 %v3879_v51, %v3766_v30  ;;  %v3746_v30 = vrot.slane %v10797_v32, 7  ;;  %v9542_v51 = vadd.f32 %v3895_v13, %v3774_v53  ;;  %v10802_v32 = vld [vmem:[#allocation2_spill] sm:$0xff] }
0x1087   :  { %3992 = vrot.lane.b32.xlu0 %v7216_v46, %s7506_s23 }
0x1088   :  { %7221 = vtanh.f32 %v9520_v36  ;;  %10798 = vst [vmem:[#allocation13_spill] sm:$0xff] %v9542_v51  ;;  %v3778_v47 = vmul.f32 %v9471_v49, %v3746_v30  ;;  %v3735_v30 = vrot.slane %v10802_v32, 7 }
0x1089   :  { %v3883_v42 = vpop.permute.xlu0 %3882 }
0x108a   :  { %v7218_v2 = vpop.eup %7217  ;;  %v9528_v62 = vadd.f32 %v3883_v42, %v3768_v55  ;;  %v3747_v42 = vrot.slane %v10799_v44, 7 }
0x108b   :  { %3994 = vrot.lane.b32.xlu0 %v7218_v2, %s7506_s23  ;;  %v3773_v2 = vmul.f32 %v9468_v8, %v3741_v37 }
0x108c   :  { %7223 = vtanh.f32 %v9528_v62  ;;  %v3779_v19 = vmul.f32 %v9476_v22, %v3747_v42  ;;  %v10804_v42 = vld [vmem:[#allocation7_spill] sm:$0xff] }
0x108d   :  { %7225 = vtanh.f32 %v9531_v12  ;;  %v3891_v26 = vpop.permute.xlu0 %3890 }
0x108e   :  { %v7220_v41 = vpop.eup %7219  ;;  %v9539_v46 = vadd.f32 %v3891_v26, %v3772_v20  ;;  %v3780_v20 = vmul.f32 %v9479_v34, %v3748_v27 }
0x108f   :  { %3996 = vrot.lane.b32.xlu0 %v7220_v41, %s7506_s23  ;;  %v3903_v41 = vpop.permute.xlu1 %3902 }
0x1090   :  { %7227 = vtanh.f32 %v9539_v46  ;;  %v9552_v63 = vadd.f32 %v3903_v41, %v3778_v47  ;;  %v3767_v47 = vmul.f32 %v9485_v0, %v3735_v30  ;;  %v3737_v41 = vrot.slane %v10804_v42, 7 }
0x1091   :  { %7229 = vtanh.f32 %v9542_v51  ;;  %v3893_v28 = vpop.permute.xlu0 %3892 }
0x1092   :  { %v7222_v55 = vpop.eup %7221  ;;  %v9549_v17 = vadd.f32 %v3893_v28, %v3773_v2  ;;  %v3769_v27 = vmul.f32 %v9489_v14, %v3737_v41 }
0x1093   :  { %3974 = vrot.lane.b32.xlu0 %v7222_v55, %s7506_s23  ;;  %v3907_v5 = vpop.permute.xlu1 %3906 }
0x1094   :  { %7231 = vtanh.f32 %v9549_v17  ;;  %v9562_v2 = vadd.f32 %v3907_v5, %v3780_v20 }
0x1095   :  { %7233 = vtanh.f32 %v9552_v63  ;;  %v3905_v53 = vpop.permute.xlu0 %3904 }
0x1096   :  { %v7224_v26 = vpop.eup %7223  ;;  %v9559_v37 = vadd.f32 %v3905_v53, %v3779_v19  ;;  %10803 = vst [vmem:[#allocation3_spill] sm:$0xff] %v9562_v2 }
0x1097   :  { %v7226_v13 = vpop.eup %7225  ;;  %3978 = vrot.lane.b32.xlu0 %v7224_v26, %s7506_s23  ;;  %v3881_v55 = vpop.permute.xlu1 %3880  ;;  %v10806_v26 = vld [vmem:[#allocation18_spill] sm:$0xff] }
0x1098   :  { %10801 = vst [vmem:[#allocation9_spill] sm:$0xff] %v9559_v37  ;;  %3984 = vrot.lane.b32.xlu1 %v7226_v13, %s7506_s23  ;;  %7235 = vtanh.f32 %v9559_v37  ;;  %v9570_v56 = vadd.f32 %v3881_v55, %v3767_v47  ;;  %v3738_v5 = vrot.slane %v10806_v26, 7  ;;  %v10808_v55 = vld [vmem:[#allocation19_spill] sm:$0xff] }
0x1099   :  { %7237 = vtanh.f32 %v9562_v2 }
0x109a   :  { %v7228_v28 = vpop.eup %7227  ;;  %10805 = vst [vmem:[#allocation8_spill] sm:$0xff] %v9570_v56  ;;  %7239 = vtanh.f32 %v9570_v56  ;;  %v3770_v32 = vmul.f32 %v9493_v6, %v3738_v5 }
0x109b   :  { %v7230_v44 = vpop.eup %7229  ;;  %3986 = vrot.lane.b32.xlu0 %v7228_v28, %s7506_s23  ;;  %v3885_v20 = vpop.permute.xlu1 %3884 }
0x109c   :  { %3990 = vrot.lane.b32.xlu1 %v7230_v44, %s7506_s23  ;;  %v9577_v13 = vadd.f32 %v3885_v20, %v3769_v27  ;;  %v3749_v44 = vrot.slane %v10808_v55, 7 }
0x109e   :  { %v7232_v19 = vpop.eup %7231  ;;  %10807 = vst [vmem:[#allocation16_spill] sm:$0xff] %v9577_v13  ;;  %7241 = vtanh.f32 %v9577_v13  ;;  %v3781_v41 = vmul.f32 %v9497_v61, %v3749_v44 }
0x109f   :  { %v7234_v53 = vpop.eup %7233  ;;  %3988 = vrot.lane.b32.xlu0 %v7232_v19, %s7506_s23  ;;  %v3887_v47 = vpop.permute.xlu1 %3886 }
0x10a0   :  { %3998 = vrot.lane.b32.xlu1 %v7234_v53, %s7506_s23  ;;  %v9584_v42 = vadd.f32 %v3887_v47, %v3770_v32 }
0x10a2   :  { %v7236_v30 = vpop.eup %7235  ;;  %10809 = vst [vmem:[#allocation2_spill] sm:$0xff] %v9584_v42  ;;  %7243 = vtanh.f32 %v9584_v42 }
0x10a3   :  { %v7238_v28 = vpop.eup %7237  ;;  %4000 = vrot.lane.b32.xlu0 %v7236_v30, %s7506_s23  ;;  %v3909_v27 = vpop.permute.xlu1 %3908 }
0x10a4   :  { %4002 = vrot.lane.b32.xlu1 %v7238_v28, %s7506_s23  ;;  %v7240_v19 = vpop.eup %7239  ;;  %v9590_v20 = vadd.f32 %v3909_v27, %v3781_v41 }
0x10a6   :  { %10810 = vst [vmem:[#allocation7_spill] sm:$0xff] %v9590_v20  ;;  %7245 = vtanh.f32 %v9590_v20 }
0x10a8   :  { %3976 = vrot.lane.b32.xlu1 %v7240_v19, %s7506_s23  ;;  %v7242_v53 = vpop.eup %7241 }
0x10ac   :  { %3980 = vrot.lane.b32.xlu1 %v7242_v53, %s7506_s23  ;;  %v7244_v26 = vpop.eup %7243 }
0x10b0   :  { %3982 = vrot.lane.b32.xlu1 %v7244_v26, %s7506_s23  ;;  %v7246_v5 = vpop.eup %7245 }
0x10b4   :  { %4004 = vrot.lane.b32.xlu1 %v7246_v5, %s7506_s23 }
0x10f9   :  { %v3993_v32 = vpop.permute.xlu0 %3992 }
0x10fa   :  { %v4031_v53 = vmul.f32 %v9431_v24, %v3993_v32 }
0x10fc   :  { %v4069_v42 = vrot.slane %v4031_v53, 4 }
0x10fd   :  { %v3995_v30 = vpop.permute.xlu0 %3994 }
0x10fe   :  { %v4032_v10 = vmul.f32 %v9437_v31, %v3995_v30 }
0x1100   :  { %v4071_v56 = vrot.slane %v4032_v10, 3 }
0x1101   :  { %v3997_v47 = vpop.permute.xlu0 %3996 }
0x1102   :  { %v4033_v5 = vmul.f32 %v9442_v23, %v3997_v47 }
0x1104   :  { %v4073_v51 = vrot.slane %v4033_v5, 2 }
0x1105   :  { %v3975_v28 = vpop.permute.xlu0 %3974 }
0x1106   :  { %v4022_v37 = vmul.f32 %v9448_v43, %v3975_v28 }
0x1108   :  { %v4054_v47 = vrot.slane %v4022_v37, 5 }
0x1109   :  { %v3979_v44 = vpop.permute.xlu0 %3978 }
0x110a   :  { %v3985_v55 = vpop.permute.xlu1 %3984 }
0x110d   :  { %v3987_v19 = vpop.permute.xlu0 %3986 }
0x110e   :  { %v3991_v41 = vpop.permute.xlu1 %3990 }
0x110f   :  { %v4030_v7 = vmul.f32 %v9463_v39, %v3991_v41  ;;  %v4024_v39 = vmul.f32 %v9453_v9, %v3979_v44 }
0x1111   :  { %v3989_v26 = vpop.permute.xlu0 %3988  ;;  %v4068_v2 = vrot.slane %v4030_v7, 5  ;;  %v4057_v10 = vrot.slane %v4024_v39, 3 }
0x1112   :  { %v3999_v27 = vpop.permute.xlu1 %3998 }
0x1113   :  { %v4070_v20 = vsel %vm1013_vm2, %v4069_v42, %v4068_v2  ;;  %v4034_v24 = vmul.f32 %v9471_v49, %v3999_v27 }
0x1114   :  { %v4072_v23 = vsel %vm1016_vm3, %v4071_v56, %v4070_v20  ;;  %v4027_v20 = vmul.f32 %v9455_v48, %v3985_v55 }
0x1115   :  { %v4001_v30 = vpop.permute.xlu0 %4000 }
0x1116   :  { %v4003_v3 = vpop.permute.xlu1 %4002  ;;  %v4035_v43 = vmul.f32 %v9476_v22, %v4001_v30 }
0x1117   :  { %v4036_v2 = vmul.f32 %v9479_v34, %v4003_v3 }
0x1119   :  { %v4078_v3 = vrot.slane %v4036_v2, 7 }
0x111a   :  { %v3977_v12 = vpop.permute.xlu1 %3976 }
0x111b   :  { %v4023_v13 = vmul.f32 %v9485_v0, %v3977_v12  ;;  %v4074_v0 = vsel %vm1019_vm4, %v4073_v51, %v4072_v23  ;;  %v4075_v12 = vrot.slane %v4034_v24, 1 }
0x111d   :  { %v4055_v32 = vrot.slane %v4023_v13, 4  ;;  %v4028_v13 = vmul.f32 %v9460_v45, %v3987_v19  ;;  %v4076_v37 = vsel %vm1022_vm5, %v4075_v12, %v4074_v0 }
0x111e   :  { %v3981_v31 = vpop.permute.xlu1 %3980  ;;  %v4077_v22 = vsel %vm1025_vm6, %v4035_v43, %v4076_v37 }
0x111f   :  { %v4025_v7 = vmul.f32 %v9489_v14, %v3981_v31  ;;  %v4056_v9 = vsel %vm1013_vm2, %v4055_v32, %v4054_v47  ;;  %v4029_v14 = vmul.f32 %v9468_v8, %v3989_v26  ;;  %v4064_v41 = vrot.slane %v4028_v13, 7 }
0x1120   :  { %v4058_v51 = vsel %vm1016_vm3, %v4057_v10, %v4056_v9  ;;  %v4079_v19 = vsel %vm1028_vm7, %v4078_v3, %v4077_v22 }
0x1121   :  { %v4059_v42 = vrot.slane %v4025_v7, 2  ;;  %v4066_v27 = vrot.slane %v4029_v14, 6 }
0x1122   :  { %v3983_v49 = vpop.permute.xlu1 %3982 }
0x1123   :  { %v4026_v28 = vmul.f32 %v9493_v6, %v3983_v49  ;;  %v4060_v34 = vsel %vm1019_vm4, %v4059_v42, %v4058_v51 }
0x1125   :  { %v4061_v56 = vrot.slane %v4026_v28, 1 }
0x1126   :  { %v4005_v44 = vpop.permute.xlu1 %4004 }
0x1127   :  { %v4062_v45 = vsel %vm1022_vm5, %v4061_v56, %v4060_v34  ;;  %v4037_v6 = vmul.f32 %v9497_v61, %v4005_v44 }
0x1128   :  { %v4063_v8 = vsel %vm1025_vm6, %v4027_v20, %v4062_v45 }
0x1129   :  { %v4080_v53 = vrot.slane %v4037_v6, 6  ;;  %v4065_v26 = vsel %vm1028_vm7, %v4064_v41, %v4063_v8 }
0x112a   :  { %v9626_v5 = vsel %vm1031_vm8, %v4066_v27, %v4065_v26 }
0x112b   :  { %10811 = vst [vmem:[#allocation18_spill] sm:$0xff] %v9626_v5  ;;  %4082 = vrot.lane.b32.xlu0 %v9626_v5, %s7507_s24  ;;  %v9631_v48 = vsel %vm1031_vm8, %v4080_v53, %v4079_v19 }
0x112c   :  { %10812 = vst [vmem:[#allocation19_spill] sm:$0xff] %v9631_v48  ;;  %4084 = vrot.lane.b32.xlu1 %v9631_v48, %s7507_s24 }
0x119d   :  { %v4083_v61 = vpop.permute.xlu0 %4082 }
0x119e   :  { %6258 = vmatprep.mubr.msk.f32.mxu1 %vm75_vm0, %v4083_v61  ;;  %v4085_v55 = vpop.permute.xlu1 %4084 }
0x119f   :  { %6259 = vmatmul.mubr.msk.f32.vlgmr.msra.gmra.mrb[12].mxu1 %vm75_vm0, %v4085_v55 }
0x11a0   :  { %6311 = vmatpush3.bf16.msra.mxu1 %v7606_v16 }
0x1272   :  { %v9638_v39 = vpop.f32.mrb[12].mxu1 }
0x1273   :  { %v9640_v24 = vpop.f32.mrb[13].mxu1  ;;  %v4175_v32 = vrot.slane %v9638_v39, 3  ;;  %v4176_v31 = vrot.slane %v9638_v39, 4  ;;  %v4177_v7 = vrot.slane %v9638_v39, 5  ;;  %v4178_v16 = vrot.slane %v9638_v39, 6 }
0x1274   :  { %v4167_v10 = vrot.slane %v9640_v24, 2  ;;  %v4169_v12 = vrot.slane %v9640_v24, 4  ;;  %v4173_v42 = vrot.slane %v9640_v24, 1  ;;  %v4174_v13 = vrot.slane %v9638_v39, 2 }
0x1275   :  { %v9645_v30 = vadd.f32 %v4175_v32, %v7794_v18  ;;  %v9649_v23 = vadd.f32 %v4176_v31, %v7811_v29  ;;  %v9654_v47 = vadd.f32 %v4177_v7, %v7808_v25  ;;  %v9658_v0 = vadd.f32 %v4178_v16, %v7831_v38 }
0x1276   :  { %v9666_v2 = vadd.f32 %v4167_v10, %v7742_v52  ;;  %v9671_v49 = vadd.f32 %v4169_v12, %v7758_v60  ;;  %v9677_v28 = vadd.f32 %v9640_v24, %v7786_v11  ;;  %v4180_v37 = vrot.slane %v9638_v39, 1 }
0x1277   :  { %7247 = vtanh.f32 %v9645_v30  ;;  %v9682_v51 = vadd.f32 %v4173_v42, %v7834_v40  ;;  %v4179_v56 = vrot.slane %v9638_v39, 7  ;;  %v9687_v22 = vadd.f32 %v4174_v13, %v7800_v21 }
0x1278   :  { %7249 = vtanh.f32 %v9649_v23  ;;  %v9692_v3 = vadd.f32 %v4180_v37, %v7855_v58  ;;  %v4168_v44 = vrot.slane %v9640_v24, 3  ;;  %v4170_v45 = vrot.slane %v9640_v24, 5 }
0x1279   :  { %7251 = vtanh.f32 %v9654_v47  ;;  %v9696_v34 = vadd.f32 %v4179_v56, %v7826_v35  ;;  %v4171_v19 = vrot.slane %v9640_v24, 6  ;;  %v4172_v55 = vrot.slane %v9640_v24, 7 }
0x127a   :  { %7253 = vtanh.f32 %v9658_v0  ;;  %v9705_v6 = vadd.f32 %v4168_v44, %v7739_v50  ;;  %v9711_v53 = vadd.f32 %v4170_v45, %v7753_v57  ;;  %v9730_v24 = vadd.f32 %v9638_v39, %v7851_v54 }
0x127b   :  { %7255 = vtanh.f32 %v9666_v2  ;;  %v9718_v32 = vadd.f32 %v4171_v19, %v7773_v4  ;;  %v9724_v16 = vadd.f32 %v4172_v55, %v7769_v1  ;;  %v5980_v13 = vmul.f32 -1.442695, %v9645_v30 }
0x127c   :  { %7257 = vtanh.f32 %v9671_v49  ;;  %v5981_v39 = vmul.f32 -1.442695, %v9649_v23  ;;  %v5983_v37 = vmul.f32 -1.442695, %v9658_v0  ;;  %v5973_v45 = vmul.f32 -1.442695, %v9671_v49 }
0x127d   :  { %7259 = vtanh.f32 %v9677_v28  ;;  %v5977_v30 = vmul.f32 -1.442695, %v9677_v28  ;;  %v5986_v49 = vmul.f32 -1.442695, %v9692_v3  ;;  %v5972_v55 = vmul.f32 -1.442695, %v9705_v6 }
0x127e   :  { %7261 = vtanh.f32 %v9682_v51 }
0x127f   :  { %7263 = vtanh.f32 %v9687_v22 }
0x1280   :  { %7265 = vtanh.f32 %v9692_v3 }
0x1281   :  { %v7248_v43 = vpop.eup %7247  ;;  %7267 = vtanh.f32 %v9696_v34 }
0x1282   :  { %4423 = vrot.lane.b32.xlu0 %v7248_v43, %s7504_s0  ;;  %v7250_v9 = vpop.eup %7249  ;;  %7269 = vtanh.f32 %v9705_v6 }
0x1283   :  { %v7252_v14 = vpop.eup %7251  ;;  %7271 = vtanh.f32 %v9711_v53 }
0x1284   :  { %v7254_v20 = vpop.eup %7253  ;;  %7273 = vtanh.f32 %v9718_v32 }
0x1285   :  { %v7256_v41 = vpop.eup %7255  ;;  %7275 = vtanh.f32 %v9724_v16 }
0x1286   :  { %4425 = vrot.lane.b32.xlu0 %v7250_v9, %s7504_s0  ;;  %v7258_v27 = vpop.eup %7257  ;;  %7277 = vtanh.f32 %v9730_v24 }
0x1287   :  { %v7260_v8 = vpop.eup %7259  ;;  %7279 = vpow2.f32 %v5980_v13 }
0x1288   :  { %4417 = vrot.lane.b32.xlu1 %v7260_v8, %s7504_s0  ;;  %v7262_v26 = vpop.eup %7261  ;;  %7281 = vpow2.f32 %v5981_v39  ;;  %v5979_v8 = vmul.f32 -1.442695, %v9687_v22 }
0x1289   :  { %v7264_v61 = vpop.eup %7263 }
0x128a   :  { %4427 = vrot.lane.b32.xlu0 %v7252_v14, %s7504_s0  ;;  %v7266_v31 = vpop.eup %7265  ;;  %v5982_v14 = vmul.f32 -1.442695, %v9654_v47  ;;  %v5978_v47 = vmul.f32 -1.442695, %v9682_v51 }
0x128b   :  { %v7268_v7 = vpop.eup %7267 }
0x128c   :  { %4421 = vrot.lane.b32.xlu1 %v7264_v61, %s7504_s0  ;;  %v7270_v10 = vpop.eup %7269  ;;  %7283 = vpow2.f32 %v5982_v14 }
0x128d   :  { %v7272_v43 = vpop.eup %7271  ;;  %7285 = vpow2.f32 %v5983_v37  ;;  %v5975_v37 = vmul.f32 -1.442695, %v9718_v32 }
0x128e   :  { %4429 = vrot.lane.b32.xlu0 %v7254_v20, %s7504_s0  ;;  %v7274_v12 = vpop.eup %7273  ;;  %v5971_v20 = vmul.f32 -1.442695, %v9666_v2  ;;  %v5984_v2 = vmul.f32 -1.442695, %v9696_v34 }
0x128f   :  { %v7276_v9 = vpop.eup %7275 }
0x1290   :  { %4431 = vrot.lane.b32.xlu1 %v7268_v7, %s7504_s0  ;;  %v7278_v42 = vpop.eup %7277  ;;  %7287 = vpow2.f32 %v5971_v20 }
0x1291   :  { %v7280_v56 = vpop.eup %7279 }
0x1292   :  { %4405 = vrot.lane.b32.xlu0 %v7256_v41, %s7504_s0  ;;  %v4270_v44 = vadd.f32 1.0, %v7280_v56  ;;  %v7282_v41 = vpop.eup %7281 }
0x1294   :  { %4407 = vrot.lane.b32.xlu1 %v7270_v10, %s7504_s0  ;;  %7289 = vrcp.f32 %v4270_v44 }
0x1295   :  { %7291 = vpow2.f32 %v5973_v45 }
0x1296   :  { %4409 = vrot.lane.b32.xlu0 %v7258_v27, %s7504_s0  ;;  %v4271_v27 = vadd.f32 1.0, %v7282_v41  ;;  %v7284_v23 = vpop.eup %7283  ;;  %7293 = vpow2.f32 %v5977_v30 }
0x1297   :  { %v4272_v0 = vadd.f32 1.0, %v7284_v23  ;;  %v7286_v19 = vpop.eup %7285 }
0x1298   :  { %4411 = vrot.lane.b32.xlu1 %v7272_v43, %s7504_s0  ;;  %7295 = vrcp.f32 %v4271_v27  ;;  %v4273_v28 = vadd.f32 1.0, %v7286_v19  ;;  %v5974_v43 = vmul.f32 -1.442695, %v9711_v53  ;;  %v5976_v27 = vmul.f32 -1.442695, %v9724_v16 }
0x1299   :  { %7297 = vpow2.f32 %v5979_v8 }
0x129a   :  { %4419 = vrot.lane.b32.xlu0 %v7262_v26, %s7504_s0  ;;  %7299 = vpow2.f32 %v5978_v47  ;;  %v7288_v26 = vpop.eup %7287 }
0x129b   :  { %7301 = vrcp.f32 %v4272_v0  ;;  %v4261_v7 = vadd.f32 1.0, %v7288_v26 }
0x129c   :  { %4413 = vrot.lane.b32.xlu1 %v7274_v12, %s7504_s0  ;;  %7303 = vpow2.f32 %v5984_v2 }
0x129d   :  { %7305 = vpow2.f32 %v5986_v49  ;;  %v5985_v49 = vmul.f32 -1.442695, %v9730_v24 }
0x129e   :  { %4435 = vrot.lane.b32.xlu0 %v7266_v31, %s7504_s0  ;;  %v9749_v61 = vpop.eup %7289  ;;  %7307 = vrcp.f32 %v4273_v28 }
0x129f   :  { %v7292_v31 = vpop.eup %7291  ;;  %7309 = vpow2.f32 %v5972_v55 }
0x12a0   :  { %4415 = vrot.lane.b32.xlu1 %v7276_v9, %s7504_s0  ;;  %v7294_v10 = vpop.eup %7293  ;;  %7311 = vrcp.f32 %v4261_v7 }
0x12a1   :  { %v4267_v13 = vadd.f32 1.0, %v7294_v10  ;;  %7313 = vpow2.f32 %v5974_v43 }
0x12a2   :  { %v9754_v3 = vpop.eup %7295 }
0x12a3   :  { %v7298_v9 = vpop.eup %7297 }
0x12a4   :  { %4433 = vrot.lane.b32.xlu1 %v7278_v42, %s7504_s0  ;;  %v4263_v42 = vadd.f32 1.0, %v7292_v31  ;;  %v7300_v6 = vpop.eup %7299  ;;  %v4269_v41 = vadd.f32 1.0, %v7298_v9 }
0x12a5   :  { %v9759_v39 = vpop.eup %7301  ;;  %v4268_v53 = vadd.f32 1.0, %v7300_v6 }
0x12a6   :  { %v7304_v20 = vpop.eup %7303  ;;  %7315 = vrcp.f32 %v4263_v42 }
0x12a7   :  { %v7306_v44 = vpop.eup %7305  ;;  %7317 = vrcp.f32 %v4267_v13  ;;  %v4274_v47 = vadd.f32 1.0, %v7304_v20 }
0x12a8   :  { %v9764_v45 = vpop.eup %7307  ;;  %7319 = vpow2.f32 %v5975_v37  ;;  %v4276_v32 = vadd.f32 1.0, %v7306_v44 }
0x12a9   :  { %7321 = vrcp.f32 %v4268_v53  ;;  %v7310_v8 = vpop.eup %7309 }
0x12aa   :  { %7323 = vrcp.f32 %v4269_v41  ;;  %v9769_v0 = vpop.eup %7311  ;;  %v4262_v16 = vadd.f32 1.0, %v7310_v8 }
0x12ab   :  { %7325 = vpow2.f32 %v5976_v27  ;;  %v7314_v28 = vpop.eup %7313 }
0x12ac   :  { %7327 = vrcp.f32 %v4276_v32  ;;  %v4264_v24 = vadd.f32 1.0, %v7314_v28 }
0x12ad   :  { %7329 = vrcp.f32 %v4274_v47 }
0x12ae   :  { %7331 = vpow2.f32 %v5985_v49 }
0x12af   :  { %7333 = vrcp.f32 %v4262_v16 }
0x12b0   :  { %v9774_v26 = vpop.eup %7315  ;;  %7335 = vrcp.f32 %v4264_v24 }
0x12b1   :  { %v9776_v55 = vpop.eup %7317 }
0x12b2   :  { %v7320_v10 = vpop.eup %7319 }
0x12f4   :  { %v4424_v22 = vpop.permute.xlu0 %4423 }
0x12f5   :  { %v4462_v51 = vmul.f32 %v9749_v61, %v4424_v22 }
0x12f7   :  { %4503 = vrot.lane.b32.xlu0 %v4462_v51, %s7505_s5 }
0x12f8   :  { %v4426_v34 = vpop.permute.xlu0 %4425 }
0x12f9   :  { %v4463_v12 = vmul.f32 %v9754_v3, %v4426_v34  ;;  %v9781_v34 = vpop.eup %7321 }
0x12fa   :  { %v4418_v51 = vpop.permute.xlu1 %4417 }
0x12fb   :  { %4505 = vrot.lane.b32.xlu0 %v4463_v12, %s7505_s5  ;;  %v4459_v7 = vmul.f32 %v9776_v55, %v4418_v51  ;;  %v9784_v12 = vpop.eup %7323 }
0x12fc   :  { %v4428_v14 = vpop.permute.xlu0 %4427  ;;  %v7326_v13 = vpop.eup %7325 }
0x12fd   :  { %v4464_v56 = vmul.f32 %v9759_v39, %v4428_v14  ;;  %4497 = vrot.lane.b32.xlu1 %v4459_v7, %s7505_s5  ;;  %v4265_v14 = vadd.f32 1.0, %v7320_v10  ;;  %v9789_v37 = vpop.eup %7327 }
0x12fe   :  { %v4422_v9 = vpop.permute.xlu1 %4421  ;;  %v9792_v20 = vpop.eup %7329 }
0x12ff   :  { %4507 = vrot.lane.b32.xlu0 %v4464_v56, %s7505_s5  ;;  %v4461_v6 = vmul.f32 %v9784_v12, %v4422_v9  ;;  %7337 = vrcp.f32 %v4265_v14  ;;  %v7332_v27 = vpop.eup %7331  ;;  %v4350_v9 = vrot.slane %v9504_v15, 7 }
0x1300   :  { %v4430_v30 = vpop.permute.xlu0 %4429  ;;  %v4275_v47 = vadd.f32 1.0, %v7332_v27  ;;  %v4353_v27 = vrot.slane %v9552_v63, 7 }
0x1301   :  { %v4465_v23 = vmul.f32 %v9764_v45, %v4430_v30  ;;  %4501 = vrot.lane.b32.xlu1 %v4461_v6, %s7505_s5  ;;  %v4266_v30 = vadd.f32 1.0, %v7326_v13  ;;  %v4351_v13 = vrot.slane %v9509_v33, 7 }
0x1302   :  { %v4432_v53 = vpop.permute.xlu1 %4431  ;;  %v4385_v33 = vmul.f32 %v9764_v45, %v4353_v27 }
0x1303   :  { %4509 = vrot.lane.b32.xlu0 %v4465_v23, %s7505_s5  ;;  %v4466_v41 = vmul.f32 %v9792_v20, %v4432_v53  ;;  %v9798_v23 = vpop.eup %7333  ;;  %7339 = vrcp.f32 %v4266_v30 }
0x1304   :  { %v4406_v19 = vpop.permute.xlu0 %4405  ;;  %7341 = vrcp.f32 %v4275_v47 }
0x1305   :  { %v4453_v2 = vmul.f32 %v9769_v0, %v4406_v19  ;;  %4511 = vrot.lane.b32.xlu1 %v4466_v41, %s7505_s5  ;;  %v9802_v19 = vpop.eup %7335 }
0x1306   :  { %v4408_v32 = vpop.permute.xlu1 %4407 }
0x1307   :  { %4485 = vrot.lane.b32.xlu0 %v4453_v2, %s7505_s5  ;;  %v4454_v8 = vmul.f32 %v9798_v23, %v4408_v32 }
0x1308   :  { %v4410_v22 = vpop.permute.xlu0 %4409 }
0x1309   :  { %v4455_v31 = vmul.f32 %v9774_v26, %v4410_v22  ;;  %4487 = vrot.lane.b32.xlu1 %v4454_v8, %s7505_s5  ;;  %v9806_v28 = vpop.eup %7337 }
0x130a   :  { %v4412_v2 = vpop.permute.xlu1 %4411 }
0x130b   :  { %4489 = vrot.lane.b32.xlu0 %v4455_v31, %s7505_s5  ;;  %v4456_v49 = vmul.f32 %v9802_v19, %v4412_v2  ;;  %v4341_v2 = vrot.slane %v9520_v36, 7 }
0x130c   :  { %v4420_v43 = vpop.permute.xlu0 %4419 }
0x130d   :  { %v4460_v42 = vmul.f32 %v9781_v34, %v4420_v43  ;;  %4491 = vrot.lane.b32.xlu1 %v4456_v49, %s7505_s5  ;;  %v9810_v51 = vpop.eup %7339  ;;  %v4373_v49 = vmul.f32 %v9769_v0, %v4341_v2 }
0x130e   :  { %v4414_v16 = vpop.permute.xlu1 %4413  ;;  %v9814_v10 = vpop.eup %7341 }
0x130f   :  { %4499 = vrot.lane.b32.xlu0 %v4460_v42, %s7505_s5  ;;  %v4457_v22 = vmul.f32 %v9806_v28, %v4414_v16  ;;  %v4382_v42 = vmul.f32 %v9749_v61, %v4350_v9 }
0x1310   :  { %v4436_v56 = vpop.permute.xlu0 %4435 }
0x1311   :  { %v4468_v44 = vmul.f32 %v9789_v37, %v4436_v56  ;;  %4493 = vrot.lane.b32.xlu1 %v4457_v22, %s7505_s5  ;;  %v4383_v56 = vmul.f32 %v9754_v3, %v4351_v13  ;;  %v4343_v22 = vrot.slane %v9528_v62, 7  ;;  %v10816_v62 = vld [vmem:[#allocation13_spill] sm:$0xff] }
0x1312   :  { %v4416_v31 = vpop.permute.xlu1 %4415 }
0x1313   :  { %4515 = vrot.lane.b32.xlu0 %v4468_v44, %s7505_s5  ;;  %v4458_v7 = vmul.f32 %v9810_v51, %v4416_v31  ;;  %v4352_v44 = vrot.slane %v9513_v59, 7  ;;  %v4375_v36 = vmul.f32 %v9774_v26, %v4343_v22 }
0x1315   :  { %4495 = vrot.lane.b32.xlu1 %v4458_v7, %s7505_s5  ;;  %v4384_v15 = vmul.f32 %v9759_v39, %v4352_v44  ;;  %v4347_v7 = vrot.slane %v9539_v46, 7 }
0x1316   :  { %v4434_v24 = vpop.permute.xlu1 %4433 }
0x1317   :  { %v4467_v43 = vmul.f32 %v9814_v10, %v4434_v24  ;;  %v4379_v24 = vmul.f32 %v9776_v55, %v4347_v7 }
0x1319   :  { %4513 = vrot.lane.b32.xlu1 %v4467_v43, %s7505_s5 }
0x1369   :  { %v4504_v6 = vpop.permute.xlu0 %4503 }
0x136a   :  { %v9821_v14 = vadd.f32 %v4504_v6, %v4382_v42  ;;  %v4348_v42 = vrot.slane %v9549_v17, 7  ;;  %v10818_v17 = vld [vmem:[#allocation7_spill] sm:$0xff] }
0x136b   :  { %v4356_v27 = vrot.slane %v10818_v17, 7 }
0x136c   :  { %7343 = vtanh.f32 %v9821_v14  ;;  %v4380_v46 = vmul.f32 %v9781_v34, %v4348_v42 }
0x136d   :  { %v4506_v53 = vpop.permute.xlu0 %4505 }
0x136e   :  { %v9826_v41 = vadd.f32 %v4506_v53, %v4383_v56  ;;  %v4349_v56 = vrot.slane %v10816_v62, 7 }
0x136f   :  { %v4498_v6 = vpop.permute.xlu1 %4497 }
0x1370   :  { %7345 = vtanh.f32 %v9826_v41  ;;  %v9853_v53 = vadd.f32 %v4498_v6, %v4379_v24  ;;  %v4381_v44 = vmul.f32 %v9784_v12, %v4349_v56 }
0x1371   :  { %v4508_v30 = vpop.permute.xlu0 %4507 }
0x1372   :  { %v9831_v32 = vadd.f32 %v4508_v30, %v4384_v15  ;;  %10817 = vst [vmem:[#allocation13_spill] sm:$0xff] %v9853_v53 }
0x1374   :  { %10813 = vst [vmem:[#allocation22_spill] sm:$0xff] %v9831_v32  ;;  %7347 = vtanh.f32 %v9831_v32 }
0x1375   :  { %v4510_v8 = vpop.permute.xlu0 %4509 }
0x1376   :  { %v7344_v47 = vpop.eup %7343  ;;  %v9836_v59 = vadd.f32 %v4510_v8, %v4385_v33  ;;  %v4502_v33 = vpop.permute.xlu1 %4501 }
0x1377   :  { %4599 = vrot.lane.b32.xlu0 %v7344_v47, %s7506_s23  ;;  %v10819_v47 = vld [vmem:[#allocation9_spill] sm:$0xff] }
0x1378   :  { %7349 = vtanh.f32 %v9836_v59  ;;  %v4354_v2 = vrot.slane %v10819_v47, 7 }
0x1379   :  { %v4486_v16 = vpop.permute.xlu0 %4485 }
0x137a   :  { %v7346_v63 = vpop.eup %7345  ;;  %v9842_v31 = vadd.f32 %v4486_v16, %v4373_v49  ;;  %v9864_v49 = vadd.f32 %v4502_v33, %v4381_v44  ;;  %v4388_v16 = vmul.f32 %v9789_v37, %v4356_v27  ;;  %v10822_v44 = vld [vmem:[#allocation16_spill] sm:$0xff] }
0x137b   :  { %4601 = vrot.lane.b32.xlu0 %v7346_v63, %s7506_s23  ;;  %v4386_v63 = vmul.f32 %v9792_v20, %v4354_v2  ;;  %v10823_v2 = vld [vmem:[#allocation2_spill] sm:$0xff] }
0x137c   :  { %10814 = vst [vmem:[#allocation23_spill] sm:$0xff] %v9842_v31  ;;  %7351 = vtanh.f32 %v9842_v31 }
0x137d   :  { %v4490_v43 = vpop.permute.xlu0 %4489 }
0x137e   :  { %v7348_v9 = vpop.eup %7347  ;;  %v9850_v13 = vadd.f32 %v4490_v43, %v4375_v36  ;;  %v4512_v36 = vpop.permute.xlu1 %4511  ;;  %v10821_v43 = vld [vmem:[#allocation8_spill] sm:$0xff] }
0x137f   :  { %4603 = vrot.lane.b32.xlu0 %v7348_v9, %s7506_s23  ;;  %v4342_v9 = vrot.slane %v10821_v43, 7  ;;  %v9874_v42 = vadd.f32 %v4512_v36, %v4386_v63 }
0x1380   :  { %10815 = vst [vmem:[#allocation24_spill] sm:$0xff] %v9850_v13  ;;  %7353 = vtanh.f32 %v9850_v13 }
0x1381   :  { %7355 = vtanh.f32 %v9853_v53  ;;  %v4500_v15 = vpop.permute.xlu0 %4499  ;;  %v4374_v6 = vmul.f32 %v9798_v23, %v4342_v9  ;;  %v10824_v9 = vld [vmem:[#allocation15_spill] sm:$0xff] }
0x1382   :  { %v7350_v30 = vpop.eup %7349  ;;  %v9861_v8 = vadd.f32 %v4500_v15, %v4380_v46  ;;  %v4488_v56 = vpop.permute.xlu1 %4487  ;;  %v4344_v15 = vrot.slane %v10822_v44, 7 }
0x1383   :  { %4605 = vrot.lane.b32.xlu0 %v7350_v30, %s7506_s23  ;;  %v9881_v30 = vadd.f32 %v4488_v56, %v4374_v6  ;;  %v4346_v6 = vrot.slane %v10824_v9, 7 }
0x1384   :  { %7357 = vtanh.f32 %v9861_v8  ;;  %v4376_v17 = vmul.f32 %v9802_v19, %v4344_v15  ;;  %v10826_v15 = vld [vmem:[#allocation3_spill] sm:$0xff] }
0x1385   :  { %7359 = vtanh.f32 %v9864_v49  ;;  %v4516_v22 = vpop.permute.xlu0 %4515  ;;  %v4378_v56 = vmul.f32 %v9810_v51, %v4346_v6 }
0x1386   :  { %v7352_v7 = vpop.eup %7351  ;;  %v9871_v24 = vadd.f32 %v4516_v22, %v4388_v16  ;;  %v4492_v33 = vpop.permute.xlu1 %4491  ;;  %v4345_v16 = vrot.slane %v10823_v2, 7 }
0x1387   :  { %4581 = vrot.lane.b32.xlu0 %v7352_v7, %s7506_s23  ;;  %v9888_v63 = vadd.f32 %v4492_v33, %v4376_v17  ;;  %v4355_v17 = vrot.slane %v10826_v15, 7 }
0x1388   :  { %10820 = vst [vmem:[#allocation7_spill] sm:$0xff] %v9871_v24  ;;  %7361 = vtanh.f32 %v9871_v24  ;;  %v4377_v22 = vmul.f32 %v9806_v28, %v4345_v16 }
0x1389   :  { %7363 = vtanh.f32 %v9874_v42  ;;  %v4387_v33 = vmul.f32 %v9814_v10, %v4355_v17 }
0x138a   :  { %v7354_v62 = vpop.eup %7353  ;;  %7365 = vtanh.f32 %v9881_v30  ;;  %v4494_v36 = vpop.permute.xlu1 %4493 }
0x138b   :  { %v7356_v46 = vpop.eup %7355  ;;  %4585 = vrot.lane.b32.xlu0 %v7354_v62, %s7506_s23  ;;  %7367 = vtanh.f32 %v9888_v63  ;;  %v9895_v62 = vadd.f32 %v4494_v36, %v4377_v22 }
0x138c   :  { %4593 = vrot.lane.b32.xlu1 %v7356_v46, %s7506_s23 }
0x138d   :  { %10825 = vst [vmem:[#allocation9_spill] sm:$0xff] %v9895_v62  ;;  %7369 = vtanh.f32 %v9895_v62 }
0x138e   :  { %v7358_v27 = vpop.eup %7357  ;;  %v4496_v46 = vpop.permute.xlu1 %4495 }
0x138f   :  { %v7360_v47 = vpop.eup %7359  ;;  %4595 = vrot.lane.b32.xlu0 %v7358_v27, %s7506_s23  ;;  %v9902_v27 = vadd.f32 %v4496_v46, %v4378_v56 }
0x1390   :  { %4597 = vrot.lane.b32.xlu1 %v7360_v47, %s7506_s23 }
0x1391   :  { %7371 = vtanh.f32 %v9902_v27 }
0x1392   :  { %v7362_v7 = vpop.eup %7361  ;;  %v4514_v47 = vpop.permute.xlu1 %4513 }
0x1393   :  { %v7364_v43 = vpop.eup %7363  ;;  %4611 = vrot.lane.b32.xlu0 %v7362_v7, %s7506_s23  ;;  %v9907_v16 = vadd.f32 %v4514_v47, %v4387_v33 }
0x1394   :  { %4607 = vrot.lane.b32.xlu1 %v7364_v43, %s7506_s23  ;;  %v7366_v44 = vpop.eup %7365 }
0x1395   :  { %v7368_v2 = vpop.eup %7367  ;;  %10827 = vst [vmem:[#allocation8_spill] sm:$0xff] %v9907_v16  ;;  %7373 = vtanh.f32 %v9907_v16 }
0x1397   :  { %v7370_v22 = vpop.eup %7369 }
0x1398   :  { %4583 = vrot.lane.b32.xlu1 %v7366_v44, %s7506_s23 }
0x139b   :  { %v7372_v7 = vpop.eup %7371 }
0x139c   :  { %4587 = vrot.lane.b32.xlu1 %v7368_v2, %s7506_s23 }
0x139f   :  { %v7374_v36 = vpop.eup %7373 }
0x13a0   :  { %4589 = vrot.lane.b32.xlu1 %v7370_v22, %s7506_s23 }
0x13a4   :  { %4591 = vrot.lane.b32.xlu1 %v7372_v7, %s7506_s23 }
0x13a8   :  { %4609 = vrot.lane.b32.xlu1 %v7374_v36, %s7506_s23 }
0x13e9   :  { %v4600_v43 = vpop.permute.xlu0 %4599 }
0x13ea   :  { %v4638_v16 = vmul.f32 %v9749_v61, %v4600_v43 }
0x13ed   :  { %v4602_v9 = vpop.permute.xlu0 %4601 }
0x13ee   :  { %v4639_v13 = vmul.f32 %v9754_v3, %v4602_v9 }
0x13f1   :  { %v4604_v6 = vpop.permute.xlu0 %4603 }
0x13f5   :  { %v4606_v56 = vpop.permute.xlu0 %4605 }
0x13f9   :  { %v4582_v44 = vpop.permute.xlu0 %4581 }
0x13fa   :  { %v4629_v47 = vmul.f32 %v9769_v0, %v4582_v44  ;;  %v4640_v0 = vmul.f32 %v9759_v39, %v4604_v6  ;;  %v4676_v44 = vrot.slane %v4638_v16, 5 }
0x13fc   :  { %v4661_v5 = vrot.slane %v4629_v47, 6  ;;  %v4680_v3 = vrot.slane %v4640_v0, 3  ;;  %v10828_v0 = vmov 0.0  }
0x13fd   :  { %v4586_v33 = vpop.permute.xlu0 %4585 }
0x13fe   :  { %v4594_v46 = vpop.permute.xlu1 %4593  ;;  %v4631_v22 = vmul.f32 %v9774_v26, %v4586_v33  ;;  %v4641_v26 = vmul.f32 %v9764_v45, %v4606_v56  ;;  %v4678_v33 = vrot.slane %v4639_v13, 4 }
0x1400   :  { %v4664_v62 = vrot.slane %v4631_v22, 4 }
0x1401   :  { %v4596_v36 = vpop.permute.xlu0 %4595 }
0x1402   :  { %v4598_v15 = vpop.permute.xlu1 %4597  ;;  %v4636_v39 = vmul.f32 %v9781_v34, %v4596_v36  ;;  %v4635_v34 = vmul.f32 %v9776_v55, %v4594_v46 }
0x1403   :  { %v4637_v7 = vmul.f32 %v9784_v12, %v4598_v15 }
0x1404   :  { %v4673_v6 = vrot.slane %v4636_v39, 7 }
0x1405   :  { %v4675_v32 = vrot.slane %v4637_v7, 6  ;;  %v4612_v47 = vpop.permute.xlu0 %4611 }
0x1406   :  { %v4608_v17 = vpop.permute.xlu1 %4607  ;;  %v4644_v16 = vmul.f32 %v9789_v37, %v4612_v47 }
0x1407   :  { %v4642_v45 = vmul.f32 %v9792_v20, %v4608_v17 }
0x1408   :  { %v4687_v17 = vrot.slane %v4644_v16, 7 }
0x1409   :  { %v4684_v56 = vrot.slane %v4642_v45, 1 }
0x140a   :  { %v4584_v2 = vpop.permute.xlu1 %4583 }
0x140b   :  { %v4630_v48 = vmul.f32 %v9798_v23, %v4584_v2 }
0x140d   :  { %v4662_v31 = vrot.slane %v4630_v48, 5  ;;  %v4677_v48 = vsel %vm1013_vm2, %v4676_v44, %v4675_v32 }
0x140e   :  { %v4588_v53 = vpop.permute.xlu1 %4587  ;;  %v4679_v13 = vsel %vm1016_vm3, %v4678_v33, %v4677_v48 }
0x140f   :  { %v4632_v24 = vmul.f32 %v9802_v19, %v4588_v53  ;;  %v4663_v23 = vsel %vm1013_vm2, %v4662_v31, %v4661_v5  ;;  %v4682_v19 = vrot.slane %v4641_v26, 2 }
0x1410   :  { %v4665_v15 = vsel %vm1016_vm3, %v4664_v62, %v4663_v23 }
0x1411   :  { %v4666_v61 = vrot.slane %v4632_v24, 3 }
0x1412   :  { %v4590_v12 = vpop.permute.xlu1 %4589 }
0x1413   :  { %v4633_v43 = vmul.f32 %v9806_v28, %v4590_v12  ;;  %v4667_v53 = vsel %vm1019_vm4, %v4666_v61, %v4665_v15  ;;  %v4681_v28 = vsel %vm1019_vm4, %v4680_v3, %v4679_v13 }
0x1414   :  { %v4683_v62 = vsel %vm1022_vm5, %v4682_v19, %v4681_v28 }
0x1415   :  { %v4668_v5 = vrot.slane %v4633_v43, 2  ;;  %v4685_v22 = vsel %vm1025_vm6, %v4684_v56, %v4683_v62 }
0x1416   :  { %v4592_v31 = vpop.permute.xlu1 %4591 }
0x1417   :  { %v4634_v24 = vmul.f32 %v9810_v51, %v4592_v31  ;;  %v4669_v32 = vsel %vm1022_vm5, %v4668_v5, %v4667_v53 }
0x1419   :  { %v4670_v9 = vrot.slane %v4634_v24, 1 }
0x141a   :  { %v4610_v20 = vpop.permute.xlu1 %4609 }
0x141b   :  { %v4671_v2 = vsel %vm1025_vm6, %v4670_v9, %v4669_v32  ;;  %v4643_v37 = vmul.f32 %v9814_v10, %v4610_v20 }
0x141c   :  { %v4672_v51 = vsel %vm1028_vm7, %v4635_v34, %v4671_v2 }
0x141d   :  { %v4686_v7 = vsel %vm1028_vm7, %v4643_v37, %v4685_v22  ;;  %v9943_v36 = vsel %vm1031_vm8, %v4673_v6, %v4672_v51 }
0x141e   :  { %4689 = vrot.lane.b32.xlu0 %v9943_v36, %s7507_s24  ;;  %v9948_v55 = vsel %vm1031_vm8, %v4687_v17, %v4686_v7 }
0x141f   :  { %4691 = vrot.lane.b32.xlu1 %v9948_v55, %s7507_s24 }
0x1490   :  { %v4690_v46 = vpop.permute.xlu0 %4689 }
0x1491   :  { %6265 = vmatprep.mubr.msk.f32.mxu1 %vm75_vm0, %v4690_v46  ;;  %v4692_v10 = vpop.permute.xlu1 %4691 }
0x1492   :  { %6266 = vmatmul.mubr.msk.f32.vlgmr.msra.gmra.mrb[14].mxu1 %vm75_vm0, %v4692_v10 }
0x1493   :  { %5505 = vmatprep.mubr.f32.mxu1 %v10828_v0 }
0x1565   :  { %v9955_v26 = vpop.f32.mrb[14].mxu1 }
0x1566   :  { %v9957_v23 = vpop.f32.mrb[15].mxu1  ;;  %v4782_v44 = vrot.slane %v9955_v26, 2  ;;  %v4783_v12 = vrot.slane %v9955_v26, 3  ;;  %v4785_v33 = vrot.slane %v9955_v26, 5  ;;  %v4781_v39 = vrot.slane %v9955_v26, 1 }
0x1567   :  { %v4775_v47 = vrot.slane %v9957_v23, 2  ;;  %v9989_v45 = vadd.f32 %v9957_v23, %v7834_v40  ;;  %v4776_v24 = vrot.slane %v9957_v23, 3  ;;  %v4780_v6 = vrot.slane %v9957_v23, 7 }
0x1568   :  { %v9962_v15 = vadd.f32 %v4782_v44, %v7794_v18  ;;  %v9966_v61 = vadd.f32 %v4783_v12, %v7811_v29  ;;  %v9970_v43 = vadd.f32 %v4785_v33, %v7831_v38  ;;  %v4777_v18 = vrot.slane %v9957_v23, 4 }
0x1569   :  { %v9978_v3 = vadd.f32 %v4775_v47, %v7739_v50  ;;  %v4779_v38 = vrot.slane %v9957_v23, 6  ;;  %v4786_v50 = vrot.slane %v9955_v26, 6  ;;  %v9999_v31 = vadd.f32 %v4781_v39, %v7800_v21 }
0x156a   :  { %7375 = vtanh.f32 %v9962_v15  ;;  %v9983_v19 = vadd.f32 %v4777_v18, %v7753_v57  ;;  %v4784_v57 = vrot.slane %v9955_v26, 4  ;;  %v10014_v21 = vadd.f32 %v9955_v26, %v7855_v58 }
0x156b   :  { %7377 = vtanh.f32 %v9966_v61  ;;  %v9994_v5 = vadd.f32 %v4779_v38, %v7769_v1  ;;  %v10003_v16 = vadd.f32 %v4786_v50, %v7826_v35  ;;  %v4774_v1 = vrot.slane %v9957_v23, 1 }
0x156c   :  { %7379 = vtanh.f32 %v9970_v43  ;;  %v10007_v13 = vadd.f32 %v4784_v57, %v7808_v25  ;;  %v4778_v58 = vrot.slane %v9957_v23, 5  ;;  %v10027_v62 = vadd.f32 %v4776_v24, %v7758_v60 }
0x156d   :  { %7381 = vtanh.f32 %v9978_v3  ;;  %v10020_v25 = vadd.f32 %v4774_v1, %v7742_v52  ;;  %v4787_v20 = vrot.slane %v9955_v26, 7  ;;  %v10041_v17 = vadd.f32 %v4780_v6, %v7786_v11 }
0x156e   :  { %7383 = vtanh.f32 %v9983_v19  ;;  %v10034_v34 = vadd.f32 %v4778_v58, %v7773_v4  ;;  %v5998_v7 = vmul.f32 -1.442695, %v9962_v15  ;;  %v6001_v46 = vmul.f32 -1.442695, %v9970_v43 }
0x156f   :  { %7385 = vtanh.f32 %v9989_v45  ;;  %v10047_v4 = vadd.f32 %v4787_v20, %v7851_v54  ;;  %v5999_v54 = vmul.f32 -1.442695, %v9966_v61  ;;  %v5990_v26 = vmul.f32 -1.442695, %v9978_v3 }
0x1570   :  { %7387 = vtanh.f32 %v9994_v5  ;;  %v5992_v12 = vmul.f32 -1.442695, %v9983_v19  ;;  %v5996_v15 = vmul.f32 -1.442695, %v9989_v45  ;;  %v5994_v61 = vmul.f32 -1.442695, %v9994_v5 }
0x1571   :  { %7389 = vtanh.f32 %v9999_v31  ;;  %v5997_v43 = vmul.f32 -1.442695, %v9999_v31  ;;  %v6002_v18 = vmul.f32 -1.442695, %v10003_v16  ;;  %v5989_v5 = vmul.f32 -1.442695, %v10020_v25 }
0x1572   :  { %7391 = vtanh.f32 %v10003_v16  ;;  %v5995_v20 = vmul.f32 -1.442695, %v10041_v17 }
0x1573   :  { %7393 = vtanh.f32 %v10007_v13 }
0x1574   :  { %v7376_v48 = vpop.eup %7375  ;;  %7395 = vtanh.f32 %v10014_v21 }
0x1575   :  { %5030 = vrot.lane.b32.xlu1 %v7376_v48, %s7504_s0  ;;  %v7378_v29 = vpop.eup %7377  ;;  %7397 = vtanh.f32 %v10020_v25 }
0x1576   :  { %v7380_v53 = vpop.eup %7379  ;;  %7399 = vtanh.f32 %v10027_v62 }
0x1577   :  { %v7382_v40 = vpop.eup %7381  ;;  %7401 = vtanh.f32 %v10034_v34 }
0x1578   :  { %v7384_v35 = vpop.eup %7383  ;;  %7403 = vtanh.f32 %v10041_v17 }
0x1579   :  { %5032 = vrot.lane.b32.xlu1 %v7378_v29, %s7504_s0  ;;  %v7386_v28 = vpop.eup %7385  ;;  %7405 = vtanh.f32 %v10047_v4  ;;  %v6000_v29 = vmul.f32 -1.442695, %v10007_v13 }
0x157a   :  { %5026 = vrot.lane.b32.xlu0 %v7386_v28, %s7504_s0  ;;  %v7388_v32 = vpop.eup %7387  ;;  %7407 = vpow2.f32 %v5998_v7  ;;  %v6003_v7 = vmul.f32 -1.442695, %v10047_v4 }
0x157b   :  { %v7390_v9 = vpop.eup %7389  ;;  %7409 = vpow2.f32 %v5999_v54 }
0x157c   :  { %v7392_v52 = vpop.eup %7391  ;;  %7411 = vpow2.f32 %v6001_v46 }
0x157d   :  { %5036 = vrot.lane.b32.xlu1 %v7380_v53, %s7504_s0  ;;  %v7394_v56 = vpop.eup %7393  ;;  %7413 = vpow2.f32 %v5990_v26  ;;  %v6004_v53 = vmul.f32 -1.442695, %v10014_v21  ;;  %v5991_v21 = vmul.f32 -1.442695, %v10027_v62 }
0x157e   :  { %5028 = vrot.lane.b32.xlu0 %v7390_v9, %s7504_s0  ;;  %v7396_v60 = vpop.eup %7395 }
0x157f   :  { %v7398_v2 = vpop.eup %7397 }
0x1580   :  { %v7400_v37 = vpop.eup %7399 }
0x1581   :  { %5014 = vrot.lane.b32.xlu1 %v7382_v40, %s7504_s0  ;;  %v7402_v22 = vpop.eup %7401 }
0x1582   :  { %5034 = vrot.lane.b32.xlu0 %v7394_v56, %s7504_s0  ;;  %v7404_v11 = vpop.eup %7403 }
0x1583   :  { %v7406_v51 = vpop.eup %7405 }
0x1584   :  { %v7408_v10 = vpop.eup %7407 }
0x1585   :  { %5018 = vrot.lane.b32.xlu1 %v7384_v35, %s7504_s0  ;;  %v4877_v23 = vadd.f32 1.0, %v7408_v10  ;;  %v7410_v44 = vpop.eup %7409 }
0x1586   :  { %5012 = vrot.lane.b32.xlu0 %v7398_v2, %s7504_s0  ;;  %v4878_v33 = vadd.f32 1.0, %v7410_v44  ;;  %v7412_v47 = vpop.eup %7411 }
0x1587   :  { %7415 = vrcp.f32 %v4877_v23  ;;  %v4880_v48 = vadd.f32 1.0, %v7412_v47  ;;  %v7414_v3 = vpop.eup %7413 }
0x1588   :  { %7417 = vpow2.f32 %v5992_v12  ;;  %v4869_v45 = vadd.f32 1.0, %v7414_v3 }
0x1589   :  { %5022 = vrot.lane.b32.xlu1 %v7388_v32, %s7504_s0  ;;  %7419 = vrcp.f32 %v4878_v33 }
0x158a   :  { %5016 = vrot.lane.b32.xlu0 %v7400_v37, %s7504_s0  ;;  %7421 = vpow2.f32 %v5996_v15 }
0x158b   :  { %7423 = vpow2.f32 %v5994_v61 }
0x158c   :  { %7425 = vrcp.f32 %v4880_v48 }
0x158d   :  { %5038 = vrot.lane.b32.xlu1 %v7392_v52, %s7504_s0  ;;  %7427 = vpow2.f32 %v5997_v43  ;;  %v5993_v52 = vmul.f32 -1.442695, %v10034_v34 }
0x158e   :  { %5020 = vrot.lane.b32.xlu0 %v7402_v22, %s7504_s0  ;;  %7429 = vpow2.f32 %v6002_v18 }
0x158f   :  { %7431 = vpow2.f32 %v6000_v29 }
0x1590   :  { %7433 = vpow2.f32 %v6004_v53 }
0x1591   :  { %5042 = vrot.lane.b32.xlu1 %v7396_v60, %s7504_s0  ;;  %v10065_v38 = vpop.eup %7415  ;;  %7435 = vrcp.f32 %v4869_v45 }
0x1592   :  { %5024 = vrot.lane.b32.xlu0 %v7404_v11, %s7504_s0  ;;  %v7418_v50 = vpop.eup %7417  ;;  %7437 = vpow2.f32 %v5989_v5 }
0x1593   :  { %v10071_v57 = vpop.eup %7419  ;;  %v4871_v13 = vadd.f32 1.0, %v7418_v50 }
0x1594   :  { %v7422_v16 = vpop.eup %7421 }
0x1595   :  { %v7424_v1 = vpop.eup %7423  ;;  %v4875_v24 = vadd.f32 1.0, %v7422_v16  ;;  %7439 = vrcp.f32 %v4871_v13 }
0x1596   :  { %5040 = vrot.lane.b32.xlu0 %v7406_v51, %s7504_s0  ;;  %v10076_v35 = vpop.eup %7425  ;;  %v4873_v58 = vadd.f32 1.0, %v7424_v1  ;;  %7441 = vpow2.f32 %v5991_v21 }
0x1597   :  { %v7428_v28 = vpop.eup %7427  ;;  %7443 = vrcp.f32 %v4875_v24 }
0x1598   :  { %v7430_v9 = vpop.eup %7429  ;;  %v4876_v6 = vadd.f32 1.0, %v7428_v28  ;;  %7445 = vrcp.f32 %v4873_v58 }
0x1599   :  { %v7432_v62 = vpop.eup %7431  ;;  %v4881_v56 = vadd.f32 1.0, %v7430_v9  ;;  %7447 = vpow2.f32 %v5993_v52 }
0x159a   :  { %v7434_v60 = vpop.eup %7433  ;;  %7449 = vrcp.f32 %v4876_v6  ;;  %v4879_v37 = vadd.f32 1.0, %v7432_v62 }
0x159b   :  { %v10082_v2 = vpop.eup %7435  ;;  %v4883_v34 = vadd.f32 1.0, %v7434_v60  ;;  %7451 = vrcp.f32 %v4881_v56 }
0x159c   :  { %v7438_v11 = vpop.eup %7437  ;;  %7453 = vpow2.f32 %v5995_v20 }
0x159d   :  { %7455 = vrcp.f32 %v4879_v37  ;;  %v4868_v46 = vadd.f32 1.0, %v7438_v11 }
0x159e   :  { %7457 = vrcp.f32 %v4883_v34 }
0x159f   :  { %v10087_v54 = vpop.eup %7439  ;;  %7459 = vpow2.f32 %v6003_v7 }
0x15a0   :  { %v7442_v10 = vpop.eup %7441  ;;  %7461 = vrcp.f32 %v4868_v46  ;;  %v4958_v46 = vrot.slane %v9826_v41, 7 }
0x15a1   :  { %v10090_v23 = vpop.eup %7443  ;;  %v4870_v33 = vadd.f32 1.0, %v7442_v10 }
0x15a2   :  { %v10094_v4 = vpop.eup %7445  ;;  %v4990_v10 = vmul.f32 %v10071_v57, %v4958_v46 }
0x15a3   :  { %v7448_v15 = vpop.eup %7447  ;;  %7463 = vrcp.f32 %v4870_v33 }
0x15a4   :  { %v10098_v48 = vpop.eup %7449  ;;  %v4872_v29 = vadd.f32 1.0, %v7448_v15 }
0x15a5   :  { %v10102_v3 = vpop.eup %7451 }
0x15a6   :  { %v7454_v53 = vpop.eup %7453  ;;  %7465 = vrcp.f32 %v4872_v29  ;;  %v4951_v29 = vrot.slane %v9888_v63, 7  ;;  %v4956_v63 = vrot.slane %v9864_v49, 7 }
0x15a7   :  { %v10106_v45 = vpop.eup %7455  ;;  %v4874_v16 = vadd.f32 1.0, %v7454_v53 }
0x15a8   :  { %v4983_v53 = vmul.f32 %v10087_v54, %v4951_v29 }
0x15a9   :  { %7467 = vrcp.f32 %v4874_v16 }
0x15e7   :  { %v5031_v19 = vpop.permute.xlu1 %5030 }
0x15e8   :  { %v5069_v39 = vmul.f32 %v10065_v38, %v5031_v19 }
0x15ea   :  { %5110 = vrot.lane.b32.xlu1 %v5069_v39, %s7505_s5 }
0x15eb   :  { %v5033_v31 = vpop.permute.xlu1 %5032 }
0x15ec   :  { %v5070_v40 = vmul.f32 %v10071_v57, %v5033_v31  ;;  %v5027_v44 = vpop.permute.xlu0 %5026  ;;  %v10110_v31 = vpop.eup %7457 }
0x15ed   :  { %v5067_v12 = vmul.f32 %v10090_v23, %v5027_v44  ;;  %v7460_v13 = vpop.eup %7459  ;;  %v4960_v44 = vrot.slane %v9836_v59, 7  ;;  %v4955_v59 = vrot.slane %v9861_v8, 7 }
0x15ee   :  { %5112 = vrot.lane.b32.xlu1 %v5070_v40, %s7505_s5  ;;  %v10114_v21 = vpop.eup %7461  ;;  %v4882_v28 = vadd.f32 1.0, %v7460_v13 }
0x15ef   :  { %v5037_v25 = vpop.permute.xlu1 %5036  ;;  %5106 = vrot.lane.b32.xlu0 %v5067_v12, %s7505_s5  ;;  %v4992_v33 = vmul.f32 %v10076_v35, %v4960_v44 }
0x15f0   :  { %v5072_v32 = vmul.f32 %v10076_v35, %v5037_v25  ;;  %v5029_v43 = vpop.permute.xlu0 %5028  ;;  %7469 = vrcp.f32 %v4882_v28 }
0x15f1   :  { %v5068_v18 = vmul.f32 %v10098_v48, %v5029_v43 }
0x15f2   :  { %5116 = vrot.lane.b32.xlu1 %v5072_v32, %s7505_s5  ;;  %v10119_v32 = vpop.eup %7463 }
0x15f3   :  { %v5015_v22 = vpop.permute.xlu1 %5014  ;;  %5108 = vrot.lane.b32.xlu0 %v5068_v18, %s7505_s5  ;;  %v10123_v52 = vpop.eup %7465 }
0x15f4   :  { %v5061_v51 = vmul.f32 %v10082_v2, %v5015_v22  ;;  %v5035_v50 = vpop.permute.xlu0 %5034  ;;  %v10127_v56 = vpop.eup %7467 }
0x15f5   :  { %v5071_v5 = vmul.f32 %v10106_v45, %v5035_v50 }
0x15f6   :  { %5094 = vrot.lane.b32.xlu1 %v5061_v51, %s7505_s5  ;;  %v4957_v51 = vrot.slane %v9821_v14, 7 }
0x15f7   :  { %v5019_v17 = vpop.permute.xlu1 %5018  ;;  %5114 = vrot.lane.b32.xlu0 %v5071_v5, %s7505_s5  ;;  %v4987_v5 = vmul.f32 %v10090_v23, %v4955_v59 }
0x15f8   :  { %v5063_v26 = vmul.f32 %v10087_v54, %v5019_v17  ;;  %v5013_v24 = vpop.permute.xlu0 %5012  ;;  %v4989_v34 = vmul.f32 %v10065_v38, %v4957_v51 }
0x15f9   :  { %v5060_v25 = vmul.f32 %v10114_v21, %v5013_v24  ;;  %v4961_v24 = vrot.slane %v9874_v42, 7 }
0x15fa   :  { %5098 = vrot.lane.b32.xlu1 %v5063_v26, %s7505_s5  ;;  %v10131_v37 = vpop.eup %7469 }
0x15fb   :  { %v5023_v47 = vpop.permute.xlu1 %5022  ;;  %5092 = vrot.lane.b32.xlu0 %v5060_v25, %s7505_s5  ;;  %v4988_v25 = vmul.f32 %v10098_v48, %v4956_v63 }
0x15fc   :  { %v5065_v61 = vmul.f32 %v10094_v4, %v5023_v47  ;;  %v5017_v58 = vpop.permute.xlu0 %5016 }
0x15fd   :  { %v5062_v9 = vmul.f32 %v10119_v32, %v5017_v58  ;;  %v10829_v58 = vld [vmem:[#allocation22_spill] sm:$0xff] }
0x15fe   :  { %5102 = vrot.lane.b32.xlu1 %v5065_v61, %s7505_s5  ;;  %v4949_v61 = vrot.slane %v9881_v30, 7  ;;  %v4953_v30 = vrot.slane %v9902_v27, 7 }
0x15ff   :  { %v5039_v19 = vpop.permute.xlu1 %5038  ;;  %5096 = vrot.lane.b32.xlu0 %v5062_v9, %s7505_s5  ;;  %v4959_v9 = vrot.slane %v10829_v58, 7 }
0x1600   :  { %v5073_v39 = vmul.f32 %v10102_v3, %v5039_v19  ;;  %v5021_v6 = vpop.permute.xlu0 %5020  ;;  %v4981_v41 = vmul.f32 %v10082_v2, %v4949_v61 }
0x1601   :  { %v5064_v62 = vmul.f32 %v10123_v52, %v5021_v6 }
0x1602   :  { %5118 = vrot.lane.b32.xlu1 %v5073_v39, %s7505_s5 }
0x1603   :  { %v5043_v40 = vpop.permute.xlu1 %5042  ;;  %5100 = vrot.lane.b32.xlu0 %v5064_v62, %s7505_s5  ;;  %v4993_v62 = vmul.f32 %v10102_v3, %v4961_v24 }
0x1604   :  { %v5075_v1 = vmul.f32 %v10110_v31, %v5043_v40  ;;  %v5025_v60 = vpop.permute.xlu0 %5024 }
0x1605   :  { %v5066_v20 = vmul.f32 %v10127_v56, %v5025_v60 }
0x1606   :  { %5122 = vrot.lane.b32.xlu1 %v5075_v1, %s7505_s5  ;;  %v4985_v1 = vmul.f32 %v10094_v4, %v4953_v30 }
0x1607   :  { %5104 = vrot.lane.b32.xlu0 %v5066_v20, %s7505_s5  ;;  %v10830_v20 = vld [vmem:[#allocation7_spill] sm:$0xff] }
0x1608   :  { %v5041_v22 = vpop.permute.xlu0 %5040 }
0x1609   :  { %v5074_v11 = vmul.f32 %v10131_v37, %v5041_v22  ;;  %v4963_v22 = vrot.slane %v10830_v20, 7 }
0x160b   :  { %5120 = vrot.lane.b32.xlu0 %v5074_v11, %s7505_s5  ;;  %v4991_v11 = vmul.f32 %v10106_v45, %v4959_v9 }
0x165c   :  { %v5111_v7 = vpop.permute.xlu1 %5110 }
0x165d   :  { %v5149_v17 = vadd.f32 %v5111_v7, %v4989_v34  ;;  %v10831_v34 = vld [vmem:[#allocation23_spill] sm:$0xff] }
0x165e   :  { %v4948_v7 = vrot.slane %v10831_v34, 7  ;;  %v10840_v34 = vld [vmem:[#allocation12_spill] sm:$0xff] }
0x165f   :  { %7471 = vtanh.f32 %v5149_v17  ;;  %v4995_v17 = vmul.f32 %v10110_v31, %v4963_v22  ;;  %v10839_v22 = vld [vmem:[#allocation18_spill] sm:$0xff] }
0x1660   :  { %v5113_v26 = vpop.permute.xlu1 %5112  ;;  %v4980_v44 = vmul.f32 %v10114_v21, %v4948_v7  ;;  %v10841_v7 = vld [vmem:[#allocation11_spill] sm:$0xff] }
0x1661   :  { %v5150_v12 = vadd.f32 %v5113_v26, %v4990_v10  ;;  %v5107_v40 = vpop.permute.xlu0 %5106 }
0x1662   :  { %v5147_v13 = vadd.f32 %v5107_v40, %v4987_v5 }
0x1663   :  { %7473 = vtanh.f32 %v5150_v12 }
0x1664   :  { %v5117_v47 = vpop.permute.xlu1 %5116 }
0x1665   :  { %v5152_v15 = vadd.f32 %v5117_v47, %v4992_v33  ;;  %v5109_v27 = vpop.permute.xlu0 %5108 }
0x1666   :  { %v5148_v6 = vadd.f32 %v5109_v27, %v4988_v25  ;;  %v10835_v25 = vld [vmem:[#allocation8_spill] sm:$0xff] }
0x1667   :  { %7475 = vtanh.f32 %v5152_v15  ;;  %v10832_v15 = vld [vmem:[#allocation24_spill] sm:$0xff] }
0x1668   :  { %v5095_v43 = vpop.permute.xlu1 %5094 }
0x1669   :  { %v7472_v14 = vpop.eup %7471  ;;  %v5141_v19 = vadd.f32 %v5095_v43, %v4981_v41  ;;  %v5115_v42 = vpop.permute.xlu0 %5114 }
0x166a   :  { %5206 = vrot.lane.b32.xlu1 %v7472_v14, %s7506_s23  ;;  %v5151_v46 = vadd.f32 %v5115_v42, %v4991_v11  ;;  %v4950_v14 = vrot.slane %v10832_v15, 7 }
0x166b   :  { %7477 = vtanh.f32 %v5141_v19  ;;  %v10833_v19 = vld [vmem:[#allocation9_spill] sm:$0xff] }
0x166c   :  { %v5099_v39 = vpop.permute.xlu1 %5098  ;;  %v4982_v43 = vmul.f32 %v10119_v32, %v4950_v14  ;;  %v4952_v59 = vrot.slane %v10833_v19, 7  ;;  %v5366_v19 = vld [vmem:[%s10654_s6 + $0x58] sm:$0xff] }
0x166d   :  { %v7474_v18 = vpop.eup %7473  ;;  %v5143_v16 = vadd.f32 %v5099_v39, %v4983_v53  ;;  %v5093_v33 = vpop.permute.xlu0 %5092 }
0x166e   :  { %5208 = vrot.lane.b32.xlu1 %v7474_v18, %s7506_s23  ;;  %v5140_v61 = vadd.f32 %v5093_v33, %v4980_v44  ;;  %v5355_v33 = vld [vmem:[%s10654_s6] sm:$0xff] }
0x166f   :  { %7479 = vtanh.f32 %v5143_v16  ;;  %v10834_v16 = vld [vmem:[#allocation13_spill] sm:$0xff] }
0x1670   :  { %v5103_v8 = vpop.permute.xlu1 %5102  ;;  %7481 = vtanh.f32 %v5147_v13  ;;  %v4954_v40 = vrot.slane %v10834_v16, 7  ;;  %v5363_v16 = vld [vmem:[%s10654_s6 + $0x40] sm:$0xff] }
0x1671   :  { %v7476_v50 = vpop.eup %7475  ;;  %v5145_v28 = vadd.f32 %v5103_v8, %v4985_v1  ;;  %v5097_v18 = vpop.permute.xlu0 %5096 }
0x1672   :  { %5212 = vrot.lane.b32.xlu1 %v7476_v50, %s7506_s23  ;;  %v5142_v53 = vadd.f32 %v5097_v18, %v4982_v43  ;;  %v4984_v50 = vmul.f32 %v10123_v52, %v4952_v59  ;;  %v4986_v1 = vmul.f32 %v10127_v56, %v4954_v40  ;;  %v5364_v43 = vld [vmem:[%s10654_s6 + $0x48] sm:$0xff]  ;;  %v5370_v59 = vld [vmem:[%s10654_s6 + $0x78] sm:$0xff]  ;;  %v5367_v40 = vld [vmem:[%s10654_s6 + $0x60] sm:$0xff] }
0x1673   :  { %7483 = vtanh.f32 %v5145_v28  ;;  %v4962_v28 = vrot.slane %v10835_v25, 7 }
0x1674   :  { %v5119_v60 = vpop.permute.xlu1 %5118  ;;  %7485 = vtanh.f32 %v5148_v6  ;;  %v10836_v6 = vld [vmem:[#allocation14_spill] sm:$0xff] }
0x1675   :  { %v7478_v49 = vpop.eup %7477  ;;  %v5153_v51 = vadd.f32 %v5119_v60, %v4993_v62  ;;  %v5101_v30 = vpop.permute.xlu0 %5100  ;;  %v4994_v58 = vmul.f32 %v10131_v37, %v4962_v28  ;;  %v10837_v62 = vld [vmem:[#allocation10_spill] sm:$0xff] }
0x1676   :  { %5190 = vrot.lane.b32.xlu1 %v7478_v49, %s7506_s23  ;;  %v5144_v63 = vadd.f32 %v5101_v30, %v4984_v50  ;;  %v10838_v60 = vpack.i.bf16 %v10836_v6, %v10837_v62  ;;  %v5375_v62 = vld [vmem:[%s10654_s6 + $0xa0] sm:$0xff] }
0x1677   :  { %7487 = vtanh.f32 %v5153_v51 }
0x1678   :  { %v5123_v10 = vpop.permute.xlu1 %5122  ;;  %7489 = vtanh.f32 %v5151_v46  ;;  %v10842_v46 = vpack.i.bf16 %v10840_v34, %v10841_v7  ;;  %v5379_v34 = vld [vmem:[%s10654_s6 + $0xc0] sm:$0xff] }
0x1679   :  { %v7480_v26 = vpop.eup %7479  ;;  %v5155_v12 = vadd.f32 %v5123_v10, %v4995_v17  ;;  %v5105_v8 = vpop.permute.xlu0 %5104  ;;  %v5356_v17 = vld [vmem:[%s10654_s6 + $0x8] sm:$0xff]  ;;  %v5383_v7 = vld [vmem:[%s10654_s6 + $0xe0] sm:$0xff] }
0x167a   :  { %5194 = vrot.lane.b32.xlu1 %v7480_v26, %s7506_s23  ;;  %v7482_v47 = vpop.eup %7481  ;;  %v5146_v27 = vadd.f32 %v5105_v8, %v4986_v1  ;;  %v5360_v10 = vld [vmem:[%s10654_s6 + $0x28] sm:$0xff]  ;;  %v5358_v26 = vld [vmem:[%s10654_s6 + $0x18] sm:$0xff]  ;;  %v5369_v1 = vld [vmem:[%s10654_s6 + $0x70] sm:$0xff] }
0x167b   :  { %7491 = vtanh.f32 %v5155_v12  ;;  %5202 = vrot.lane.b32.xlu0 %v7482_v47, %s7506_s23  ;;  %v6312_v44 = vpack.c.bf16 %v5360_v10, %v5356_v17  ;;  %v5362_v12 = vld [vmem:[%s10654_s6 + $0x38] sm:$0xff]  ;;  %v5359_v47 = vld [vmem:[%s10654_s6 + $0x20] sm:$0xff]  ;;  %v5372_v8 = vld [vmem:[%s10654_s6 + $0x88] sm:$0xff] }
0x167c   :  { %7493 = vtanh.f32 %v5140_v61  ;;  %v6344_v15 = vpack.c.bf16 %v5362_v12, %v5358_v26  ;;  %v6314_v14 = vpack.c.bf16 %v5359_v47, %v5355_v33  ;;  %v5357_v61 = vld [vmem:[%s10654_s6 + $0x10] sm:$0xff]  ;;  %v5392_v12 = vld [vmem:[%s10654_s6 + $0x128] sm:$0xff]  ;;  %v5390_v33 = vld [vmem:[%s10654_s6 + $0x118] sm:$0xff] }
0x167d   :  { %v7484_v41 = vpop.eup %7483  ;;  %7495 = vtanh.f32 %v5142_v53  ;;  %v5121_v9 = vpop.permute.xlu0 %5120  ;;  %6313 = vmatprep.subr.bf16.mxu1 %v6312_v44  ;;  %v10843_v53 = vld [vmem:[#allocation21_spill] sm:$0xff]  ;;  %v5381_v10 = vld [vmem:[%s10654_s6 + $0xd0] sm:$0xff]  ;;  %v5388_v44 = vld [vmem:[%s10654_s6 + $0x108] sm:$0xff] }
0x167e   :  { %5198 = vrot.lane.b32.xlu1 %v7484_v41, %s7506_s23  ;;  %v7486_v29 = vpop.eup %7485  ;;  %7497 = vtanh.f32 %v5144_v63  ;;  %v5154_v20 = vadd.f32 %v5121_v9, %v4994_v58  ;;  %v5361_v41 = vld [vmem:[%s10654_s6 + $0x30] sm:$0xff]  ;;  %6345 = vmatprep.subr.bf16.mxu0 %v6344_v15  ;;  %v5378_v58 = vld [vmem:[%s10654_s6 + $0xb8] sm:$0xff]  ;;  %v5371_v9 = vld [vmem:[%s10654_s6 + $0x80] sm:$0xff] }
0x167f   :  { %5204 = vrot.lane.b32.xlu0 %v7486_v29, %s7506_s23  ;;  %7499 = vtanh.f32 %v5146_v27  ;;  %v6346_v18 = vpack.c.bf16 %v5361_v41, %v5357_v61  ;;  %v5368_v29 = vld [vmem:[%s10654_s6 + $0x68] sm:$0xff]  ;;  %v5365_v63 = vld [vmem:[%s10654_s6 + $0x50] sm:$0xff]  ;;  %6315 = vmatpush1.bf16.msra.mxu1 %v6314_v14  ;;  %v5374_v27 = vld [vmem:[%s10654_s6 + $0x98] sm:$0xff]  ;;  %v6326_v14 = vpack.c.bf16 %v5383_v7, %v5379_v34 }
0x1680   :  { %7501 = vtanh.f32 %v5154_v20  ;;  %v6316_v30 = vpack.c.bf16 %v5368_v29, %v5364_v43  ;;  %v6350_v25 = vpack.c.bf16 %v5369_v1, %v5365_v63  ;;  %v6352_v6 = vpack.c.bf16 %v5378_v58, %v5374_v27  ;;  %v5380_v20 = vld [vmem:[%s10654_s6 + $0xc8] sm:$0xff]  ;;  %v5385_v26 = vld [vmem:[%s10654_s6 + $0xf0] sm:$0xff]  ;;  %v5394_v47 = vld [vmem:[%s10654_s6 + $0x138] sm:$0xff] }
0x1681   :  { %v7488_v39 = vpop.eup %7487  ;;  %6347 = vmatpush1.bf16.msra.mxu0 %v6346_v18  ;;  %v10846_v15 = vld [vmem:[#allocation19_spill] sm:$0xff]  ;;  %v6358_v61 = vpack.c.bf16 %v5385_v26, %v5381_v10  ;;  %v5387_v41 = vld [vmem:[%s10654_s6 + $0x100] sm:$0xff]  ;;  %v6328_v18 = vpack.c.bf16 %v5392_v12, %v5388_v44  ;;  %v6360_v29 = vpack.c.bf16 %v5394_v47, %v5390_v33  ;;  %v5406_v27 = vld [vmem:[%s10654_s6 + $0x198] sm:$0xff] }
0x1682   :  { %5214 = vrot.lane.b32.xlu1 %v7488_v39, %s7506_s23  ;;  %v7490_v5 = vpop.eup %7489  ;;  %v10844_v39 = vld [vmem:[#allocation20_spill] sm:$0xff]  ;;  %6317 = vmatprep.subr.bf16.mxu1 %v6316_v30  ;;  %v5391_v43 = vld [vmem:[%s10654_s6 + $0x120] sm:$0xff]  ;;  %v5402_v30 = vld [vmem:[%s10654_s6 + $0x178] sm:$0xff] }
0x1683   :  { %5210 = vrot.lane.b32.xlu0 %v7490_v5, %s7506_s23  ;;  %v10845_v50 = vpack.i.bf16 %v10843_v53, %v10844_v39  ;;  %v6348_v5 = vpack.c.bf16 %v5370_v59, %v5366_v19  ;;  %v5389_v19 = vld [vmem:[%s10654_s6 + $0x110] sm:$0xff]  ;;  %v5396_v53 = vld [vmem:[%s10654_s6 + $0x148] sm:$0xff]  ;;  %v5399_v63 = vld [vmem:[%s10654_s6 + $0x160] sm:$0xff] }
0x1684   :  { %v5393_v59 = vld [vmem:[%s10654_s6 + $0x130] sm:$0xff]  ;;  %v5400_v39 = vld [vmem:[%s10654_s6 + $0x168] sm:$0xff]  ;;  %v5410_v58 = vld [vmem:[%s10654_s6 + $0x1b8] sm:$0xff] }
0x1685   :  { %v7492_v13 = vpop.eup %7491  ;;  %6349 = vmatprep.subr.bf16.mxu0 %v6348_v5  ;;  %v6330_v5 = vpack.c.bf16 %v5391_v43, %v5387_v41  ;;  %v5418_v34 = vld [vmem:[%s10654_s6 + $0x1f8] sm:$0xff]  ;;  %v5415_v44 = vld [vmem:[%s10654_s6 + $0x1e0] sm:$0xff]  ;;  %v5413_v12 = vld [vmem:[%s10654_s6 + $0x1d0] sm:$0xff] }
0x1686   :  { %5218 = vrot.lane.b32.xlu1 %v7492_v13, %s7506_s23  ;;  %v7494_v24 = vpop.eup %7493  ;;  %v6318_v13 = vpack.c.bf16 %v5367_v40, %v5363_v16  ;;  %6351 = vmatpush1.bf16.msra.mxu0 %v6350_v25  ;;  %v6362_v16 = vpack.c.bf16 %v5393_v59, %v5389_v19  ;;  %v5395_v40 = vld [vmem:[%s10654_s6 + $0x140] sm:$0xff]  ;;  %v5404_v25 = vld [vmem:[%s10654_s6 + $0x188] sm:$0xff]  ;;  %v5417_v33 = vld [vmem:[%s10654_s6 + $0x1f0] sm:$0xff] }
0x1687   :  { %5188 = vrot.lane.b32.xlu0 %v7494_v24, %s7506_s23  ;;  %v7496_v49 = vpop.eup %7495  ;;  %v5376_v24 = vld [vmem:[%s10654_s6 + $0xa8] sm:$0xff]  ;;  %6353 = vmatprep.subr.bf16.mxu0 %v6352_v6 }
0x1688   :  { %v7498_v11 = vpop.eup %7497  ;;  %v6320_v28 = vpack.c.bf16 %v5376_v24, %v5372_v8  ;;  %6319 = vmatpush1.bf16.msra.mxu1 %v6318_v13  ;;  %v6332_v13 = vpack.c.bf16 %v5400_v39, %v5396_v53  ;;  %v5397_v8 = vld [vmem:[%s10654_s6 + $0x150] sm:$0xff] }
0x1689   :  { %v7500_v51 = vpop.eup %7499  ;;  %v5401_v24 = vld [vmem:[%s10654_s6 + $0x170] sm:$0xff] }
0x168a   :  { %6470 = vrot.lane.b32.xlu1 %v10838_v60, %s7508_s25  ;;  %v7502_v42 = vpop.eup %7501  ;;  %v5373_v60 = vld [vmem:[%s10654_s6 + $0x90] sm:$0xff]  ;;  %s7509_s25 = smov 48   ;;  %6321 = vmatprep.subr.bf16.mxu1 %v6320_v28  ;;  %v5408_v28 = vld [vmem:[%s10654_s6 + $0x1a8] sm:$0xff]  ;;  %v6366_v6 = vpack.c.bf16 %v5401_v24, %v5397_v8 }
0x168b   :  { %5192 = vrot.lane.b32.xlu0 %v7496_v49, %s7506_s23  ;;  %v5377_v49 = vld [vmem:[%s10654_s6 + $0xb0] sm:$0xff] }
0x168e   :  { %5274 = vrot.lane.b32.xlu1 %v10839_v22, %s7506_s23  ;;  %v5384_v22 = vld [vmem:[%s10654_s6 + $0xe8] sm:$0xff] }
0x168f   :  { %5196 = vrot.lane.b32.xlu0 %v7498_v11, %s7506_s23  ;;  %v5382_v11 = vld [vmem:[%s10654_s6 + $0xd8] sm:$0xff] }
0x1693   :  { %5200 = vrot.lane.b32.xlu0 %v7500_v51, %s7506_s23  ;;  %v6322_v51 = vpack.c.bf16 %v5375_v62, %v5371_v9  ;;  %v6334_v9 = vpack.c.bf16 %v5399_v63, %v5395_v40  ;;  %v5403_v62 = vld [vmem:[%s10654_s6 + $0x180] sm:$0xff] }
0x1695   :  { %6323 = vmatpush1.bf16.msra.mxu1 %v6322_v51  ;;  %v5412_v51 = vld [vmem:[%s10654_s6 + $0x1c8] sm:$0xff] }
0x1697   :  { %5216 = vrot.lane.b32.xlu0 %v7502_v42, %s7506_s23  ;;  %v6354_v42 = vpack.c.bf16 %v5377_v49, %v5373_v60  ;;  %v5407_v60 = vld [vmem:[%s10654_s6 + $0x1a0] sm:$0xff]  ;;  %v6336_v49 = vpack.c.bf16 %v5408_v28, %v5404_v25 }
0x1698   :  { %v6338_v7 = vpack.c.bf16 %v5407_v60, %v5403_v62 }
0x1699   :  { %6355 = vmatpush1.bf16.msra.mxu0 %v6354_v42  ;;  %v5416_v42 = vld [vmem:[%s10654_s6 + $0x1e8] sm:$0xff] }
0x169a   :  { %v6340_v10 = vpack.c.bf16 %v5416_v42, %v5412_v51  ;;  %v5651_v42 = vld [vmem:[%s10655_s8 + $0x180] sm:$0xff] }
0x169b   :  { %6465 = vrot.lane.b32.xlu0 %v10842_v46, %s7504_s0  ;;  %v6324_v46 = vpack.c.bf16 %v5384_v22, %v5380_v20  ;;  %v6368_v20 = vpack.c.bf16 %v5410_v58, %v5406_v27  ;;  %v5405_v22 = vld [vmem:[%s10654_s6 + $0x190] sm:$0xff] }
0x169d   :  { %6325 = vmatprep.subr.bf16.mxu1 %v6324_v46 }
0x169e   :  { %6327 = vmatpush1.bf16.msra.mxu1 %v6326_v14 }
0x169f   :  { %6475 = vrot.lane.b32.xlu0 %v10845_v50, %s7505_s5  ;;  %v5398_v50 = vld [vmem:[%s10654_s6 + $0x158] sm:$0xff]  ;;  %6329 = vmatprep.subr.bf16.mxu1 %v6328_v18 }
0x16a0   :  { %v6364_v1 = vpack.c.bf16 %v5402_v30, %v5398_v50 }
0x16a2   :  { %6331 = vmatpush1.bf16.msra.mxu1 %v6330_v5 }
0x16a3   :  { %5280 = vrot.lane.b32.xlu0 %v9943_v36, %s7509_s25  ;;  %v5386_v36 = vld [vmem:[%s10654_s6 + $0xf8] sm:$0xff]  ;;  %6333 = vmatprep.subr.bf16.mxu1 %v6332_v13 }
0x16a4   :  { %v6356_v17 = vpack.c.bf16 %v5386_v36, %v5382_v11  ;;  %v5409_v11 = vld [vmem:[%s10654_s6 + $0x1b0] sm:$0xff]  ;;  %v5414_v36 = vld [vmem:[%s10654_s6 + $0x1d8] sm:$0xff] }
0x16a5   :  { %v6370_v46 = vpack.c.bf16 %v5409_v11, %v5405_v22  ;;  %v6372_v26 = vpack.c.bf16 %v5418_v34, %v5414_v36 }
0x16a6   :  { %6357 = vmatprep.subr.bf16.mxu0 %v6356_v17  ;;  %6335 = vmatpush1.bf16.msra.mxu1 %v6334_v9  ;;  %v5411_v17 = vld [vmem:[%s10654_s6 + $0x1c0] sm:$0xff] }
0x16a7   :  { %5276 = vrot.lane.b32.xlu0 %v10846_v15, %s7506_s23  ;;  %6359 = vmatpush1.bf16.msra.mxu0 %v6358_v61  ;;  %v6342_v47 = vpack.c.bf16 %v5415_v44, %v5411_v17  ;;  %v6374_v15 = vpack.c.bf16 %v5417_v33, %v5413_v12 }
0x16a8   :  { %6361 = vmatprep.subr.bf16.mxu0 %v6360_v29  ;;  %6337 = vmatprep.subr.bf16.mxu1 %v6336_v49 }
0x16aa   :  { %6339 = vmatpush1.bf16.msra.mxu1 %v6338_v7 }
0x16ab   :  { %6363 = vmatpush1.bf16.msra.mxu0 %v6362_v16  ;;  %6341 = vmatprep.subr.bf16.mxu1 %v6340_v10 }
0x16ac   :  { %6365 = vmatprep.subr.bf16.mxu0 %v6364_v1 }
0x16ae   :  { %6343 = vmatpush1.bf16.msra.mxu1 %v6342_v47 }
0x16af   :  { %6367 = vmatpush1.bf16.msra.mxu0 %v6366_v6 }
0x16b0   :  { %6369 = vmatprep.subr.bf16.mxu0 %v6368_v20 }
0x16b3   :  { %6371 = vmatpush1.bf16.msra.mxu0 %v6370_v46 }
0x16b4   :  { %6373 = vmatprep.subr.bf16.mxu0 %v6372_v26 }
0x16b7   :  { %6375 = vmatpush1.bf16.msra.mxu0 %v6374_v15 }
0x16dc   :  { %v5207_v14 = vpop.permute.xlu1 %5206 }
0x16dd   :  { %v5245_v8 = vmul.f32 %v10065_v38, %v5207_v14 }
0x16e0   :  { %v5209_v61 = vpop.permute.xlu1 %5208 }
0x16e1   :  { %v5246_v24 = vmul.f32 %v10071_v57, %v5209_v61 }
0x16e3   :  { %v5319_v62 = vrot.slane %v5246_v24, 5 }
0x16e4   :  { %v5213_v41 = vpop.permute.xlu1 %5212 }
0x16e5   :  { %v5248_v38 = vmul.f32 %v10076_v35, %v5213_v41  ;;  %v5620_v35 = vld [vmem:[%s10655_s8 + $0x88] sm:$0xff] }
0x16e8   :  { %v5191_v18 = vpop.permute.xlu1 %5190 }
0x16e9   :  { %v5237_v39 = vmul.f32 %v10082_v2, %v5191_v18 }
0x16eb   :  { %v5303_v40 = vrot.slane %v5237_v39, 6  ;;  %v10847_v39 = vld [vmem:[#allocation5_spill] sm:$0xff] }
0x16ec   :  { %v5195_v59 = vpop.permute.xlu1 %5194 }
0x16ed   :  { %v5203_v43 = vpop.permute.xlu0 %5202  ;;  %v5239_v13 = vmul.f32 %v10087_v54, %v5195_v59 }
0x16ee   :  { %v5243_v17 = vmul.f32 %v10090_v23, %v5203_v43 }
0x16f0   :  { %v5199_v30 = vpop.permute.xlu1 %5198 }
0x16f1   :  { %v5205_v29 = vpop.permute.xlu0 %5204  ;;  %v5241_v28 = vmul.f32 %v10094_v4, %v5199_v30 }
0x16f2   :  { %v5244_v5 = vmul.f32 %v10098_v48, %v5205_v29  ;;  %v5307_v48 = vrot.slane %v5239_v13, 4 }
0x16f3   :  { %v5311_v60 = vrot.slane %v5241_v28, 2  ;;  %v5603_v28 = vld [vmem:[%s10655_s8] sm:$0xff] }
0x16f4   :  { %v5316_v2 = vrot.slane %v5244_v5, 7  ;;  %v5215_v6 = vpop.permute.xlu1 %5214 }
0x16f5   :  { %v5211_v19 = vpop.permute.xlu0 %5210  ;;  %v5249_v22 = vmul.f32 %v10102_v3, %v5215_v6  ;;  %v5652_v3 = vld [vmem:[%s10655_s8 + $0x188] sm:$0xff]  ;;  %v5653_v6 = vld [vmem:[%s10655_s8 + $0x190] sm:$0xff] }
0x16f6   :  { %v6408_v46 = vpack.c.bf16 %v5652_v3, %v5651_v42  ;;  %v5637_v42 = vld [vmem:[%s10655_s8 + $0x110] sm:$0xff]  ;;  %v5623_v3 = vld [vmem:[%s10655_s8 + $0xa0] sm:$0xff] }
0x16f7   :  { %v5325_v44 = vrot.slane %v5249_v22, 2  ;;  %v5605_v22 = vld [vmem:[%s10655_s8 + $0x10] sm:$0xff] }
0x16f8   :  { %v5219_v15 = vpop.permute.xlu1 %5218  ;;  %6409 = vmatprep.subr.bf16.mxu0 %v6408_v46 }
0x16f9   :  { %v5189_v53 = vpop.permute.xlu0 %5188  ;;  %v5251_v43 = vmul.f32 %v10110_v31, %v5219_v15 }
0x16fa   :  { %v5236_v50 = vmul.f32 %v10114_v21, %v5189_v53  ;;  %v5247_v21 = vmul.f32 %v10106_v45, %v5211_v19 }
0x16fc   :  { %v5302_v16 = vrot.slane %v5236_v50, 7  ;;  %v5321_v49 = vrot.slane %v5247_v21, 4  ;;  %v6471_v59 = vpop.permute.xlu1 %6470 }
0x16fd   :  { %v5193_v63 = vpop.permute.xlu0 %5192  ;;  %v6472_v53 = vunpack.i.l.bf16 %v6471_v59  ;;  %v6473_v13 = vunpack.i.h.bf16 %v6471_v59 }
0x16fe   :  { %v5238_v1 = vmul.f32 %v10119_v32, %v5193_v63  ;;  %v5304_v27 = vsel %vm1013_vm2, %v5303_v40, %v5302_v16  ;;  %v5317_v32 = vrot.slane %v5245_v8, 6  ;;  %v10848_v40 = vld [vmem:[#allocation4_spill] sm:$0xff] }
0x1700   :  { %v5305_v25 = vrot.slane %v5238_v1, 5  ;;  %v5318_v4 = vsel %vm1013_vm2, %v5317_v32, %v5316_v2  ;;  %v5604_v2 = vld [vmem:[%s10655_s8 + $0x8] sm:$0xff]  ;;  %v5654_v32 = vld [vmem:[%s10655_s8 + $0x198] sm:$0xff] }
0x1701   :  { %v5197_v58 = vpop.permute.xlu0 %5196  ;;  %v5320_v34 = vsel %vm1016_vm3, %v5319_v62, %v5318_v4 }
0x1702   :  { %v5306_v9 = vsel %vm1016_vm3, %v5305_v25, %v5304_v27  ;;  %v5240_v54 = vmul.f32 %v10123_v52, %v5197_v58  ;;  %v5619_v52 = vld [vmem:[%s10655_s8 + $0x80] sm:$0xff]  ;;  %v5322_v10 = vsel %vm1019_vm4, %v5321_v49, %v5320_v34  ;;  %v5275_v25 = vpop.permute.xlu1 %5274  ;;  %v5636_v58 = vld [vmem:[%s10655_s8 + $0x108] sm:$0xff] }
0x1703   :  { %v5308_v45 = vsel %vm1019_vm4, %v5307_v48, %v5306_v9  ;;  %v6376_v36 = vpack.c.bf16 %v5620_v35, %v5619_v52  ;;  %v5635_v48 = vld [vmem:[%s10655_s8 + $0x100] sm:$0xff]  ;;  %v5621_v9 = vld [vmem:[%s10655_s8 + $0x90] sm:$0xff]  ;;  %v6412_v35 = vpack.c.bf16 %v5654_v32, %v5653_v6  ;;  %v5624_v34 = vld [vmem:[%s10655_s8 + $0xa8] sm:$0xff] }
0x1704   :  { %v5309_v57 = vrot.slane %v5240_v54, 3  ;;  %v5622_v54 = vld [vmem:[%s10655_s8 + $0x98] sm:$0xff]  ;;  %v5613_v32 = vld [vmem:[%s10655_s8 + $0x50] sm:$0xff] }
0x1705   :  { %v5201_v20 = vpop.permute.xlu0 %5200  ;;  %6377 = vmatprep.subr.bf16.mxu1 %v6376_v36  ;;  %v6380_v52 = vpack.c.bf16 %v5622_v54, %v5621_v9  ;;  %v5638_v36 = vld [vmem:[%s10655_s8 + $0x118] sm:$0xff] }
0x1706   :  { %v5310_v11 = vsel %vm1022_vm5, %v5309_v57, %v5308_v45  ;;  %v5242_v51 = vmul.f32 %v10127_v56, %v5201_v20  ;;  %v5323_v56 = vrot.slane %v5248_v38, 3  ;;  %v6378_v45 = vpack.c.bf16 %v5604_v2, %v5603_v28  ;;  %v5643_v2 = vld [vmem:[%s10655_s8 + $0x140] sm:$0xff]  ;;  %v5662_v9 = vld [vmem:[%s10655_s8 + $0x1d8] sm:$0xff] }
0x1707   :  { %v5312_v26 = vsel %vm1025_vm6, %v5311_v60, %v5310_v11  ;;  %v10850_v60 = vld [vmem:[#allocation17_spill] sm:$0xff]  ;;  %v6410_v20 = vpack.c.bf16 %v5636_v58, %v5635_v48  ;;  %v5661_v58 = vld [vmem:[%s10655_s8 + $0x1d0] sm:$0xff] }
0x1708   :  { %v5313_v7 = vrot.slane %v5242_v51, 1  ;;  %v5324_v61 = vsel %vm1022_vm5, %v5323_v56, %v5322_v10  ;;  %v5606_v11 = vld [vmem:[%s10655_s8 + $0x18] sm:$0xff]  ;;  %v5655_v56 = vld [vmem:[%s10655_s8 + $0x1a0] sm:$0xff] }
0x1709   :  { %v5217_v12 = vpop.permute.xlu0 %5216  ;;  %v5326_v23 = vsel %vm1025_vm6, %v5325_v44, %v5324_v61  ;;  %v6382_v44 = vpack.c.bf16 %v5606_v11, %v5605_v22  ;;  %v5639_v61 = vld [vmem:[%s10655_s8 + $0x120] sm:$0xff]  ;;  %v5630_v48 = vld [vmem:[%s10655_s8 + $0xd8] sm:$0xff]  ;;  %v5664_v22 = vld [vmem:[%s10655_s8 + $0x1e8] sm:$0xff] }
0x170a   :  { %v5314_v33 = vsel %vm1028_vm7, %v5313_v7, %v5312_v26  ;;  %v5250_v47 = vmul.f32 %v10131_v37, %v5217_v12  ;;  %v5656_v7 = vld [vmem:[%s10655_s8 + $0x1a8] sm:$0xff]  ;;  %v6414_v12 = vpack.c.bf16 %v5638_v36, %v5637_v42  ;;  %v5615_v42 = vld [vmem:[%s10655_s8 + $0x60] sm:$0xff] }
0x170b   :  { %v5315_v14 = vsel %vm1031_vm8, %v5243_v17, %v5314_v33  ;;  %v5607_v33 = vld [vmem:[%s10655_s8 + $0x20] sm:$0xff]  ;;  %v5616_v36 = vld [vmem:[%s10655_s8 + $0x68] sm:$0xff] }
0x170c   :  { %v5327_v41 = vrot.slane %v5250_v47, 1  ;;  %5330 = vrot.lane.b32.xlu1 %v5315_v14, %s7510_s16  ;;  %v5608_v47 = vld [vmem:[%s10655_s8 + $0x28] sm:$0xff]  ;;  %v6416_v14 = vpack.c.bf16 %v5656_v7, %v5655_v56 }
0x170d   :  { %v6466_v37 = vpop.permute.xlu0 %6465  ;;  %v5648_v56 = vld [vmem:[%s10655_s8 + $0x168] sm:$0xff] }
0x170e   :  { %v5328_v18 = vsel %vm1028_vm7, %v5327_v41, %v5326_v23  ;;  %v6467_v19 = vunpack.i.l.bf16 %v6466_v37  ;;  %v6468_v31 = vunpack.i.h.bf16 %v6466_v37  ;;  %v5640_v41 = vld [vmem:[%s10655_s8 + $0x128] sm:$0xff]  ;;  %v5625_v23 = vld [vmem:[%s10655_s8 + $0xb0] sm:$0xff]  ;;  %v5658_v37 = vld [vmem:[%s10655_s8 + $0x1b8] sm:$0xff] }
0x170f   :  { %v5329_v29 = vsel %vm1031_vm8, %v5251_v43, %v5328_v18  ;;  %v5626_v18 = vld [vmem:[%s10655_s8 + $0xb8] sm:$0xff]  ;;  %v6418_v59 = vpack.c.bf16 %v5640_v41, %v5639_v61  ;;  %v5421_v41 = vlaneseq }
0x1710   :  { %5282 = vrot.lane.b32.xlu1 %v9948_v55, %s7509_s25  ;;  %5332 = vrot.lane.b32.xlu0 %v5329_v29, %s7510_s16  ;;  %v5336_v50 = vsel %vm75_vm0, %v10847_v39, %v6467_v19  ;;  %v10849_v55 = vld [vmem:[#allocation6_spill] sm:$0xff]  ;;  %v5657_v29 = vld [vmem:[%s10655_s8 + $0x1b0] sm:$0xff]  ;;  %v6386_v19 = vpack.c.bf16 %v5608_v47, %v5607_v33  ;;  %v5610_v39 = vld [vmem:[%s10655_s8 + $0x38] sm:$0xff] }
0x1711   :  { %v6476_v30 = vpop.permute.xlu0 %6475  ;;  %v5338_v5 = vsel %vm269_vm1, %v5336_v50, %v6472_v53  ;;  %v5337_v1 = vsel %vm75_vm0, %v10849_v55, %v6468_v31  ;;  %v5609_v53 = vld [vmem:[%s10655_s8 + $0x30] sm:$0xff]  ;;  %v6388_v50 = vpack.c.bf16 %v5626_v18, %v5625_v23  ;;  %v5642_v31 = vld [vmem:[%s10655_s8 + $0x138] sm:$0xff]  ;;  %v5422_v23 = vshrl.u32 %v5421_v41, 7 }
0x1712   :  { %v6477_v16 = vunpack.i.l.bf16 %v6476_v30  ;;  %v5341_v63 = vsel %vm5340_vm9, %v5338_v5, %v10848_v40  ;;  %v5339_v21 = vsel %vm269_vm1, %v5337_v1, %v6473_v13  ;;  %v6478_v62 = vunpack.i.h.bf16 %v6476_v30  ;;  %v5641_v5 = vld [vmem:[%s10655_s8 + $0x130] sm:$0xff]  ;;  %v5628_v40 = vld [vmem:[%s10655_s8 + $0xc8] sm:$0xff]  ;;  %v5618_v33 = vld [vmem:[%s10655_s8 + $0x78] sm:$0xff] }
0x1713   :  { %v5342_v4 = vsel %vm5340_vm9, %v5339_v21, %v10850_v60  ;;  %v6420_v30 = vpack.c.bf16 %v5658_v37, %v5657_v29  ;;  %v5660_v13 = vld [vmem:[%s10655_s8 + $0x1c8] sm:$0xff]  ;;  %v6390_v55 = vpack.c.bf16 %v5610_v39, %v5609_v53  ;;  %v6422_v1 = vpack.c.bf16 %v5642_v31, %v5641_v5  ;;  %v5645_v60 = vld [vmem:[%s10655_s8 + $0x150] sm:$0xff]  ;;  %v5419_v29 = vld [vmem:[%s10656_s7] sm:$0xf] }
0x1714   :  { %v5344_v8 = vsel %vm5343_vm10, %v5341_v63, %v6477_v16  ;;  %v5345_v46 = vsel %vm5343_vm10, %v5342_v4, %v6478_v62  ;;  %v5627_v16 = vld [vmem:[%s10655_s8 + $0xc0] sm:$0xff]  ;;  %v5644_v21 = vld [vmem:[%s10655_s8 + $0x148] sm:$0xff]  ;;  %v5614_v62 = vld [vmem:[%s10655_s8 + $0x58] sm:$0xff]  ;;  %v5431_v18 = vsub.s32 2, %v5422_v23  ;;  %v5427_v37 = vsub.s32 1, %v5422_v23 }
0x1715   :  { %v5281_v24 = vpop.permute.xlu0 %5280  ;;  %v5347_v27 = vsel %vm5346_vm11, %v5344_v8, %v5275_v25  ;;  %v5659_v63 = vld [vmem:[%s10655_s8 + $0x1c0] sm:$0xff]  ;;  %v6392_v25 = vpack.c.bf16 %v5628_v40, %v5627_v16  ;;  %v6426_v6 = vpack.c.bf16 %v5644_v21, %v5643_v2  ;;  %v5646_v4 = vld [vmem:[%s10655_s8 + $0x158] sm:$0xff]  ;;  %v6398_v11 = vpack.c.bf16 %v5614_v62, %v5613_v32 }
0x1716   :  { %v5350_v38 = vsel %vm5349_vm12, %v5347_v27, %v5281_v24  ;;  %v5611_v8 = vld [vmem:[%s10655_s8 + $0x40] sm:$0xff]  ;;  %v5612_v24 = vld [vmem:[%s10655_s8 + $0x48] sm:$0xff]  ;;  %v6424_v28 = vpack.c.bf16 %v5660_v13, %v5659_v63  ;;  %v5629_v27 = vld [vmem:[%s10655_s8 + $0xd0] sm:$0xff]  ;;  %v5432_v53 = vrot.slane %v5419_v29, %v5431_v18  ;;  %v5428_v39 = vrot.slane %v5419_v29, %v5427_v37 }
0x1717   :  { %v6394_v54 = vpack.c.bf16 %v5612_v24, %v5611_v8 }
0x1719   :  { %v5277_v57 = vpop.permute.xlu0 %5276 }
0x171a   :  { %v5348_v17 = vsel %vm5346_vm11, %v5345_v46, %v5277_v57  ;;  %v6428_v57 = vpack.c.bf16 %v5662_v9, %v5661_v58  ;;  %v5633_v46 = vld [vmem:[%s10655_s8 + $0xf0] sm:$0xff] }
0x177e   :  { %v5331_v49 = vpop.permute.xlu1 %5330 }
0x177f   :  { %v5353_v51 = vsel %vm5352_vm13, %v5350_v38, %v5331_v49  ;;  %v6396_v38 = vpack.c.bf16 %v5630_v48, %v5629_v27  ;;  %v5631_v49 = vld [vmem:[%s10655_s8 + $0xe0] sm:$0xff] }
0x1780   :  { %5506 = vmatmul.mubr.f32.vlgmr.msra.gmra.mrb[16].mxu1 %v5353_v51  ;;  %5583 = vmatmul.mubr.f32.vlgmr.msra.gmra.mrb[16].mxu0 %v5353_v51  ;;  %v6430_v51 = vpack.c.bf16 %v5646_v4, %v5645_v60  ;;  %v6005_v4 = vld [vmem:[%s10657_s9] ss:$0 sm:$0xff] }
0x1781   :  { %5511 = vmatprep.mubr.f32.mxu1 %v10828_v0  ;;  %5588 = vmatprep.mubr.f32.mxu0 %v10828_v0  ;;  %v6384_v0 = vpack.c.bf16 %v5624_v34, %v5623_v3  ;;  %v5647_v3 = vld [vmem:[%s10655_s8 + $0x160] sm:$0xff]  ;;  %v6402_v34 = vpack.c.bf16 %v5616_v36, %v5615_v42 }
0x1782   :  { %v5283_v10 = vpop.permute.xlu1 %5282  ;;  %v5333_v26 = vpop.permute.xlu0 %5332  ;;  %6379 = vmatpush3.bf16.msra.mxu1 %v6378_v45  ;;  %6411 = vmatpush3.bf16.msra.mxu0 %v6410_v20  ;;  %v5632_v45 = vld [vmem:[%s10655_s8 + $0xe8] sm:$0xff]  ;;  %v5663_v20 = vld [vmem:[%s10655_s8 + $0x1e0] sm:$0xff]  ;;  %v6434_v7 = vpack.c.bf16 %v5648_v56, %v5647_v3 }
0x1783   :  { %v5351_v15 = vsel %vm5349_vm12, %v5348_v17, %v5283_v10  ;;  %6381 = vmatprep.subr.bf16.mxu1 %v6380_v52  ;;  %6413 = vmatprep.subr.bf16.mxu0 %v6412_v35  ;;  %v6400_v52 = vpack.c.bf16 %v5632_v45, %v5631_v49  ;;  %v6432_v35 = vpack.c.bf16 %v5664_v22, %v5663_v20  ;;  %v5634_v17 = vld [vmem:[%s10655_s8 + $0xf8] sm:$0xff]  ;;  %v5665_v10 = vld [vmem:[%s10655_s8 + $0x1f0] sm:$0xff] }
0x1784   :  { %v5354_v43 = vsel %vm5352_vm13, %v5351_v15, %v5333_v26  ;;  %v6404_v26 = vpack.c.bf16 %v5634_v17, %v5633_v46 }
0x1785   :  { %5512 = vmatmul.mubr.f32.gmra.mrb[18].mxu1 %v5354_v43  ;;  %5589 = vmatmul.mubr.f32.gmra.mrb[18].mxu0 %v5354_v43  ;;  %v5423_v43 = vsub.s32 0, %v5422_v23 }
0x1786   :  { %6383 = vmatpush3.bf16.msra.mxu1 %v6382_v44  ;;  %6415 = vmatpush3.bf16.msra.mxu0 %v6414_v12  ;;  %v5666_v44 = vld [vmem:[%s10655_s8 + $0x1f8] sm:$0xff]  ;;  %v5617_v12 = vld [vmem:[%s10655_s8 + $0x70] sm:$0xff] }
0x1787   :  { %6385 = vmatprep.subr.bf16.mxu1 %v6384_v0  ;;  %6417 = vmatprep.subr.bf16.mxu0 %v6416_v14  ;;  %v6436_v47 = vpack.c.bf16 %v5666_v44, %v5665_v10  ;;  %v6406_v15 = vpack.c.bf16 %v5618_v33, %v5617_v12  ;;  %v5649_v0 = vld [vmem:[%s10655_s8 + $0x170] sm:$0xff]  ;;  %v5650_v14 = vld [vmem:[%s10655_s8 + $0x178] sm:$0xff] }
0x1788   :  { %v6438_v61 = vpack.c.bf16 %v5650_v14, %v5649_v0 }
0x178a   :  { %6387 = vmatpush3.bf16.msra.mxu1 %v6386_v19  ;;  %6419 = vmatpush3.bf16.msra.mxu0 %v6418_v59  ;;  %v5435_v19 = vsub.s32 3, %v5422_v23  ;;  %v5424_v59 = vrot.slane %v5419_v29, %v5423_v43 }
0x178b   :  { %6389 = vmatprep.subr.bf16.mxu1 %v6388_v50  ;;  %6421 = vmatprep.subr.bf16.mxu0 %v6420_v30 }
0x178c   :  { %v5436_v50 = vrot.slane %v5419_v29, %v5435_v19 }
0x178e   :  { %6391 = vmatpush3.bf16.msra.mxu1 %v6390_v55  ;;  %6423 = vmatpush3.bf16.msra.mxu0 %v6422_v1 }
0x178f   :  { %6393 = vmatprep.subr.bf16.mxu1 %v6392_v25  ;;  %6425 = vmatprep.subr.bf16.mxu0 %v6424_v28 }
0x1792   :  { %6395 = vmatpush3.bf16.msra.mxu1 %v6394_v54  ;;  %6427 = vmatpush3.bf16.msra.mxu0 %v6426_v6 }
0x1793   :  { %6397 = vmatprep.subr.bf16.mxu1 %v6396_v38  ;;  %6429 = vmatprep.subr.bf16.mxu0 %v6428_v57 }
0x1796   :  { %6399 = vmatpush3.bf16.msra.mxu1 %v6398_v11  ;;  %6431 = vmatpush3.bf16.msra.mxu0 %v6430_v51 }
0x1797   :  { %6401 = vmatprep.subr.bf16.mxu1 %v6400_v52  ;;  %6433 = vmatprep.subr.bf16.mxu0 %v6432_v35 }
0x179a   :  { %6403 = vmatpush3.bf16.msra.mxu1 %v6402_v34  ;;  %6435 = vmatpush3.bf16.msra.mxu0 %v6434_v7 }
0x179b   :  { %6405 = vmatprep.subr.bf16.mxu1 %v6404_v26  ;;  %6437 = vmatprep.subr.bf16.mxu0 %v6436_v47 }
0x179e   :  { %6407 = vmatpush3.bf16.msra.mxu1 %v6406_v15  ;;  %6439 = vmatpush3.bf16.msra.mxu0 %v6438_v61 }
0x1853   :  { %v5507_v30 = vpop.f32.mrb[16].mxu1  ;;  %v5584_v5 = vpop.f32.mrb[16].mxu0 }
0x1854   :  { %v5508_v31 = vadd.f32 %v5507_v30, %v5424_v59  ;;  %v5585_v16 = vadd.f32 %v5584_v5, %v5432_v53  ;;  %v5509_v40 = vpop.f32.mrb[17].mxu1  ;;  %v5586_v63 = vpop.f32.mrb[17].mxu0 }
0x1855   :  { %v5510_v13 = vadd.f32 %v5509_v40, %v5428_v39  ;;  %v5587_v55 = vadd.f32 %v5586_v63, %v5436_v50 }
0x1856   :  { %v5595_v24 = vmax.f32 %v5508_v31, 0.0  ;;  %v5597_v25 = vmax.f32 %v5585_v16, 0.0 }
0x1857   :  { %v5596_v1 = vmax.f32 %v5510_v13, 0.0  ;;  %v5598_v8 = vmax.f32 %v5587_v55, 0.0 }
0x1858   :  { %v5513_v28 = vpop.f32.mrb[18].mxu1  ;;  %v5590_v2 = vpop.f32.mrb[18].mxu0 }
0x1859   :  { %v5514_v21 = vadd.f32 %v5513_v28, %v5424_v59  ;;  %v5591_v27 = vadd.f32 %v5590_v2, %v5432_v53  ;;  %v5515_v48 = vpop.f32.mrb[19].mxu1  ;;  %v5592_v58 = vpop.f32.mrb[19].mxu0  ;;  %5738 = vmatprep.mubr.f32.mxu1 %v5596_v1  ;;  %5813 = vmatprep.mubr.f32.mxu0 %v5598_v8 }
0x185a   :  { %v5516_v9 = vadd.f32 %v5515_v48, %v5428_v39  ;;  %v5593_v54 = vadd.f32 %v5592_v58, %v5436_v50  ;;  %5739 = vmatmul.mubr.f32.vlgmr.msra.gmra.mrb[20].mxu1 %v5595_v24  ;;  %5814 = vmatmul.mubr.f32.vlgmr.msra.gmra.mrb[20].mxu0 %v5597_v25 }
0x185b   :  { %v5599_v62 = vmax.f32 %v5514_v21, 0.0  ;;  %v5601_v38 = vmax.f32 %v5591_v27, 0.0 }
0x185c   :  { %v5600_v6 = vmax.f32 %v5516_v9, 0.0  ;;  %v5602_v32 = vmax.f32 %v5593_v54, 0.0 }
0x185e   :  { %5743 = vmatprep.mubr.f32.mxu1 %v5600_v6  ;;  %5818 = vmatprep.mubr.f32.mxu0 %v5602_v32 }
0x185f   :  { %5744 = vmatmul.mubr.f32.gmra.mrb[22].mxu1 %v5599_v62  ;;  %5819 = vmatmul.mubr.f32.gmra.mrb[22].mxu0 %v5601_v38 }
0x192d   :  { %v6108_v57 = vpop.f32.mrb[20].mxu1  ;;  %v6146_v60 = vpop.f32.mrb[20].mxu0 }
0x192e   :  { %v6109_v49 = vpop.f32.mrb[21].mxu1  ;;  %v6147_v45 = vpop.f32.mrb[21].mxu0 }
0x192f   :  { %v6110_v20 = vadd.f32 %v6109_v49, %v6108_v57  ;;  %v6148_v22 = vadd.f32 %v6147_v45, %v6146_v60 }
0x1931   :  { %v5741_v11 = vadd.f32 %v6110_v20, %v6005_v4 }
0x1932   :  { %v6111_v51 = vpop.f32.mrb[22].mxu1  ;;  %v6149_v52 = vpop.f32.mrb[22].mxu0 }
0x1933   :  { %v5816_v35 = vadd.f32 %v6148_v22, %v5741_v11  ;;  %v6112_v42 = vpop.f32.mrb[23].mxu1  ;;  %v6150_v36 = vpop.f32.mrb[23].mxu0 }
0x1934   :  { %v6113_v3 = vadd.f32 %v6112_v42, %v6111_v51  ;;  %v6151_v34 = vadd.f32 %v6150_v36, %v6149_v52 }
0x1935   :  { %5824 = vst [vmem:[%s10658_s10] sm:$0xff] %v5816_v35 }
0x1936   :  { %v5746_v56 = vadd.f32 %v6113_v3, %v6005_v4 }
0x1938   :  { %v5821_v7 = vadd.f32 %v6151_v34, %v5746_v56 }
0x193a   :  { %5825 = vst [vmem:[%s10658_s10 + $0x8] sm:$0xff] %v5821_v7 }

</bundles_post_ra>
